<compile_context>
chip_gen: v7x
topology: tpu7x:2x2x1
jax: 0.10.0
libtpu: 0.0.40
codegen_flags: <defaults>
</compile_context>

<pallas_src>
import jax
import jax.numpy as jnp
from jax import lax
from jax.experimental import pallas as pl
from jax.experimental.pallas import tpu as pltpu

# ---------------- small shapes consistent with the module ----------------
B = 2                      # batch
IMG = 8                    # img_size  -> n = IMG*IMG tokens
DIM = 32                   # dim (input channels)
HEADS = 4
DIM_HEAD = 16
INNER = HEADS * DIM_HEAD   # 64
KSIZE = 3
TAPS = KSIZE * KSIZE       # 9
PAD = (KSIZE - 1) // 2     # q/k/v stride = 1  -> 'same' padding
N = IMG * IMG              # 64 tokens
SCALE = DIM_HEAD ** -0.5
BN_EPS = 1e-5


# ------------------------------ Pallas kernel ------------------------------
def conv_attention_kernel(xpad_ref, wfull_ref, bfull_ref, wot_ref, bot_ref,
                          o_ref):
    """Single grid step, whole problem.

    xpad_ref : (B, IMG+2, IMG+2, DIM)   padded NHWC image, f32
    wfull_ref: (9*DIM, 3*INNER)         fused dw*BN*pw weights (q|k|v), bf16
    bfull_ref: (1, 3*INNER)             fused bias (q|k|v), f32
    wot_ref  : (DIM, INNER)             output Linear weight, pre-transposed, bf16
    bot_ref  : (DIM, 1)                 output Linear bias (column), f32
    o_ref    : (DIM, B*N)               lane-dense transposed output slab, f32
    """
    # ---- im2col: the 9 shifted windows, built ONCE and shared by q/k/v ----
    wins = [xpad_ref[:, di:di + IMG, dj:dj + IMG, :].reshape(B * N, DIM)
            for di in range(KSIZE) for dj in range(KSIZE)]
    cols = jnp.concatenate(wins, axis=1).astype(jnp.bfloat16)   # (128, 288)

    # ---- fused depthwise+BN+pointwise for q, k, v: ONE MXU matmul ----
    # (128, 288) x (288, 192) -> (128, 192), f32 accumulation, f32 bias.
    qkv = jnp.dot(cols, wfull_ref[...],
                  preferred_element_type=jnp.float32) + bfull_ref[...]

    # ---- multi-head attention + output projection, heads unrolled ----
    # Head handling uses only 16-lane slices and leading-dim reshapes (no
    # in-kernel transposes); the output projection is accumulated per head as
    # (DIM, DH) x (B*N, DH)^T -> (DIM, B*N), lane-dense.
    out_t = jnp.zeros((DIM, B * N), jnp.float32)
    for h in range(HEADS):                      # statically unrolled (4)
        def head_slice(p, h=h):
            off = p * INNER + h * DIM_HEAD
            return qkv[:, off:off + DIM_HEAD].reshape(B, N, DIM_HEAD)

        qh = head_slice(0)          # attention scale pre-folded into weights
        kh = head_slice(1)
        vh = head_slice(2)

        dots = lax.dot_general(qh, kh, (((2,), (2,)), ((0,), (0,))),
                               preferred_element_type=jnp.float32)  # (B,N,N)
        dots = dots - jnp.max(dots, axis=-1, keepdims=True)
        e = jnp.exp(dots)
        attn = e * pl.reciprocal(jnp.sum(e, axis=-1, keepdims=True),
                                 approx=True)
        oh = lax.dot_general(attn.astype(jnp.bfloat16),
                             vh.astype(jnp.bfloat16),
                             (((2,), (1,)), ((0,), (0,))),
                             preferred_element_type=jnp.float32)    # (B,N,DH)

        out_t = out_t + lax.dot_general(
            wot_ref[:, h * DIM_HEAD:(h + 1) * DIM_HEAD],
            oh.reshape(B * N, DIM_HEAD).astype(jnp.bfloat16),
            (((1,), (1,)), ((), ())),
            preferred_element_type=jnp.float32)                     # (32,128)

    o_ref[...] = out_t + bot_ref[...]


@jax.jit
def conv_attention(x, w_full, b_full, wo_t, bo_col):
    # x: (B, N, DIM) -> padded NHWC image (cheap XLA-side glue)
    xpad = jnp.pad(x.reshape(B, IMG, IMG, DIM),
                   ((0, 0), (PAD, PAD), (PAD, PAD), (0, 0)))
    hp = IMG + 2 * PAD
    grid_spec = pltpu.PrefetchScalarGridSpec(
        num_scalar_prefetch=0,
        grid=(1,),                  # whole problem in one block (~0.2 MB)
        in_specs=[
            pl.BlockSpec((B, hp, hp, DIM), lambda i: (0, 0, 0, 0)),
            pl.BlockSpec((TAPS * DIM, 3 * INNER), lambda i: (0, 0)),
            pl.BlockSpec((1, 3 * INNER), lambda i: (0, 0)),
            pl.BlockSpec((DIM, INNER), lambda i: (0, 0)),
            pl.BlockSpec((DIM, 1), lambda i: (0, 0)),
        ],
        out_specs=pl.BlockSpec((DIM, B * N), lambda i: (0, 0)),
    )
    out_t = pl.pallas_call(
        conv_attention_kernel,
        out_shape=jax.ShapeDtypeStruct((DIM, B * N), jnp.float32),
        grid_spec=grid_spec,
        compiler_params=pltpu.CompilerParams(
            dimension_semantics=("arbitrary",)),
    )(xpad, w_full, b_full, wo_t, bo_col)
    # lane-dense (DIM, B*N) slab -> (B, N, DIM): wrapper-side layout plumbing
    return out_t.T.reshape(B, N, DIM)


# ------------------------- parameters (deterministic) -----------------------
def init_params(key):
    params = {}
    for i, name in enumerate(("q", "k", "v")):
        kk = jax.random.split(jax.random.fold_in(key, i), 8)
        params[name] = dict(
            wdw=jax.random.normal(kk[0], (DIM, 1, KSIZE, KSIZE), jnp.float32) * 0.2,
            bdw=jax.random.normal(kk[1], (DIM,), jnp.float32) * 0.1,
            gamma=1.0 + 0.1 * jax.random.normal(kk[2], (DIM,), jnp.float32),
            beta=0.1 * jax.random.normal(kk[3], (DIM,), jnp.float32),
            mean=0.1 * jax.random.normal(kk[4], (DIM,), jnp.float32),
            var=jax.random.uniform(kk[5], (DIM,), jnp.float32, 0.5, 1.5),
            wp=jax.random.normal(kk[6], (DIM, INNER), jnp.float32) / jnp.sqrt(DIM),
            bp=jax.random.normal(kk[7], (INNER,), jnp.float32) * 0.1,
        )
    ko = jax.random.split(jax.random.fold_in(key, 99), 2)
    params["wo"] = jax.random.normal(ko[0], (INNER, DIM), jnp.float32) / jnp.sqrt(INNER)
    params["bo"] = jax.random.normal(ko[1], (DIM,), jnp.float32) * 0.1
    return params


def pack_params(params):
    """Fold depthwise-3x3 + eval-mode BN + pointwise-1x1 (and the attention
    scale for q) into a single (9*DIM, 3*INNER) weight + (3*INNER,) bias."""
    names = ("q", "k", "v")
    w_cols, b_cols = [], []
    for i, n in enumerate(names):
        p = params[n]
        sc = p["gamma"] / jnp.sqrt(p["var"] + BN_EPS)            # (DIM,)
        sh = p["beta"] - p["mean"] * sc                           # (DIM,)
        wdw = p["wdw"].reshape(DIM, TAPS).T                       # (9, DIM)
        # W[tap, c, o] = wdw[tap, c] * sc[c] * wp[c, o]
        w = (wdw * sc)[:, :, None] * p["wp"][None, :, :]          # (9, DIM, INNER)
        w = w.reshape(TAPS * DIM, INNER)                          # (288, INNER)
        b = (p["bdw"] * sc + sh) @ p["wp"] + p["bp"]              # (INNER,)
        if i == 0:                                                # q projection
            w = w * SCALE
            b = b * SCALE
        w_cols.append(w)
        b_cols.append(b)
    w_full = jnp.concatenate(w_cols, axis=1).astype(jnp.bfloat16)  # (288, 192)
    b_full = jnp.concatenate(b_cols)[None, :]                      # (1, 192) f32
    wo_t = params["wo"].T.astype(jnp.bfloat16)                     # (DIM, INNER)
    bo_col = params["bo"][:, None]                                 # (DIM, 1) f32
    return w_full, b_full, wo_t, bo_col


# ------------------------------ pure-JAX reference --------------------------
def reference(x, params):
    ximg = x.reshape(B, IMG, IMG, DIM).transpose(0, 3, 1, 2)       # NCHW

    def sepconv(p):
        y = lax.conv_general_dilated(
            ximg, p["wdw"], (1, 1), [(PAD, PAD), (PAD, PAD)],
            dimension_numbers=("NCHW", "OIHW", "NCHW"),
            feature_group_count=DIM)
        y = y + p["bdw"][None, :, None, None]
        y = (y - p["mean"][None, :, None, None]) / \
            jnp.sqrt(p["var"] + BN_EPS)[None, :, None, None]
        y = y * p["gamma"][None, :, None, None] + p["beta"][None, :, None, None]
        y = jnp.einsum("bchw,cf->bfhw", y, p["wp"]) + p["bp"][None, :, None, None]
        # 'b (h d) l w -> b h (l w) d'
        return y.reshape(B, HEADS, DIM_HEAD, N).transpose(0, 1, 3, 2)

    q, k, v = sepconv(params["q"]), sepconv(params["k"]), sepconv(params["v"])
    dots = jnp.einsum("bhid,bhjd->bhij", q, k) * SCALE
    attn = jax.nn.softmax(dots, axis=-1)
    out = jnp.einsum("bhij,bhjd->bhid", attn, v)
    out = out.transpose(0, 2, 1, 3).reshape(B, N, INNER)           # 'b h n d -> b n (h d)'
    return out @ params["wo"] + params["bo"][None, None, :]


if __name__ == "__main__":
    key = jax.random.PRNGKey(0)
    kx, kp = jax.random.split(key)
    x = jax.random.normal(kx, (B, N, DIM), jnp.float32)
    params = init_params(kp)
    packed = pack_params(params)

    out = jax.block_until_ready(conv_attention(x, *packed))
    ref = jax.block_until_ready(reference(x, params))

    assert out.shape == (B, N, DIM), out.shape
    # tolerance covers the bf16 MXU operand path (im2col / fused weights /
    # attn probs / v / output projection) and the approximate-reciprocal
    # softmax denominator; f32 reference.
    err = float(jnp.max(jnp.abs(out - ref)))
    if not err < 5e-2:
        raise AssertionError(f"kernel vs reference mismatch: max abs err = {err}")
    print("KERNEL_OK")
</pallas_src>

<mosaic_0001>
module attributes {stable_mosaic.version = 11 : i64} {
  func.func @conv_attention_kernel(%arg0: i32, %arg1: memref<2x10x10x32xf32, #tpu.memory_space<vmem>>, %arg2: memref<288x192xbf16, #tpu.memory_space<vmem>>, %arg3: memref<1x192xf32, #tpu.memory_space<vmem>>, %arg4: memref<32x64xbf16, #tpu.memory_space<vmem>>, %arg5: memref<32x1xf32, #tpu.memory_space<vmem>>, %arg6: memref<32x128xf32, #tpu.memory_space<vmem>>) attributes {dimension_semantics = [#tpu.dimension_semantics<arbitrary>], iteration_bounds = array<i64: 1>, scalar_prefetch = 0 : i64, scratch_operands = 0 : i64, tpu.core_type = #tpu.core_type<tc>, window_params = [{pipeline_mode = #tpu.pipeline_mode<synchronous>, transform_indices = @transform_0, window_bounds = array<i64: 2, 10, 10, 32>}, {pipeline_mode = #tpu.pipeline_mode<synchronous>, transform_indices = @transform_1, window_bounds = array<i64: 288, 192>}, {pipeline_mode = #tpu.pipeline_mode<synchronous>, transform_indices = @transform_2, window_bounds = array<i64: 1, 192>}, {pipeline_mode = #tpu.pipeline_mode<synchronous>, transform_indices = @transform_3, window_bounds = array<i64: 32, 64>}, {pipeline_mode = #tpu.pipeline_mode<synchronous>, transform_indices = @transform_4, window_bounds = array<i64: 32, 1>}, {pipeline_mode = #tpu.pipeline_mode<synchronous>, transform_indices = @transform_5, window_bounds = array<i64: 32, 128>}]} {
    %c0 = arith.constant 0 : index
    %c0_0 = arith.constant 0 : index
    %c0_1 = arith.constant 0 : index
    %c0_2 = arith.constant 0 : index
    %0 = vector.load %arg1[%c0, %c0_0, %c0_1, %c0_2] : memref<2x10x10x32xf32, #tpu.memory_space<vmem>>, vector<2x8x8x32xf32>
    %1 = vector.shape_cast %0 : vector<2x8x8x32xf32> to vector<128x32xf32>
    %c0_3 = arith.constant 0 : index
    %c0_4 = arith.constant 0 : index
    %c1 = arith.constant 1 : index
    %c0_5 = arith.constant 0 : index
    %2 = vector.load %arg1[%c0_3, %c0_4, %c1, %c0_5] : memref<2x10x10x32xf32, #tpu.memory_space<vmem>>, vector<2x8x8x32xf32>
    %3 = vector.shape_cast %2 : vector<2x8x8x32xf32> to vector<128x32xf32>
    %c0_6 = arith.constant 0 : index
    %c0_7 = arith.constant 0 : index
    %c2 = arith.constant 2 : index
    %c0_8 = arith.constant 0 : index
    %4 = vector.load %arg1[%c0_6, %c0_7, %c2, %c0_8] : memref<2x10x10x32xf32, #tpu.memory_space<vmem>>, vector<2x8x8x32xf32>
    %5 = vector.shape_cast %4 : vector<2x8x8x32xf32> to vector<128x32xf32>
    %c0_9 = arith.constant 0 : index
    %c1_10 = arith.constant 1 : index
    %c0_11 = arith.constant 0 : index
    %c0_12 = arith.constant 0 : index
    %6 = vector.load %arg1[%c0_9, %c1_10, %c0_11, %c0_12] : memref<2x10x10x32xf32, #tpu.memory_space<vmem>>, vector<2x8x8x32xf32>
    %7 = vector.shape_cast %6 : vector<2x8x8x32xf32> to vector<128x32xf32>
    %c0_13 = arith.constant 0 : index
    %c1_14 = arith.constant 1 : index
    %c1_15 = arith.constant 1 : index
    %c0_16 = arith.constant 0 : index
    %8 = vector.load %arg1[%c0_13, %c1_14, %c1_15, %c0_16] : memref<2x10x10x32xf32, #tpu.memory_space<vmem>>, vector<2x8x8x32xf32>
    %9 = vector.shape_cast %8 : vector<2x8x8x32xf32> to vector<128x32xf32>
    %c0_17 = arith.constant 0 : index
    %c1_18 = arith.constant 1 : index
    %c2_19 = arith.constant 2 : index
    %c0_20 = arith.constant 0 : index
    %10 = vector.load %arg1[%c0_17, %c1_18, %c2_19, %c0_20] : memref<2x10x10x32xf32, #tpu.memory_space<vmem>>, vector<2x8x8x32xf32>
    %11 = vector.shape_cast %10 : vector<2x8x8x32xf32> to vector<128x32xf32>
    %c0_21 = arith.constant 0 : index
    %c2_22 = arith.constant 2 : index
    %c0_23 = arith.constant 0 : index
    %c0_24 = arith.constant 0 : index
    %12 = vector.load %arg1[%c0_21, %c2_22, %c0_23, %c0_24] : memref<2x10x10x32xf32, #tpu.memory_space<vmem>>, vector<2x8x8x32xf32>
    %13 = vector.shape_cast %12 : vector<2x8x8x32xf32> to vector<128x32xf32>
    %c0_25 = arith.constant 0 : index
    %c2_26 = arith.constant 2 : index
    %c1_27 = arith.constant 1 : index
    %c0_28 = arith.constant 0 : index
    %14 = vector.load %arg1[%c0_25, %c2_26, %c1_27, %c0_28] : memref<2x10x10x32xf32, #tpu.memory_space<vmem>>, vector<2x8x8x32xf32>
    %15 = vector.shape_cast %14 : vector<2x8x8x32xf32> to vector<128x32xf32>
    %c0_29 = arith.constant 0 : index
    %c2_30 = arith.constant 2 : index
    %c2_31 = arith.constant 2 : index
    %c0_32 = arith.constant 0 : index
    %16 = vector.load %arg1[%c0_29, %c2_30, %c2_31, %c0_32] : memref<2x10x10x32xf32, #tpu.memory_space<vmem>>, vector<2x8x8x32xf32>
    %17 = vector.shape_cast %16 : vector<2x8x8x32xf32> to vector<128x32xf32>
    %18 = tpu.concatenate %1, %3, %5, %7, %9, %11, %13, %15, %17 in 1 : vector<128x32xf32>, vector<128x32xf32>, vector<128x32xf32>, vector<128x32xf32>, vector<128x32xf32>, vector<128x32xf32>, vector<128x32xf32>, vector<128x32xf32>, vector<128x32xf32> -> vector<128x288xf32>
    %19 = arith.truncf %18 : vector<128x288xf32> to vector<128x288xbf16>
    %c0_33 = arith.constant 0 : index
    %c0_34 = arith.constant 0 : index
    %20 = vector.load %arg2[%c0_33, %c0_34] : memref<288x192xbf16, #tpu.memory_space<vmem>>, vector<288x192xbf16>
    %cst = arith.constant dense<0.000000e+00> : vector<128x192xf32>
    %21 = tpu.matmul %19, %20, %cst {dimension_numbers = #tpu.dot_dimension_numbers<[1], [0], [0], [1], [0, 0, 1, 1], [], []>} : vector<128x288xbf16>, vector<288x192xbf16>, vector<128x192xf32> -> vector<128x192xf32>
    %c0_35 = arith.constant 0 : index
    %c0_36 = arith.constant 0 : index
    %22 = vector.load %arg3[%c0_35, %c0_36] : memref<1x192xf32, #tpu.memory_space<vmem>>, vector<1x192xf32>
    %23 = vector.broadcast %22 : vector<1x192xf32> to vector<128x192xf32>
    %24 = arith.addf %21, %23 : vector<128x192xf32>
    %cst_37 = arith.constant 0.000000e+00 : f32
    %25 = vector.broadcast %cst_37 : f32 to vector<32x128xf32>
    %26 = vector.extract_strided_slice %24 {offsets = [0, 0], sizes = [128, 16], strides = [1, 1]} : vector<128x192xf32> to vector<128x16xf32>
    %27 = vector.shape_cast %26 : vector<128x16xf32> to vector<2x64x16xf32>
    %28 = vector.extract_strided_slice %24 {offsets = [0, 64], sizes = [128, 16], strides = [1, 1]} : vector<128x192xf32> to vector<128x16xf32>
    %29 = vector.shape_cast %28 : vector<128x16xf32> to vector<2x64x16xf32>
    %30 = vector.extract_strided_slice %24 {offsets = [0, 128], sizes = [128, 16], strides = [1, 1]} : vector<128x192xf32> to vector<128x16xf32>
    %31 = vector.shape_cast %30 : vector<128x16xf32> to vector<2x64x16xf32>
    %cst_38 = arith.constant dense<0.000000e+00> : vector<2x64x64xf32>
    %32 = tpu.matmul %27, %29, %cst_38 {dimension_numbers = #tpu.dot_dimension_numbers<[2], [2], [1], [1], [0, 0, 0, 1, 1, 1], [0], [0]>} : vector<2x64x16xf32>, vector<2x64x16xf32>, vector<2x64x64xf32> -> vector<2x64x64xf32>
    %cst_39 = arith.constant dense<0xFF800000> : vector<2x64xf32>
    %33 = vector.multi_reduction <maximumf>, %32, %cst_39 [2] : vector<2x64x64xf32> to vector<2x64xf32>
    %34 = vector.shape_cast %33 : vector<2x64xf32> to vector<2x64x1xf32>
    %35 = vector.broadcast %34 : vector<2x64x1xf32> to vector<2x64x64xf32>
    %36 = arith.subf %32, %35 : vector<2x64x64xf32>
    %37 = math.exp %36 : vector<2x64x64xf32>
    %cst_40 = arith.constant dense<0.000000e+00> : vector<2x64xf32>
    %38 = vector.multi_reduction <add>, %37, %cst_40 [2] : vector<2x64x64xf32> to vector<2x64xf32>
    %39 = vector.shape_cast %38 : vector<2x64xf32> to vector<2x64x1xf32>
    %40 = tpu.reciprocal %39 {approx = true} : vector<2x64x1xf32> -> vector<2x64x1xf32>
    %41 = vector.broadcast %40 : vector<2x64x1xf32> to vector<2x64x64xf32>
    %42 = arith.mulf %37, %41 : vector<2x64x64xf32>
    %43 = arith.truncf %42 : vector<2x64x64xf32> to vector<2x64x64xbf16>
    %44 = arith.truncf %31 : vector<2x64x16xf32> to vector<2x64x16xbf16>
    %cst_41 = arith.constant dense<0.000000e+00> : vector<2x64x16xf32>
    %45 = tpu.matmul %43, %44, %cst_41 {dimension_numbers = #tpu.dot_dimension_numbers<[2], [1], [1], [2], [0, 0, 0, 1, 1, 2], [0], [0]>} : vector<2x64x64xbf16>, vector<2x64x16xbf16>, vector<2x64x16xf32> -> vector<2x64x16xf32>
    %c0_42 = arith.constant 0 : index
    %c0_43 = arith.constant 0 : index
    %46 = vector.load %arg4[%c0_42, %c0_43] : memref<32x64xbf16, #tpu.memory_space<vmem>>, vector<32x16xbf16>
    %47 = vector.shape_cast %45 : vector<2x64x16xf32> to vector<128x16xf32>
    %48 = arith.truncf %47 : vector<128x16xf32> to vector<128x16xbf16>
    %cst_44 = arith.constant dense<0.000000e+00> : vector<32x128xf32>
    %49 = tpu.matmul %46, %48, %cst_44 {dimension_numbers = #tpu.dot_dimension_numbers<[1], [1], [0], [0], [0, 0, 1, 0], [], []>} : vector<32x16xbf16>, vector<128x16xbf16>, vector<32x128xf32> -> vector<32x128xf32>
    %50 = arith.addf %25, %49 : vector<32x128xf32>
    %51 = vector.extract_strided_slice %24 {offsets = [0, 16], sizes = [128, 16], strides = [1, 1]} : vector<128x192xf32> to vector<128x16xf32>
    %52 = vector.shape_cast %51 : vector<128x16xf32> to vector<2x64x16xf32>
    %53 = vector.extract_strided_slice %24 {offsets = [0, 80], sizes = [128, 16], strides = [1, 1]} : vector<128x192xf32> to vector<128x16xf32>
    %54 = vector.shape_cast %53 : vector<128x16xf32> to vector<2x64x16xf32>
    %55 = vector.extract_strided_slice %24 {offsets = [0, 144], sizes = [128, 16], strides = [1, 1]} : vector<128x192xf32> to vector<128x16xf32>
    %56 = vector.shape_cast %55 : vector<128x16xf32> to vector<2x64x16xf32>
    %cst_45 = arith.constant dense<0.000000e+00> : vector<2x64x64xf32>
    %57 = tpu.matmul %52, %54, %cst_45 {dimension_numbers = #tpu.dot_dimension_numbers<[2], [2], [1], [1], [0, 0, 0, 1, 1, 1], [0], [0]>} : vector<2x64x16xf32>, vector<2x64x16xf32>, vector<2x64x64xf32> -> vector<2x64x64xf32>
    %cst_46 = arith.constant dense<0xFF800000> : vector<2x64xf32>
    %58 = vector.multi_reduction <maximumf>, %57, %cst_46 [2] : vector<2x64x64xf32> to vector<2x64xf32>
    %59 = vector.shape_cast %58 : vector<2x64xf32> to vector<2x64x1xf32>
    %60 = vector.broadcast %59 : vector<2x64x1xf32> to vector<2x64x64xf32>
    %61 = arith.subf %57, %60 : vector<2x64x64xf32>
    %62 = math.exp %61 : vector<2x64x64xf32>
    %cst_47 = arith.constant dense<0.000000e+00> : vector<2x64xf32>
    %63 = vector.multi_reduction <add>, %62, %cst_47 [2] : vector<2x64x64xf32> to vector<2x64xf32>
    %64 = vector.shape_cast %63 : vector<2x64xf32> to vector<2x64x1xf32>
    %65 = tpu.reciprocal %64 {approx = true} : vector<2x64x1xf32> -> vector<2x64x1xf32>
    %66 = vector.broadcast %65 : vector<2x64x1xf32> to vector<2x64x64xf32>
    %67 = arith.mulf %62, %66 : vector<2x64x64xf32>
    %68 = arith.truncf %67 : vector<2x64x64xf32> to vector<2x64x64xbf16>
    %69 = arith.truncf %56 : vector<2x64x16xf32> to vector<2x64x16xbf16>
    %cst_48 = arith.constant dense<0.000000e+00> : vector<2x64x16xf32>
    %70 = tpu.matmul %68, %69, %cst_48 {dimension_numbers = #tpu.dot_dimension_numbers<[2], [1], [1], [2], [0, 0, 0, 1, 1, 2], [0], [0]>} : vector<2x64x64xbf16>, vector<2x64x16xbf16>, vector<2x64x16xf32> -> vector<2x64x16xf32>
    %c0_49 = arith.constant 0 : index
    %c16 = arith.constant 16 : index
    %71 = vector.load %arg4[%c0_49, %c16] : memref<32x64xbf16, #tpu.memory_space<vmem>>, vector<32x16xbf16>
    %72 = vector.shape_cast %70 : vector<2x64x16xf32> to vector<128x16xf32>
    %73 = arith.truncf %72 : vector<128x16xf32> to vector<128x16xbf16>
    %cst_50 = arith.constant dense<0.000000e+00> : vector<32x128xf32>
    %74 = tpu.matmul %71, %73, %cst_50 {dimension_numbers = #tpu.dot_dimension_numbers<[1], [1], [0], [0], [0, 0, 1, 0], [], []>} : vector<32x16xbf16>, vector<128x16xbf16>, vector<32x128xf32> -> vector<32x128xf32>
    %75 = arith.addf %50, %74 : vector<32x128xf32>
    %76 = vector.extract_strided_slice %24 {offsets = [0, 32], sizes = [128, 16], strides = [1, 1]} : vector<128x192xf32> to vector<128x16xf32>
    %77 = vector.shape_cast %76 : vector<128x16xf32> to vector<2x64x16xf32>
    %78 = vector.extract_strided_slice %24 {offsets = [0, 96], sizes = [128, 16], strides = [1, 1]} : vector<128x192xf32> to vector<128x16xf32>
    %79 = vector.shape_cast %78 : vector<128x16xf32> to vector<2x64x16xf32>
    %80 = vector.extract_strided_slice %24 {offsets = [0, 160], sizes = [128, 16], strides = [1, 1]} : vector<128x192xf32> to vector<128x16xf32>
    %81 = vector.shape_cast %80 : vector<128x16xf32> to vector<2x64x16xf32>
    %cst_51 = arith.constant dense<0.000000e+00> : vector<2x64x64xf32>
    %82 = tpu.matmul %77, %79, %cst_51 {dimension_numbers = #tpu.dot_dimension_numbers<[2], [2], [1], [1], [0, 0, 0, 1, 1, 1], [0], [0]>} : vector<2x64x16xf32>, vector<2x64x16xf32>, vector<2x64x64xf32> -> vector<2x64x64xf32>
    %cst_52 = arith.constant dense<0xFF800000> : vector<2x64xf32>
    %83 = vector.multi_reduction <maximumf>, %82, %cst_52 [2] : vector<2x64x64xf32> to vector<2x64xf32>
    %84 = vector.shape_cast %83 : vector<2x64xf32> to vector<2x64x1xf32>
    %85 = vector.broadcast %84 : vector<2x64x1xf32> to vector<2x64x64xf32>
    %86 = arith.subf %82, %85 : vector<2x64x64xf32>
    %87 = math.exp %86 : vector<2x64x64xf32>
    %cst_53 = arith.constant dense<0.000000e+00> : vector<2x64xf32>
    %88 = vector.multi_reduction <add>, %87, %cst_53 [2] : vector<2x64x64xf32> to vector<2x64xf32>
    %89 = vector.shape_cast %88 : vector<2x64xf32> to vector<2x64x1xf32>
    %90 = tpu.reciprocal %89 {approx = true} : vector<2x64x1xf32> -> vector<2x64x1xf32>
    %91 = vector.broadcast %90 : vector<2x64x1xf32> to vector<2x64x64xf32>
    %92 = arith.mulf %87, %91 : vector<2x64x64xf32>
    %93 = arith.truncf %92 : vector<2x64x64xf32> to vector<2x64x64xbf16>
    %94 = arith.truncf %81 : vector<2x64x16xf32> to vector<2x64x16xbf16>
    %cst_54 = arith.constant dense<0.000000e+00> : vector<2x64x16xf32>
    %95 = tpu.matmul %93, %94, %cst_54 {dimension_numbers = #tpu.dot_dimension_numbers<[2], [1], [1], [2], [0, 0, 0, 1, 1, 2], [0], [0]>} : vector<2x64x64xbf16>, vector<2x64x16xbf16>, vector<2x64x16xf32> -> vector<2x64x16xf32>
    %c0_55 = arith.constant 0 : index
    %c32 = arith.constant 32 : index
    %96 = vector.load %arg4[%c0_55, %c32] : memref<32x64xbf16, #tpu.memory_space<vmem>>, vector<32x16xbf16>
    %97 = vector.shape_cast %95 : vector<2x64x16xf32> to vector<128x16xf32>
    %98 = arith.truncf %97 : vector<128x16xf32> to vector<128x16xbf16>
    %cst_56 = arith.constant dense<0.000000e+00> : vector<32x128xf32>
    %99 = tpu.matmul %96, %98, %cst_56 {dimension_numbers = #tpu.dot_dimension_numbers<[1], [1], [0], [0], [0, 0, 1, 0], [], []>} : vector<32x16xbf16>, vector<128x16xbf16>, vector<32x128xf32> -> vector<32x128xf32>
    %100 = arith.addf %75, %99 : vector<32x128xf32>
    %101 = vector.extract_strided_slice %24 {offsets = [0, 48], sizes = [128, 16], strides = [1, 1]} : vector<128x192xf32> to vector<128x16xf32>
    %102 = vector.shape_cast %101 : vector<128x16xf32> to vector<2x64x16xf32>
    %103 = vector.extract_strided_slice %24 {offsets = [0, 112], sizes = [128, 16], strides = [1, 1]} : vector<128x192xf32> to vector<128x16xf32>
    %104 = vector.shape_cast %103 : vector<128x16xf32> to vector<2x64x16xf32>
    %105 = vector.extract_strided_slice %24 {offsets = [0, 176], sizes = [128, 16], strides = [1, 1]} : vector<128x192xf32> to vector<128x16xf32>
    %106 = vector.shape_cast %105 : vector<128x16xf32> to vector<2x64x16xf32>
    %cst_57 = arith.constant dense<0.000000e+00> : vector<2x64x64xf32>
    %107 = tpu.matmul %102, %104, %cst_57 {dimension_numbers = #tpu.dot_dimension_numbers<[2], [2], [1], [1], [0, 0, 0, 1, 1, 1], [0], [0]>} : vector<2x64x16xf32>, vector<2x64x16xf32>, vector<2x64x64xf32> -> vector<2x64x64xf32>
    %cst_58 = arith.constant dense<0xFF800000> : vector<2x64xf32>
    %108 = vector.multi_reduction <maximumf>, %107, %cst_58 [2] : vector<2x64x64xf32> to vector<2x64xf32>
    %109 = vector.shape_cast %108 : vector<2x64xf32> to vector<2x64x1xf32>
    %110 = vector.broadcast %109 : vector<2x64x1xf32> to vector<2x64x64xf32>
    %111 = arith.subf %107, %110 : vector<2x64x64xf32>
    %112 = math.exp %111 : vector<2x64x64xf32>
    %cst_59 = arith.constant dense<0.000000e+00> : vector<2x64xf32>
    %113 = vector.multi_reduction <add>, %112, %cst_59 [2] : vector<2x64x64xf32> to vector<2x64xf32>
    %114 = vector.shape_cast %113 : vector<2x64xf32> to vector<2x64x1xf32>
    %115 = tpu.reciprocal %114 {approx = true} : vector<2x64x1xf32> -> vector<2x64x1xf32>
    %116 = vector.broadcast %115 : vector<2x64x1xf32> to vector<2x64x64xf32>
    %117 = arith.mulf %112, %116 : vector<2x64x64xf32>
    %118 = arith.truncf %117 : vector<2x64x64xf32> to vector<2x64x64xbf16>
    %119 = arith.truncf %106 : vector<2x64x16xf32> to vector<2x64x16xbf16>
    %cst_60 = arith.constant dense<0.000000e+00> : vector<2x64x16xf32>
    %120 = tpu.matmul %118, %119, %cst_60 {dimension_numbers = #tpu.dot_dimension_numbers<[2], [1], [1], [2], [0, 0, 0, 1, 1, 2], [0], [0]>} : vector<2x64x64xbf16>, vector<2x64x16xbf16>, vector<2x64x16xf32> -> vector<2x64x16xf32>
    %c0_61 = arith.constant 0 : index
    %c48 = arith.constant 48 : index
    %121 = vector.load %arg4[%c0_61, %c48] : memref<32x64xbf16, #tpu.memory_space<vmem>>, vector<32x16xbf16>
    %122 = vector.shape_cast %120 : vector<2x64x16xf32> to vector<128x16xf32>
    %123 = arith.truncf %122 : vector<128x16xf32> to vector<128x16xbf16>
    %cst_62 = arith.constant dense<0.000000e+00> : vector<32x128xf32>
    %124 = tpu.matmul %121, %123, %cst_62 {dimension_numbers = #tpu.dot_dimension_numbers<[1], [1], [0], [0], [0, 0, 1, 0], [], []>} : vector<32x16xbf16>, vector<128x16xbf16>, vector<32x128xf32> -> vector<32x128xf32>
    %125 = arith.addf %100, %124 : vector<32x128xf32>
    %c0_63 = arith.constant 0 : index
    %c0_64 = arith.constant 0 : index
    %126 = vector.load %arg5[%c0_63, %c0_64] : memref<32x1xf32, #tpu.memory_space<vmem>>, vector<32x1xf32>
    %127 = vector.broadcast %126 : vector<32x1xf32> to vector<32x128xf32>
    %128 = arith.addf %125, %127 : vector<32x128xf32>
    %c0_65 = arith.constant 0 : index
    %c0_66 = arith.constant 0 : index
    %129 = vector.load %arg6[%c0_65, %c0_66] : memref<32x128xf32, #tpu.memory_space<vmem>>, vector<32x128xf32>
    tpu.vector_store %arg6[%c0_65, %c0_66], %128 {strides = array<i32>} : memref<32x128xf32, #tpu.memory_space<vmem>>, vector<32x128xf32>,
    return
  }
  func.func @transform_0(%arg0: i32) -> (i32, i32, i32, i32) {
    %c0_i32 = arith.constant 0 : i32
    %c0_i32_0 = arith.constant 0 : i32
    %c0_i32_1 = arith.constant 0 : i32
    %c0_i32_2 = arith.constant 0 : i32
    %c0_i32_3 = arith.constant 0 : i32
    return %c0_i32, %c0_i32_0, %c0_i32_1, %c0_i32_2 : i32, i32, i32, i32
  }
  func.func @transform_1(%arg0: i32) -> (i32, i32) {
    %c0_i32 = arith.constant 0 : i32
    %c0_i32_0 = arith.constant 0 : i32
    %c0_i32_1 = arith.constant 0 : i32
    return %c0_i32, %c0_i32_0 : i32, i32
  }
  func.func @transform_2(%arg0: i32) -> (i32, i32) {
    %c0_i32 = arith.constant 0 : i32
    %c0_i32_0 = arith.constant 0 : i32
    %c0_i32_1 = arith.constant 0 : i32
    return %c0_i32, %c0_i32_0 : i32, i32
  }
  func.func @transform_3(%arg0: i32) -> (i32, i32) {
    %c0_i32 = arith.constant 0 : i32
    %c0_i32_0 = arith.constant 0 : i32
    %c0_i32_1 = arith.constant 0 : i32
    return %c0_i32, %c0_i32_0 : i32, i32
  }
  func.func @transform_4(%arg0: i32) -> (i32, i32) {
    %c0_i32 = arith.constant 0 : i32
    %c0_i32_0 = arith.constant 0 : i32
    %c0_i32_1 = arith.constant 0 : i32
    return %c0_i32, %c0_i32_0 : i32, i32
  }
  func.func @transform_5(%arg0: i32) -> (i32, i32) {
    %c0_i32 = arith.constant 0 : i32
    %c0_i32_0 = arith.constant 0 : i32
    %c0_i32_1 = arith.constant 0 : i32
    return %c0_i32, %c0_i32_0 : i32, i32
  }
}

</mosaic_0001>

<bundles_post_ra>
// kernel: conv_attention.1
= control target key start
LH: loop header
LB: loop body
LE: loop exit
PB: predicated region body
PF: predicated region fallthrough
CT: control target
= control target key end

     0   :  { %s6343_s7 = smov 64   ;;  %s6344_s8 = smov 32   ;;  %vm551_vm0 = vcmask 261120   ;;  %vm568_vm1 = vcmask 523264   ;;  %vm585_vm2 = vcmask 785408   ;;  %vm1176_vm3 = vcmask 130048   ;;  %s8405_s0 = inlined_call_operand.vmem [shape: f32[2,10,10,32], index: 0, kind: input, shape index: {}]   ;;  %s8406_s1 = inlined_call_operand.vmem [shape: bf16[288,192], index: 1, kind: input, shape index: {}]   ;;  %s8407_s2 = inlined_call_operand.vmem [shape: f32[1,192], index: 2, kind: input, shape index: {}]   ;;  %s8408_s3 = inlined_call_operand.vmem [shape: bf16[32,64], index: 3, kind: input, shape index: {}]   ;;  %s8409_s4 = inlined_call_operand.vmem [shape: f32[32,1], index: 4, kind: input, shape index: {}]   ;;  %s8410_s5 = inlined_call_operand.vmem [shape: f32[32,128], index: 5, kind: output, shape index: {}]  }
   0x1   :  { %v6384_v0 = vld [vmem:[%s8405_s0 + $0x20] sm:$0xff]  ;;  %v6389_v1 = vld [vmem:[%s8405_s0 + $0x30] sm:$0xff]  ;;  %s6345_s19 = smov 96   ;;  %vm7157_vm4 = vmpackc.low %vm1176_vm3, %vm1176_vm3 }
   0x2   :  { %v4379_v2 = vld [vmem:[%s8405_s0 + $0x12] sm:$0xff]  ;;  %v5639_v3 = vpack.i.bf16 %v6389_v1, %v6384_v0  ;;  %v4380_v4 = vld [vmem:[%s8405_s0 + $0x22] sm:$0xff] }
   0x3   :  { %v53_v5 = vld [vmem:[%s8405_s0 + $0x2] sm:$0xff]  ;;  %v5629_v7 = vpack.i.bf16 %v4380_v4, %v4379_v2  ;;  %v6408_v8 = vld [vmem:[%s8405_s0 + $0x11] sm:$0xff] }
   0x4   :  { %v37_v6 = vld [vmem:[%s8405_s0 + $0x1] sm:$0xff]  ;;  %5640 = vrot.lane.b32.xlu1 %v5639_v3, %s6343_s7  ;;  %v5644_v9 = vpack.i.bf16 %v4379_v2, %v53_v5  ;;  %v6416_v11 = vld [vmem:[%s8405_s0 + $0x10] sm:$0xff] }
   0x5   :  { %5630 = vrot.lane.b32.xlu0 %v5629_v7, %s6344_s8  ;;  %v5634_v10 = vpack.i.bf16 %v6408_v8, %v37_v6  ;;  %v6421_v12 = vld [vmem:[%s8405_s0 + $0x21] sm:$0xff]  ;;  %v6426_v13 = vld [vmem:[%s8405_s0 + $0x31] sm:$0xff]  ;;  %v5654_v14 = vpack.i.bf16 %v6384_v0, %v6416_v11 }
   0x6   :  { %v5649_v15 = vpack.i.bf16 %v6426_v13, %v6421_v12  ;;  %v4381_v16 = vld [vmem:[%s8405_s0 + $0x32] sm:$0xff]  ;;  %v4382_v17 = vld [vmem:[%s8405_s0 + $0x42] sm:$0xff] }
   0x7   :  { %v5659_v18 = vpack.i.bf16 %v4382_v17, %v4381_v16  ;;  %v6445_v19 = vld [vmem:[%s8405_s0 + $0x40] sm:$0xff]  ;;  %v6450_v20 = vld [vmem:[%s8405_s0 + $0x50] sm:$0xff]  ;;  %v5674_v22 = vpack.i.bf16 %v4381_v16, %v4380_v4 }
   0x8   :  { %5645 = vrot.lane.b32.xlu1 %v5644_v9, %s6343_s7  ;;  %v6031_v21 = vld [vmem:[%s8406_s1 + $0x4] ss:$8 sps:$4 sm:$0xff]   ;;  %v6033_v23 = vld [vmem:[%s8406_s1] ss:$8 sps:$4 sm:$0xff]   ;;  %v5669_v24 = vpack.i.bf16 %v6450_v20, %v6445_v19  ;;  %v6034_v25 = vld [vmem:[%s8406_s1 + $0x14] ss:$8 sps:$4 sm:$0xff]   ;;  %v5684_v30 = vpack.i.bf16 %v6445_v19, %v6389_v1 }
   0x9   :  { %5635 = vrot.lane.b32.xlu0 %v5634_v10, %s6344_s8  ;;  %926 = vmatprep.subr.bf16.mxu0 %v6031_v21  ;;  %v6468_v26 = vld [vmem:[%s8405_s0 + $0x41] sm:$0xff]  ;;  %v6473_v27 = vld [vmem:[%s8405_s0 + $0x51] sm:$0xff] }
   0xa   :  { %927 = vmatpush1.bf16.msra.mxu0 %v6033_v23  ;;  %v6036_v28 = vld [vmem:[%s8406_s1 + $0x10] ss:$8 sps:$4 sm:$0xff]   ;;  %v6037_v29 = vld [vmem:[%s8406_s1 + $0x24] ss:$8 sps:$4 sm:$0xff]   ;;  %v5679_v31 = vpack.i.bf16 %v6473_v27, %v6468_v26  ;;  %v6039_v34 = vld [vmem:[%s8406_s1 + $0x20] ss:$8 sps:$4 sm:$0xff]  }
   0xb   :  { %928 = vmatprep.subr.bf16.mxu0 %v6034_v25  ;;  %v4383_v32 = vld [vmem:[%s8405_s0 + $0x52] sm:$0xff]  ;;  %v4384_v33 = vld [vmem:[%s8405_s0 + $0x62] sm:$0xff] }
   0xc   :  { %5655 = vrot.lane.b32.xlu1 %v5654_v14, %s6345_s19  ;;  %v6040_v35 = vld [vmem:[%s8406_s1 + $0x34] ss:$8 sps:$4 sm:$0xff]   ;;  %v5689_v36 = vpack.i.bf16 %v4384_v33, %v4383_v32  ;;  %v6504_v37 = vld [vmem:[%s8405_s0 + $0x60] sm:$0xff]  ;;  %v6042_v39 = vld [vmem:[%s8406_s1 + $0x30] ss:$8 sps:$4 sm:$0xff]   ;;  %v5704_v41 = vpack.i.bf16 %v4383_v32, %v4382_v17 }
   0xd   :  { %5650 = vrot.lane.b32.xlu0 %v5649_v15, %s6345_s19  ;;  %v6509_v38 = vld [vmem:[%s8405_s0 + $0x70] sm:$0xff]  ;;  %v6043_v40 = vld [vmem:[%s8406_s1 + $0x44] ss:$8 sps:$4 sm:$0xff]   ;;  %v6045_v45 = vld [vmem:[%s8406_s1 + $0x40] ss:$8 sps:$4 sm:$0xff]   ;;  %v5714_v47 = vpack.i.bf16 %v6504_v37, %v6450_v20 }
   0xe   :  { %929 = vmatpush1.bf16.msra.mxu0 %v6036_v28  ;;  %v6521_v42 = vld [vmem:[%s8405_s0 + $0x61] sm:$0xff]  ;;  %v5699_v43 = vpack.i.bf16 %v6509_v38, %v6504_v37  ;;  %v6529_v44 = vld [vmem:[%s8405_s0 + $0x71] sm:$0xff] }
   0xf   :  { %930 = vmatprep.subr.bf16.mxu0 %v6037_v29  ;;  %v6046_v46 = vld [vmem:[%s8406_s1 + $0x54] ss:$8 sps:$4 sm:$0xff]   ;;  %v5709_v49 = vpack.i.bf16 %v6529_v44, %v6521_v42  ;;  %v4386_v50 = vld [vmem:[%s8405_s0 + $0x82] sm:$0xff]  ;;  %v6048_v51 = vld [vmem:[%s8406_s1 + $0x50] ss:$8 sps:$4 sm:$0xff]  }
  0x10   :  { %5665 = vrot.lane.b32.xlu1 %v5649_v15, %s6344_s8  ;;  %v4385_v48 = vld [vmem:[%s8405_s0 + $0x72] sm:$0xff]  ;;  %v6049_v52 = vld [vmem:[%s8406_s1 + $0x64] ss:$8 sps:$4 sm:$0xff]   ;;  %v6051_v56 = vld [vmem:[%s8406_s1 + $0x60] ss:$8 sps:$4 sm:$0xff]  }
  0x11   :  { %5660 = vrot.lane.b32.xlu0 %v5659_v18, %s6344_s8  ;;  %v5719_v53 = vpack.i.bf16 %v4386_v50, %v4385_v48  ;;  %v4401_v54 = vld [vmem:[%s8405_s0 + $0x80] sm:$0xff]  ;;  %v4402_v55 = vld [vmem:[%s8405_s0 + $0x90] sm:$0xff]  ;;  %v5734_v58 = vpack.i.bf16 %v4385_v48, %v4384_v33 }
  0x12   :  { %931 = vmatpush1.bf16.msra.mxu0 %v6039_v34  ;;  %v6052_v57 = vld [vmem:[%s8406_s1 + $0x74] ss:$8 sps:$4 sm:$0xff]   ;;  %v6573_v59 = vld [vmem:[%s8405_s0 + $0x81] sm:$0xff]  ;;  %v5729_v60 = vpack.i.bf16 %v4402_v55, %v4401_v54  ;;  %v6054_v62 = vld [vmem:[%s8406_s1 + $0x70] ss:$8 sps:$4 sm:$0xff]   ;;  %v5744_v2 = vpack.i.bf16 %v4401_v54, %v6509_v38 }
  0x13   :  { %932 = vmatprep.subr.bf16.mxu0 %v6040_v35  ;;  %v4418_v61 = vld [vmem:[%s8405_s0 + $0x91] sm:$0xff]  ;;  %v6055_v63 = vld [vmem:[%s8406_s1 + $0x84] ss:$8 sps:$4 sm:$0xff]   ;;  %v6057_v9 = vld [vmem:[%s8406_s1 + $0x80] ss:$8 sps:$4 sm:$0xff]  }
  0x14   :  { %5675 = vrot.lane.b32.xlu1 %v5674_v22, %s6343_s7  ;;  %v5739_v3 = vpack.i.bf16 %v4418_v61, %v6573_v59  ;;  %v45_v4 = vld [vmem:[%s8405_s0 + $0xa1] sm:$0xff]  ;;  %v6595_v5 = vld [vmem:[%s8405_s0 + $0xb1] sm:$0xff] }
  0x15   :  { %5670 = vrot.lane.b32.xlu0 %v5669_v24, %s6343_s7  ;;  %v4387_v6 = vld [vmem:[%s8405_s0 + $0xb2] sm:$0xff]  ;;  %v4388_v7 = vld [vmem:[%s8405_s0 + $0xc2] sm:$0xff]  ;;  %v5754_v14 = vpack.i.bf16 %v6595_v5, %v45_v4 }
  0x16   :  { %933 = vmatpush1.bf16.msra.mxu0 %v6042_v39  ;;  %v6058_v10 = vld [vmem:[%s8406_s1 + $0x94] ss:$8 sps:$4 sm:$0xff]   ;;  %v5749_v15 = vpack.i.bf16 %v4388_v7, %v4387_v6  ;;  %v61_v16 = vld [vmem:[%s8405_s0 + $0xa2] sm:$0xff]  ;;  %v6060_v21 = vld [vmem:[%s8406_s1 + $0x90] ss:$8 sps:$4 sm:$0xff]  }
  0x17   :  { %934 = vmatprep.subr.bf16.mxu0 %v6043_v40  ;;  %v6618_v17 = vld [vmem:[%s8405_s0 + $0xc0] sm:$0xff]  ;;  %v6623_v18 = vld [vmem:[%s8405_s0 + $0xd0] sm:$0xff]  ;;  %v5764_v23 = vpack.i.bf16 %v4387_v6, %v61_v16 }
  0x18   :  { %5685 = vrot.lane.b32.xlu1 %v5684_v30, %s6345_s19  ;;  %v6061_v22 = vld [vmem:[%s8406_s1 + $0xa4] ss:$8 sps:$4 sm:$0xff]   ;;  %v5759_v24 = vpack.i.bf16 %v6623_v18, %v6618_v17  ;;  %v6638_v25 = vld [vmem:[%s8405_s0 + $0xb0] sm:$0xff]  ;;  %v6063_v30 = vld [vmem:[%s8406_s1 + $0xa0] ss:$8 sps:$4 sm:$0xff]  }
  0x19   :  { %5680 = vrot.lane.b32.xlu0 %v5679_v31, %s6345_s19  ;;  %v6643_v28 = vld [vmem:[%s8405_s0 + $0xc1] sm:$0xff]  ;;  %v6648_v29 = vld [vmem:[%s8405_s0 + $0xd1] sm:$0xff]  ;;  %v5774_v32 = vpack.i.bf16 %v6618_v17, %v6638_v25 }
  0x1a   :  { %935 = vmatpush1.bf16.msra.mxu0 %v6045_v45  ;;  %v5769_v33 = vpack.i.bf16 %v6648_v29, %v6643_v28  ;;  %v6665_v34 = vld [vmem:[%s8405_s0 + $0xd2] sm:$0xff]  ;;  %v6670_v35 = vld [vmem:[%s8405_s0 + $0xe2] sm:$0xff] }
  0x1b   :  { %936 = vmatprep.subr.bf16.mxu0 %v6046_v46  ;;  %v6067_v39 = vld [vmem:[%s8406_s1 + $0xc4] ss:$8 sps:$4 sm:$0xff]   ;;  %v5779_v40 = vpack.i.bf16 %v6670_v35, %v6665_v34  ;;  %v6069_v45 = vld [vmem:[%s8406_s1 + $0xc0] ss:$8 sps:$4 sm:$0xff]   ;;  %v6070_v46 = vld [vmem:[%s8406_s1 + $0xd4] ss:$8 sps:$4 sm:$0xff]  }
  0x1c   :  { %5695 = vrot.lane.b32.xlu1 %v5679_v31, %s6344_s8  ;;  %v6064_v31 = vld [vmem:[%s8406_s1 + $0xb4] ss:$8 sps:$4 sm:$0xff]   ;;  %v6748_v61 = vld [vmem:[%s8405_s0 + $0x100] sm:$0xff] }
  0x1d   :  { %5690 = vrot.lane.b32.xlu0 %v5689_v36, %s6344_s8  ;;  %v6066_v36 = vld [vmem:[%s8406_s1 + $0xb0] ss:$8 sps:$4 sm:$0xff]   ;;  %v6770_v6 = vld [vmem:[%s8405_s0 + $0x101] sm:$0xff] }
  0x1e   :  { %937 = vmatpush1.bf16.msra.mxu0 %v6048_v51  ;;  %v6711_v50 = vld [vmem:[%s8405_s0 + $0xf1] sm:$0xff] }
  0x1f   :  { %938 = vmatprep.subr.bf16.mxu0 %v6049_v52  ;;  %v6072_v51 = vld [vmem:[%s8406_s1 + $0xd0] ss:$8 sps:$4 sm:$0xff]   ;;  %v6073_v52 = vld [vmem:[%s8406_s1 + $0xe4] ss:$8 sps:$4 sm:$0xff]  }
  0x20   :  { %5705 = vrot.lane.b32.xlu1 %v5704_v41, %s6343_s7  ;;  %v6685_v41 = vld [vmem:[%s8405_s0 + $0xe0] sm:$0xff]  ;;  %v6728_v55 = vld [vmem:[%s8405_s0 + $0xf2] sm:$0xff] }
  0x21   :  { %5700 = vrot.lane.b32.xlu0 %v5699_v43, %s6343_s7  ;;  %v6690_v43 = vld [vmem:[%s8405_s0 + $0xf0] sm:$0xff] }
  0x22   :  { %939 = vmatpush1.bf16.msra.mxu0 %v6051_v56  ;;  %v5789_v48 = vpack.i.bf16 %v6690_v43, %v6685_v41  ;;  %v6733_v56 = vld [vmem:[%s8405_s0 + $0x102] sm:$0xff] }
  0x23   :  { %940 = vmatprep.subr.bf16.mxu0 %v6052_v57  ;;  %v6075_v57 = vld [vmem:[%s8406_s1 + $0xe0] ss:$8 sps:$4 sm:$0xff]  }
  0x24   :  { %5715 = vrot.lane.b32.xlu1 %v5714_v47, %s6345_s19  ;;  %v5794_v47 = vpack.i.bf16 %v6665_v34, %v4388_v7  ;;  %v6775_v7 = vld [vmem:[%s8405_s0 + $0x111] sm:$0xff] }
  0x25   :  { %5710 = vrot.lane.b32.xlu0 %v5709_v49, %s6345_s19 }
  0x26   :  { %941 = vmatpush1.bf16.msra.mxu0 %v6054_v62  ;;  %v6753_v62 = vld [vmem:[%s8405_s0 + $0x110] sm:$0xff] }
  0x27   :  { %942 = vmatprep.subr.bf16.mxu0 %v6055_v63  ;;  %v6078_v63 = vld [vmem:[%s8406_s1 + $0xf0] ss:$8 sps:$4 sm:$0xff]   ;;  %v5819_v4 = vpack.i.bf16 %v6753_v62, %v6748_v61 }
  0x28   :  { %5725 = vrot.lane.b32.xlu1 %v5709_v49, %s6344_s8  ;;  %v6706_v49 = vld [vmem:[%s8405_s0 + $0xe1] sm:$0xff] }
  0x29   :  { %5720 = vrot.lane.b32.xlu0 %v5719_v53, %s6344_s8  ;;  %v5804_v53 = vpack.i.bf16 %v6685_v41, %v6623_v18  ;;  %v5799_v54 = vpack.i.bf16 %v6711_v50, %v6706_v49 }
  0x2a   :  { %943 = vmatpush1.bf16.msra.mxu0 %v6057_v9  ;;  %v5834_v9 = vpack.i.bf16 %v6748_v61, %v6690_v43 }
  0x2b   :  { %944 = vmatprep.subr.bf16.mxu0 %v6058_v10  ;;  %v5829_v10 = vpack.i.bf16 %v6775_v7, %v6770_v6 }
  0x2c   :  { %5735 = vrot.lane.b32.xlu1 %v5734_v58, %s6343_s7  ;;  %v6076_v58 = vld [vmem:[%s8406_s1 + $0xf4] ss:$8 sps:$4 sm:$0xff]  }
  0x2d   :  { %5730 = vrot.lane.b32.xlu0 %v5729_v60, %s6343_s7  ;;  %v5809_v60 = vpack.i.bf16 %v6733_v56, %v6728_v55 }
  0x2e   :  { %945 = vmatpush1.bf16.msra.mxu0 %v6060_v21  ;;  %v4409_v21 = vld [vmem:[%s8405_s0 + $0x120] sm:$0xff] }
  0x2f   :  { %946 = vmatprep.subr.bf16.mxu0 %v6061_v22  ;;  %v4410_v22 = vld [vmem:[%s8405_s0 + $0x130] sm:$0xff] }
  0x30   :  { %5745 = vrot.lane.b32.xlu1 %v5744_v2, %s6345_s19  ;;  %v6081_v2 = vld [vmem:[%s8406_s1 + $0x104] ss:$8 sps:$4 sm:$0xff]  }
  0x31   :  { %5740 = vrot.lane.b32.xlu0 %v5739_v3, %s6345_s19  ;;  %v5824_v3 = vpack.i.bf16 %v6728_v55, %v6670_v35 }
  0x32   :  { %947 = vmatpush1.bf16.msra.mxu0 %v6063_v30  ;;  %v6810_v30 = vld [vmem:[%s8405_s0 + $0x121] sm:$0xff] }
  0x33   :  { %948 = vmatprep.subr.bf16.mxu0 %v6064_v31  ;;  %v4426_v31 = vld [vmem:[%s8405_s0 + $0x131] sm:$0xff] }
  0x34   :  { %5755 = vrot.lane.b32.xlu1 %v5754_v14, %s6344_s8  ;;  %v6786_v14 = vld [vmem:[%s8405_s0 + $0x112] sm:$0xff] }
  0x35   :  { %5750 = vrot.lane.b32.xlu0 %v5749_v15, %s6344_s8  ;;  %v6791_v15 = vld [vmem:[%s8405_s0 + $0x122] sm:$0xff] }
  0x36   :  { %949 = vmatpush1.bf16.msra.mxu0 %v6066_v36  ;;  %v5839_v16 = vpack.i.bf16 %v6791_v15, %v6786_v14  ;;  %v5859_v36 = vpack.i.bf16 %v4426_v31, %v6810_v30 }
  0x37   :  { %950 = vmatprep.subr.bf16.mxu0 %v6067_v39 }
  0x38   :  { %5765 = vrot.lane.b32.xlu1 %v5764_v23, %s6343_s7  ;;  %v5854_v23 = vpack.i.bf16 %v6786_v14, %v6733_v56 }
  0x39   :  { %5760 = vrot.lane.b32.xlu0 %v5759_v24, %s6343_s7  ;;  %v5849_v24 = vpack.i.bf16 %v4410_v22, %v4409_v21 }
  0x3a   :  { %951 = vmatpush1.bf16.msra.mxu0 %v6069_v45 }
  0x3b   :  { %952 = vmatprep.subr.bf16.mxu0 %v6070_v46 }
  0x3c   :  { %5775 = vrot.lane.b32.xlu1 %v5774_v32, %s6345_s19  ;;  %v6346_v32 = vmov 0  }
  0x3d   :  { %5770 = vrot.lane.b32.xlu0 %v5769_v33, %s6345_s19  ;;  %6030 = vset.pattern.permute.xlu1 %v6346_v32 }
  0x3e   :  { %953 = vmatpush1.bf16.msra.mxu0 %v6072_v51  ;;  %6029 = vset.pattern.permute.xlu0 %v6346_v32  ;;  %v21_v51 = vld [vmem:[%s8405_s0] sm:$0xff] }
  0x3f   :  { %954 = vmatprep.subr.bf16.mxu0 %v6073_v52 }
  0x40   :  { %5785 = vrot.lane.b32.xlu1 %v5769_v33, %s6344_s8  ;;  %v5864_v33 = vpack.i.bf16 %v4409_v21, %v6753_v62 }
  0x41   :  { %5780 = vrot.lane.b32.xlu0 %v5779_v40, %s6344_s8 }
  0x42   :  { %955 = vmatpush1.bf16.msra.mxu0 %v6075_v57 }
  0x43   :  { %956 = vmatprep.subr.bf16.mxu0 %v6076_v58 }
  0x44   :  { %5795 = vrot.lane.b32.xlu1 %v5794_v47, %s6343_s7 }
  0x45   :  { %5790 = vrot.lane.b32.xlu0 %v5789_v48, %s6343_s7 }
  0x46   :  { %957 = vmatpush1.bf16.msra.mxu0 %v6078_v63 }
  0x47   :  { %1039 = vmatprep.subr.bf16.mxu0 %v6081_v2 }
  0x48   :  { %5805 = vrot.lane.b32.xlu1 %v5804_v53, %s6345_s19 }
  0x49   :  { %5800 = vrot.lane.b32.xlu0 %v5799_v54, %s6345_s19 }
  0x4c   :  { %5815 = vrot.lane.b32.xlu1 %v5799_v54, %s6344_s8 }
  0x4d   :  { %5810 = vrot.lane.b32.xlu0 %v5809_v60, %s6344_s8 }
  0x50   :  { %5825 = vrot.lane.b32.xlu1 %v5824_v3, %s6343_s7 }
  0x51   :  { %5820 = vrot.lane.b32.xlu0 %v5819_v4, %s6343_s7 }
  0x54   :  { %5835 = vrot.lane.b32.xlu1 %v5834_v9, %s6345_s19 }
  0x55   :  { %5830 = vrot.lane.b32.xlu0 %v5829_v10, %s6345_s19 }
  0x58   :  { %5845 = vrot.lane.b32.xlu1 %v5829_v10, %s6344_s8 }
  0x59   :  { %5840 = vrot.lane.b32.xlu0 %v5839_v16, %s6344_s8 }
  0x5c   :  { %5855 = vrot.lane.b32.xlu1 %v5854_v23, %s6343_s7 }
  0x5d   :  { %5850 = vrot.lane.b32.xlu0 %v5849_v24, %s6343_s7 }
  0x60   :  { %5865 = vrot.lane.b32.xlu1 %v5864_v33, %s6345_s19 }
  0x61   :  { %5860 = vrot.lane.b32.xlu0 %v5859_v36, %s6345_s19 }
  0x76   :  { %v5641_v39 = vpop.permute.xlu1 %5640 }
  0x77   :  { %v5631_v40 = vpop.permute.xlu0 %5630  ;;  %v5643_v58 = vunpack.i.h.bf16 %v5641_v39  ;;  %v5642_v60 = vunpack.i.l.bf16 %v5641_v39 }
  0x78   :  { %v5633_v45 = vunpack.i.h.bf16 %v5631_v40  ;;  %v5632_v46 = vunpack.i.l.bf16 %v5631_v40 }
  0x7a   :  { %v5646_v47 = vpop.permute.xlu1 %5645  ;;  %v602_v4 = vsel %vm551_vm0, %v6408_v8, %v5632_v46  ;;  %v603_v9 = vsel %vm551_vm0, %v6421_v12, %v5633_v45 }
  0x7b   :  { %v5636_v48 = vpop.permute.xlu0 %5635  ;;  %v5648_v52 = vunpack.i.h.bf16 %v5646_v47  ;;  %v5647_v53 = vunpack.i.l.bf16 %v5646_v47  ;;  %v618_v33 = vsel %vm568_vm1, %v602_v4, %v5642_v60 }
  0x7c   :  { %v5638_v54 = vunpack.i.h.bf16 %v5636_v48  ;;  %v5637_v57 = vunpack.i.l.bf16 %v5636_v48  ;;  %v6079_v48 = vld [vmem:[%s8406_s1 + $0x100] ss:$8 sps:$4 sm:$0xff]  }
  0x7e   :  { %v552_v63 = vsel %vm551_vm0, %v21_v51, %v5637_v57  ;;  %v553_v2 = vsel %vm551_vm0, %v6416_v11, %v5638_v54  ;;  %v5656_v3 = vpop.permute.xlu1 %5655  ;;  %v619_v11 = vsel %vm568_vm1, %v603_v9, %v5643_v58  ;;  %v6084_v51 = vld [vmem:[%s8406_s1 + $0x114] ss:$8 sps:$4 sm:$0xff]  }
  0x7f   :  { %v5658_v10 = vunpack.i.h.bf16 %v5656_v3  ;;  %v5657_v16 = vunpack.i.l.bf16 %v5656_v3  ;;  %v5651_v21 = vpop.permute.xlu0 %5650  ;;  %v569_v24 = vsel %vm568_vm1, %v552_v63, %v5647_v53  ;;  %v570_v31 = vsel %vm568_vm1, %v553_v2, %v5648_v52  ;;  %v6082_v63 = vld [vmem:[%s8406_s1 + $0x110] ss:$8 sps:$4 sm:$0xff]  }
  0x80   :  { %v5653_v22 = vunpack.i.h.bf16 %v5651_v21  ;;  %v5652_v23 = vunpack.i.l.bf16 %v5651_v21 }
  0x81   :  { %v586_v36 = vsel %vm585_vm2, %v569_v24, %v5657_v16  ;;  %v587_v8 = vsel %vm585_vm2, %v570_v31, %v5658_v10 }
  0x82   :  { %v5666_v39 = vpop.permute.xlu1 %5665  ;;  %v634_v12 = vsel %vm585_vm2, %v618_v33, %v5652_v23  ;;  %v635_v40 = vsel %vm585_vm2, %v619_v11, %v5653_v22  ;;  %v650_v45 = vpack.c.bf16 %v587_v8, %v586_v36 }
  0x83   :  { %v5661_v46 = vpop.permute.xlu0 %5660  ;;  %v651_v47 = vpack.c.bf16 %v635_v40, %v634_v12  ;;  %v5668_v52 = vunpack.i.h.bf16 %v5666_v39  ;;  %v5667_v53 = vunpack.i.l.bf16 %v5666_v39 }
  0x84   :  { %v5663_v57 = vunpack.i.h.bf16 %v5661_v46  ;;  %v5662_v58 = vunpack.i.l.bf16 %v5661_v46 }
  0x85   :  { %958 = vmatprep.mubr.bf16.mxu0 %v651_v47  ;;  %v554_v10 = vsel %vm551_vm0, %v6384_v0, %v5667_v53  ;;  %v555_v16 = vsel %vm551_vm0, %v6389_v1, %v5668_v52 }
  0x86   :  { %959 = vmatmul.mubr.bf16.vlgmr.msra.gmra.mrb[0].mxu0 %v650_v45  ;;  %v5676_v54 = vpop.permute.xlu1 %5675  ;;  %v605_v22 = vsel %vm551_vm0, %v6468_v26, %v5663_v57  ;;  %v604_v23 = vsel %vm551_vm0, %v6426_v13, %v5662_v58 }
  0x87   :  { %v5671_v60 = vpop.permute.xlu0 %5670  ;;  %1040 = vmatpush1.bf16.msra.mxu0 %v6079_v48  ;;  %v5678_v2 = vunpack.i.h.bf16 %v5676_v54  ;;  %v5677_v3 = vunpack.i.l.bf16 %v5676_v54 }
  0x88   :  { %1041 = vmatprep.subr.bf16.mxu0 %v6084_v51  ;;  %v5673_v4 = vunpack.i.h.bf16 %v5671_v60  ;;  %v5672_v9 = vunpack.i.l.bf16 %v5671_v60 }
  0x89   :  { %v571_v8 = vsel %vm568_vm1, %v554_v10, %v5677_v3  ;;  %v572_v0 = vsel %vm568_vm1, %v555_v16, %v5678_v2 }
  0x8a   :  { %v5686_v21 = vpop.permute.xlu1 %5685  ;;  %v620_v39 = vsel %vm568_vm1, %v604_v23, %v5672_v9  ;;  %v621_v1 = vsel %vm568_vm1, %v605_v22, %v5673_v4 }
  0x8b   :  { %v5688_v24 = vunpack.i.h.bf16 %v5686_v21  ;;  %v5687_v31 = vunpack.i.l.bf16 %v5686_v21  ;;  %v5681_v33 = vpop.permute.xlu0 %5680  ;;  %1042 = vmatpush1.bf16.msra.mxu0 %v6082_v63 }
  0x8c   :  { %v5683_v11 = vunpack.i.h.bf16 %v5681_v33  ;;  %v5682_v36 = vunpack.i.l.bf16 %v5681_v33 }
  0x8d   :  { %v588_v12 = vsel %vm585_vm2, %v571_v8, %v5687_v31  ;;  %v589_v26 = vsel %vm585_vm2, %v572_v0, %v5688_v24 }
  0x8e   :  { %v5696_v40 = vpop.permute.xlu1 %5695  ;;  %v636_v13 = vsel %vm585_vm2, %v620_v39, %v5682_v36  ;;  %v637_v45 = vsel %vm585_vm2, %v621_v1, %v5683_v11  ;;  %v653_v46 = vpack.c.bf16 %v589_v26, %v588_v12 }
  0x8f   :  { %v5691_v47 = vpop.permute.xlu0 %5690  ;;  %v654_v48 = vpack.c.bf16 %v637_v45, %v636_v13  ;;  %v5698_v51 = vunpack.i.h.bf16 %v5696_v40  ;;  %v5697_v52 = vunpack.i.l.bf16 %v5696_v40 }
  0x90   :  { %v5693_v54 = vunpack.i.h.bf16 %v5691_v47  ;;  %v5692_v57 = vunpack.i.l.bf16 %v5691_v47 }
  0x91   :  { %968 = vmatprep.mubr.bf16.mxu0 %v654_v48  ;;  %v556_v4 = vsel %vm551_vm0, %v6445_v19, %v5697_v52  ;;  %v557_v9 = vsel %vm551_vm0, %v6450_v20, %v5698_v51 }
  0x92   :  { %969 = vmatmul.mubr.bf16.gmra.mrb[4].mxu0 %v653_v46  ;;  %v5706_v53 = vpop.permute.xlu1 %5705  ;;  %v607_v16 = vsel %vm551_vm0, %v6521_v42, %v5693_v54  ;;  %v606_v21 = vsel %vm551_vm0, %v6473_v27, %v5692_v57 }
  0x93   :  { %v5701_v58 = vpop.permute.xlu0 %5700  ;;  %v5708_v60 = vunpack.i.h.bf16 %v5706_v53  ;;  %v5707_v63 = vunpack.i.l.bf16 %v5706_v53 }
  0x94   :  { %v5703_v2 = vunpack.i.h.bf16 %v5701_v58  ;;  %v5702_v3 = vunpack.i.l.bf16 %v5701_v58 }
  0x95   :  { %v573_v11 = vsel %vm568_vm1, %v556_v4, %v5707_v63  ;;  %v574_v36 = vsel %vm568_vm1, %v557_v9, %v5708_v60 }
  0x96   :  { %v5716_v10 = vpop.permute.xlu1 %5715  ;;  %v622_v19 = vsel %vm568_vm1, %v606_v21, %v5702_v3  ;;  %v623_v20 = vsel %vm568_vm1, %v607_v16, %v5703_v2 }
  0x97   :  { %v5718_v22 = vunpack.i.h.bf16 %v5716_v10  ;;  %v5717_v23 = vunpack.i.l.bf16 %v5716_v10  ;;  %v5711_v24 = vpop.permute.xlu0 %5710 }
  0x98   :  { %v5713_v31 = vunpack.i.h.bf16 %v5711_v24  ;;  %v5712_v33 = vunpack.i.l.bf16 %v5711_v24 }
  0x99   :  { %v590_v8 = vsel %vm585_vm2, %v573_v11, %v5717_v23  ;;  %v591_v42 = vsel %vm585_vm2, %v574_v36, %v5718_v22 }
  0x9a   :  { %v5726_v0 = vpop.permute.xlu1 %5725  ;;  %v638_v27 = vsel %vm585_vm2, %v622_v19, %v5712_v33  ;;  %v639_v39 = vsel %vm585_vm2, %v623_v20, %v5713_v31  ;;  %v656_v1 = vpack.c.bf16 %v591_v42, %v590_v8  ;;  %v29_v42 = vld [vmem:[%s8405_s0 + $0xa0] sm:$0xff] }
  0x9b   :  { %v5721_v12 = vpop.permute.xlu0 %5720  ;;  %v657_v26 = vpack.c.bf16 %v639_v39, %v638_v27  ;;  %v5728_v40 = vunpack.i.h.bf16 %v5726_v0  ;;  %v5727_v13 = vunpack.i.l.bf16 %v5726_v0 }
  0x9c   :  { %v5723_v46 = vunpack.i.h.bf16 %v5721_v12  ;;  %v5722_v47 = vunpack.i.l.bf16 %v5721_v12 }
  0x9d   :  { %978 = vmatprep.mubr.bf16.mxu0 %v657_v26  ;;  %v558_v57 = vsel %vm551_vm0, %v6504_v37, %v5727_v13  ;;  %v559_v58 = vsel %vm551_vm0, %v6509_v38, %v5728_v40 }
  0x9e   :  { %979 = vmatmul.mubr.bf16.gmra.mrb[8].mxu0 %v656_v1  ;;  %v5736_v45 = vpop.permute.xlu1 %5735  ;;  %v609_v63 = vsel %vm551_vm0, %v6573_v59, %v5723_v46  ;;  %v608_v2 = vsel %vm551_vm0, %v6529_v44, %v5722_v47 }
  0x9f   :  { %v5731_v48 = vpop.permute.xlu0 %5730  ;;  %v5738_v51 = vunpack.i.h.bf16 %v5736_v45  ;;  %v5737_v52 = vunpack.i.l.bf16 %v5736_v45 }
  0xa0   :  { %v5733_v53 = vunpack.i.h.bf16 %v5731_v48  ;;  %v5732_v54 = vunpack.i.l.bf16 %v5731_v48 }
  0xa1   :  { %v575_v21 = vsel %vm568_vm1, %v558_v57, %v5737_v52  ;;  %v576_v22 = vsel %vm568_vm1, %v559_v58, %v5738_v51 }
  0xa2   :  { %v5746_v60 = vpop.permute.xlu1 %5745  ;;  %v624_v37 = vsel %vm568_vm1, %v608_v2, %v5732_v54  ;;  %v625_v38 = vsel %vm568_vm1, %v609_v63, %v5733_v53 }
  0xa3   :  { %v5748_v3 = vunpack.i.h.bf16 %v5746_v60  ;;  %v5747_v4 = vunpack.i.l.bf16 %v5746_v60  ;;  %v5741_v9 = vpop.permute.xlu0 %5740 }
  0xa4   :  { %v5743_v10 = vunpack.i.h.bf16 %v5741_v9  ;;  %v5742_v16 = vunpack.i.l.bf16 %v5741_v9 }
  0xa5   :  { %v592_v23 = vsel %vm585_vm2, %v575_v21, %v5747_v4  ;;  %v593_v59 = vsel %vm585_vm2, %v576_v22, %v5748_v3 }
  0xa6   :  { %v5756_v24 = vpop.permute.xlu1 %5755  ;;  %v640_v44 = vsel %vm585_vm2, %v624_v37, %v5742_v16  ;;  %v641_v31 = vsel %vm585_vm2, %v625_v38, %v5743_v10  ;;  %v659_v33 = vpack.c.bf16 %v593_v59, %v592_v23 }
  0xa7   :  { %v5751_v11 = vpop.permute.xlu0 %5750  ;;  %v660_v36 = vpack.c.bf16 %v641_v31, %v640_v44  ;;  %v5758_v19 = vunpack.i.h.bf16 %v5756_v24  ;;  %v5757_v20 = vunpack.i.l.bf16 %v5756_v24 }
  0xa8   :  { %v5753_v0 = vunpack.i.h.bf16 %v5751_v11  ;;  %v5752_v27 = vunpack.i.l.bf16 %v5751_v11 }
  0xa9   :  { %988 = vmatprep.mubr.bf16.mxu0 %v660_v36  ;;  %v560_v13 = vsel %vm551_vm0, %v29_v42, %v5757_v20  ;;  %v561_v45 = vsel %vm551_vm0, %v6638_v25, %v5758_v19 }
  0xaa   :  { %989 = vmatmul.mubr.bf16.gmra.mrb[12].mxu0 %v659_v33  ;;  %v5766_v8 = vpop.permute.xlu1 %5765  ;;  %v611_v47 = vsel %vm551_vm0, %v6643_v28, %v5753_v0  ;;  %v610_v48 = vsel %vm551_vm0, %v6595_v5, %v5752_v27 }
  0xab   :  { %v5761_v39 = vpop.permute.xlu0 %5760  ;;  %v5768_v1 = vunpack.i.h.bf16 %v5766_v8  ;;  %v5767_v12 = vunpack.i.l.bf16 %v5766_v8 }
  0xac   :  { %v5763_v26 = vunpack.i.h.bf16 %v5761_v39  ;;  %v5762_v40 = vunpack.i.l.bf16 %v5761_v39 }
  0xad   :  { %v577_v58 = vsel %vm568_vm1, %v560_v13, %v5767_v12  ;;  %v578_v60 = vsel %vm568_vm1, %v561_v45, %v5768_v1 }
  0xae   :  { %v5776_v46 = vpop.permute.xlu1 %5775  ;;  %v626_v63 = vsel %vm568_vm1, %v610_v48, %v5762_v40  ;;  %v627_v25 = vsel %vm568_vm1, %v611_v47, %v5763_v26 }
  0xaf   :  { %v5778_v51 = vunpack.i.h.bf16 %v5776_v46  ;;  %v5777_v52 = vunpack.i.l.bf16 %v5776_v46  ;;  %v5771_v53 = vpop.permute.xlu0 %5770 }
  0xb0   :  { %v5773_v54 = vunpack.i.h.bf16 %v5771_v53  ;;  %v5772_v57 = vunpack.i.l.bf16 %v5771_v53 }
  0xb1   :  { %v594_v2 = vsel %vm585_vm2, %v577_v58, %v5777_v52  ;;  %v595_v28 = vsel %vm585_vm2, %v578_v60, %v5778_v51 }
  0xb2   :  { %v5786_v3 = vpop.permute.xlu1 %5785  ;;  %v642_v5 = vsel %vm585_vm2, %v626_v63, %v5772_v57  ;;  %v643_v4 = vsel %vm585_vm2, %v627_v25, %v5773_v54  ;;  %v662_v9 = vpack.c.bf16 %v595_v28, %v594_v2 }
  0xb3   :  { %v5781_v10 = vpop.permute.xlu0 %5780  ;;  %v663_v16 = vpack.c.bf16 %v643_v4, %v642_v5  ;;  %v5788_v21 = vunpack.i.h.bf16 %v5786_v3  ;;  %v5787_v22 = vunpack.i.l.bf16 %v5786_v3 }
  0xb4   :  { %v5783_v38 = vunpack.i.h.bf16 %v5781_v10  ;;  %v5782_v23 = vunpack.i.l.bf16 %v5781_v10 }
  0xb5   :  { %998 = vmatprep.mubr.bf16.mxu0 %v663_v16  ;;  %v562_v11 = vsel %vm551_vm0, %v6618_v17, %v5787_v22  ;;  %v563_v36 = vsel %vm551_vm0, %v6623_v18, %v5788_v21 }
  0xb6   :  { %999 = vmatmul.mubr.bf16.gmra.mrb[16].mxu0 %v662_v9  ;;  %v5796_v37 = vpop.permute.xlu1 %5795  ;;  %v613_v20 = vsel %vm551_vm0, %v6706_v49, %v5783_v38  ;;  %v612_v8 = vsel %vm551_vm0, %v6648_v29, %v5782_v23 }
  0xb7   :  { %v5791_v59 = vpop.permute.xlu0 %5790  ;;  %v5798_v24 = vunpack.i.h.bf16 %v5796_v37  ;;  %v5797_v44 = vunpack.i.l.bf16 %v5796_v37 }
  0xb8   :  { %v5793_v31 = vunpack.i.h.bf16 %v5791_v59  ;;  %v5792_v33 = vunpack.i.l.bf16 %v5791_v59 }
  0xb9   :  { %v579_v12 = vsel %vm568_vm1, %v562_v11, %v5797_v44  ;;  %v580_v26 = vsel %vm568_vm1, %v563_v36, %v5798_v24 }
  0xba   :  { %v5806_v19 = vpop.permute.xlu1 %5805  ;;  %v628_v17 = vsel %vm568_vm1, %v612_v8, %v5792_v33  ;;  %v629_v18 = vsel %vm568_vm1, %v613_v20, %v5793_v31 }
  0xbb   :  { %v5808_v42 = vunpack.i.h.bf16 %v5806_v19  ;;  %v5807_v0 = vunpack.i.l.bf16 %v5806_v19  ;;  %v5801_v27 = vpop.permute.xlu0 %5800 }
  0xbc   :  { %v5803_v39 = vunpack.i.h.bf16 %v5801_v27  ;;  %v5802_v1 = vunpack.i.l.bf16 %v5801_v27 }
  0xbd   :  { %v596_v40 = vsel %vm585_vm2, %v579_v12, %v5807_v0  ;;  %v597_v49 = vsel %vm585_vm2, %v580_v26, %v5808_v42 }
  0xbe   :  { %v5816_v13 = vpop.permute.xlu1 %5815  ;;  %v644_v29 = vsel %vm585_vm2, %v628_v17, %v5802_v1  ;;  %v645_v45 = vsel %vm585_vm2, %v629_v18, %v5803_v39  ;;  %v665_v46 = vpack.c.bf16 %v597_v49, %v596_v40 }
  0xbf   :  { %v5811_v47 = vpop.permute.xlu0 %5810  ;;  %v666_v48 = vpack.c.bf16 %v645_v45, %v644_v29  ;;  %v5818_v51 = vunpack.i.h.bf16 %v5816_v13  ;;  %v5817_v52 = vunpack.i.l.bf16 %v5816_v13 }
  0xc0   :  { %v5813_v54 = vunpack.i.h.bf16 %v5811_v47  ;;  %v5812_v57 = vunpack.i.l.bf16 %v5811_v47 }
  0xc1   :  { %1008 = vmatprep.mubr.bf16.mxu0 %v666_v48  ;;  %v564_v28 = vsel %vm551_vm0, %v6685_v41, %v5817_v52  ;;  %v565_v3 = vsel %vm551_vm0, %v6690_v43, %v5818_v51 }
  0xc2   :  { %1009 = vmatmul.mubr.bf16.gmra.mrb[20].mxu0 %v665_v46  ;;  %v5826_v53 = vpop.permute.xlu1 %5825  ;;  %v615_v4 = vsel %vm551_vm0, %v6770_v6, %v5813_v54  ;;  %v614_v9 = vsel %vm551_vm0, %v6711_v50, %v5812_v57 }
  0xc3   :  { %v5821_v58 = vpop.permute.xlu0 %5820  ;;  %v5828_v60 = vunpack.i.h.bf16 %v5826_v53  ;;  %v5827_v63 = vunpack.i.l.bf16 %v5826_v53 }
  0xc4   :  { %v5823_v25 = vunpack.i.h.bf16 %v5821_v58  ;;  %v5822_v2 = vunpack.i.l.bf16 %v5821_v58  ;;  %v4427_v58 = vld [vmem:[%s8405_s0 + $0x22] sm:$0xff] }
  0xc5   :  { %v581_v38 = vsel %vm568_vm1, %v564_v28, %v5827_v63  ;;  %v582_v23 = vsel %vm568_vm1, %v565_v3, %v5828_v60  ;;  %v4428_v60 = vld [vmem:[%s8405_s0 + $0x32] sm:$0xff]  ;;  %v4431_v3 = vld [vmem:[%s8405_s0 + $0x62] sm:$0xff] }
  0xc6   :  { %v5836_v5 = vpop.permute.xlu1 %5835  ;;  %v630_v41 = vsel %vm568_vm1, %v614_v9, %v5822_v2  ;;  %v631_v43 = vsel %vm568_vm1, %v615_v4, %v5823_v25  ;;  %v652_v63 = vpack.c.bf16 %v4428_v60, %v4427_v58  ;;  %v4429_v25 = vld [vmem:[%s8405_s0 + $0x42] sm:$0xff]  ;;  %v4430_v2 = vld [vmem:[%s8405_s0 + $0x52] sm:$0xff] }
  0xc7   :  { %v5838_v10 = vunpack.i.h.bf16 %v5836_v5  ;;  %v5837_v16 = vunpack.i.l.bf16 %v5836_v5  ;;  %v5831_v21 = vpop.permute.xlu0 %5830  ;;  %v655_v28 = vpack.c.bf16 %v4430_v2, %v4429_v25  ;;  %v4432_v5 = vld [vmem:[%s8405_s0 + $0x72] sm:$0xff]  ;;  %v4433_v9 = vld [vmem:[%s8405_s0 + $0x82] sm:$0xff] }
  0xc8   :  { %v5833_v22 = vunpack.i.h.bf16 %v5831_v21  ;;  %v5832_v37 = vunpack.i.l.bf16 %v5831_v21  ;;  %v658_v4 = vpack.c.bf16 %v4432_v5, %v4431_v3  ;;  %v4435_v21 = vld [vmem:[%s8405_s0 + $0xc2] sm:$0xff] }
  0xc9   :  { %v598_v59 = vsel %vm585_vm2, %v581_v38, %v5837_v16  ;;  %v599_v6 = vsel %vm585_vm2, %v582_v23, %v5838_v10  ;;  %v4434_v10 = vld [vmem:[%s8405_s0 + $0x92] sm:$0xff]  ;;  %v670_v38 = vpack.c.bf16 %v6786_v14, %v6733_v56 }
  0xca   :  { %v5846_v24 = vpop.permute.xlu1 %5845  ;;  %v646_v50 = vsel %vm585_vm2, %v630_v41, %v5832_v37  ;;  %v647_v44 = vsel %vm585_vm2, %v631_v43, %v5833_v22  ;;  %v668_v31 = vpack.c.bf16 %v599_v6, %v598_v59  ;;  %v661_v16 = vpack.c.bf16 %v4434_v10, %v4433_v9  ;;  %v710_v43 = vld [vmem:[%s8407_s2] sm:$0x3]  ;;  %s6348_s2 = smov 112  }
  0xcb   :  { %v5841_v33 = vpop.permute.xlu0 %5840  ;;  %v669_v11 = vpack.c.bf16 %v647_v44, %v646_v50  ;;  %v5848_v36 = vunpack.i.h.bf16 %v5846_v24  ;;  %v5847_v19 = vunpack.i.l.bf16 %v5846_v24  ;;  %v664_v22 = vpack.c.bf16 %v6665_v34, %v4435_v21  ;;  %v4442_v34 = vld [vmem:[%s8405_s0 + $0x132] sm:$0xff]  ;;  %s6347_s0 = smov 48  }
  0xcc   :  { %v5843_v8 = vunpack.i.h.bf16 %v5841_v33  ;;  %v5842_v42 = vunpack.i.l.bf16 %v5841_v33  ;;  %v667_v37 = vpack.c.bf16 %v6728_v55, %v6670_v35  ;;  %v673_v23 = vpack.c.bf16 %v4442_v34, %v6791_v15 }
  0xcd   :  { %1018 = vmatprep.mubr.bf16.mxu0 %v669_v11  ;;  %v566_v26 = vsel %vm551_vm0, %v6748_v61, %v5847_v19  ;;  %v567_v17 = vsel %vm551_vm0, %v6753_v62, %v5848_v36  ;;  %v712_v35 = vlaneseq }
  0xce   :  { %1019 = vmatmul.mubr.bf16.gmra.mrb[24].mxu0 %v668_v31  ;;  %v5856_v20 = vpop.permute.xlu1 %5855  ;;  %v617_v40 = vsel %vm551_vm0, %v6810_v30, %v5843_v8  ;;  %v616_v49 = vsel %vm551_vm0, %v6775_v7, %v5842_v42 }
  0xcf   :  { %v5851_v0 = vpop.permute.xlu0 %5850  ;;  %v5858_v27 = vunpack.i.h.bf16 %v5856_v20  ;;  %v5857_v39 = vunpack.i.l.bf16 %v5856_v20  ;;  %v713_v55 = vshrl.u32 %v712_v35, 7 }
  0xd0   :  { %v5853_v1 = vunpack.i.h.bf16 %v5851_v0  ;;  %v5852_v12 = vunpack.i.l.bf16 %v5851_v0 }
  0xd1   :  { %v583_v48 = vsel %vm568_vm1, %v566_v26, %v5857_v39  ;;  %v584_v51 = vsel %vm568_vm1, %v567_v17, %v5858_v27  ;;  %v714_v41 = vsub.s32 0, %v713_v55  ;;  %v718_v56 = vsub.s32 1, %v713_v55 }
  0xd2   :  { %v5866_v18 = vpop.permute.xlu1 %5865  ;;  %v632_v61 = vsel %vm568_vm1, %v616_v49, %v5852_v12  ;;  %v633_v62 = vsel %vm568_vm1, %v617_v40, %v5853_v1 }
  0xd3   :  { %v5868_v13 = vunpack.i.h.bf16 %v5866_v18  ;;  %v5867_v29 = vunpack.i.l.bf16 %v5866_v18  ;;  %v5861_v45 = vpop.permute.xlu0 %5860  ;;  %v7019_v14 = vrot.slane %v710_v43, %v714_v41 }
  0xd4   :  { %v5863_v46 = vunpack.i.h.bf16 %v5861_v45  ;;  %v5862_v47 = vunpack.i.l.bf16 %v5861_v45 }
  0xd5   :  { %v600_v52 = vsel %vm585_vm2, %v583_v48, %v5867_v29  ;;  %v601_v30 = vsel %vm585_vm2, %v584_v51, %v5868_v13 }
  0xd6   :  { %v648_v53 = vsel %vm585_vm2, %v632_v61, %v5862_v47  ;;  %v649_v7 = vsel %vm585_vm2, %v633_v62, %v5863_v46  ;;  %v671_v54 = vpack.c.bf16 %v601_v30, %v600_v52 }
  0xd7   :  { %v672_v57 = vpack.c.bf16 %v649_v7, %v648_v53 }
  0xd9   :  { %1028 = vmatprep.mubr.bf16.mxu0 %v672_v57 }
  0xda   :  { %1029 = vmatmul.mubr.bf16.gmra.mrb[28].mxu0 %v671_v54 }
  0xdb   :  { %1071 = vmatprep.mubr.bf16.mxu0 %v6346_v32 }
  0xe2   :  { %4479 = vmatmul.mubr.msk.bf16.vlgmr.msra.gmra.mrb[0].mxu0 %vm551_vm0, %v652_v63 }
  0xe3   :  { %1081 = vmatprep.mubr.bf16.mxu0 %v6346_v32 }
  0xea   :  { %4480 = vmatmul.mubr.msk.bf16.gmra.mrb[4].mxu0 %vm551_vm0, %v655_v28 }
  0xeb   :  { %1091 = vmatprep.mubr.bf16.mxu0 %v6346_v32 }
  0xf2   :  { %4481 = vmatmul.mubr.msk.bf16.gmra.mrb[8].mxu0 %vm551_vm0, %v658_v4 }
  0xf3   :  { %1101 = vmatprep.mubr.bf16.mxu0 %v6346_v32 }
  0xfa   :  { %4482 = vmatmul.mubr.msk.bf16.gmra.mrb[12].mxu0 %vm551_vm0, %v661_v16 }
  0xfb   :  { %1111 = vmatprep.mubr.bf16.mxu0 %v6346_v32 }
 0x102   :  { %4483 = vmatmul.mubr.msk.bf16.gmra.mrb[16].mxu0 %vm551_vm0, %v664_v22 }
 0x103   :  { %1121 = vmatprep.mubr.bf16.mxu0 %v6346_v32 }
 0x10a   :  { %4484 = vmatmul.mubr.msk.bf16.gmra.mrb[20].mxu0 %vm551_vm0, %v667_v37 }
 0x10b   :  { %1131 = vmatprep.mubr.bf16.mxu0 %v6346_v32 }
 0x112   :  { %4485 = vmatmul.mubr.msk.bf16.gmra.mrb[24].mxu0 %vm551_vm0, %v670_v38 }
 0x113   :  { %1141 = vmatprep.mubr.bf16.mxu0 %v6346_v32  ;;  %v7021_v32 = vrot.slane %v710_v43, %v718_v56 }
 0x11a   :  { %4486 = vmatmul.mubr.msk.bf16.gmra.mrb[28].mxu0 %vm551_vm0, %v673_v23 }
 0x1b5   :  { %v1073_v59 = vpop.f32.mrb[0].mxu0 }
 0x1b6   :  { %v7024_v6 = vadd.f32 %v1073_v59, %v7019_v14  ;;  %v1075_v15 = vpop.f32.mrb[1].mxu0 }
 0x1b7   :  { %v1077_v24 = vpop.f32.mrb[2].mxu0  ;;  %v5514_v31 = vadd.f32 %v1075_v15, %v7021_v32 }
 0x1b8   :  { %v7027_v50 = vadd.f32 %v1077_v24, %v7019_v14  ;;  %v1079_v44 = vpop.f32.mrb[3].mxu0  ;;  %4905 = vmatprep.mubr.msk.f32.mxu0 %vm1176_vm3, %v7024_v6 }
 0x1b9   :  { %v5516_v33 = vadd.f32 %v1079_v44, %v7021_v32 }
 0x1ba   :  { %v7035_v11 = vpack.i.bf16 %v7027_v50, %v7024_v6 }
 0x1bb   :  { %v7037_v36 = vpack.c.bf16 %v5516_v33, %v5514_v31 }
 0x1bc   :  { %5870 = vrot.lane.b32.xlu0 %v7035_v11, %s6343_s7 }
 0x1bd   :  { %8436 = vst [vmem:[#allocation2_spill] sm:$0xff] %v7037_v36  ;;  %v1083_v19 = vpop.f32.mrb[4].mxu0 }
 0x1be   :  { %v1085_v20 = vpop.f32.mrb[5].mxu0  ;;  %v7042_v42 = vadd.f32 %v1083_v19, %v7019_v14 }
 0x1bf   :  { %v1087_v8 = vpop.f32.mrb[6].mxu0  ;;  %v5518_v39 = vadd.f32 %v1085_v20, %v7021_v32 }
 0x1c0   :  { %v7045_v0 = vadd.f32 %v1087_v8, %v7019_v14  ;;  %v1089_v27 = vpop.f32.mrb[7].mxu0 }
 0x1c1   :  { %v5520_v1 = vadd.f32 %v1089_v27, %v7021_v32 }
 0x1c2   :  { %v7051_v12 = vpack.i.bf16 %v7045_v0, %v7042_v42 }
 0x1c3   :  { %v7053_v26 = vpack.c.bf16 %v5520_v1, %v5518_v39 }
 0x1c4   :  { %5875 = vrot.lane.b32.xlu1 %v7051_v12, %s6343_s7 }
 0x1c5   :  { %8437 = vst [vmem:[#allocation3_spill] sm:$0xff] %v7053_v26  ;;  %v1093_v17 = vpop.f32.mrb[8].mxu0 }
 0x1c6   :  { %v1095_v18 = vpop.f32.mrb[9].mxu0  ;;  %v7058_v49 = vadd.f32 %v1093_v17, %v7019_v14 }
 0x1c7   :  { %v1097_v40 = vpop.f32.mrb[10].mxu0  ;;  %v5522_v45 = vadd.f32 %v1095_v18, %v7021_v32 }
 0x1c8   :  { %v7061_v13 = vadd.f32 %v1097_v40, %v7019_v14  ;;  %v1099_v29 = vpop.f32.mrb[11].mxu0 }
 0x1c9   :  { %v5524_v46 = vadd.f32 %v1099_v29, %v7021_v32 }
 0x1ca   :  { %v7067_v47 = vpack.i.bf16 %v7061_v13, %v7058_v49 }
 0x1cb   :  { %v7069_v48 = vpack.c.bf16 %v5524_v46, %v5522_v45 }
 0x1cc   :  { %5880 = vrot.lane.b32.xlu0 %v7067_v47, %s6343_s7 }
 0x1cd   :  { %8438 = vst [vmem:[#allocation4_spill] sm:$0xff] %v7069_v48  ;;  %v1103_v51 = vpop.f32.mrb[12].mxu0 }
 0x1ce   :  { %v1105_v61 = vpop.f32.mrb[13].mxu0  ;;  %v7074_v52 = vadd.f32 %v1103_v51, %v7019_v14 }
 0x1cf   :  { %v1107_v62 = vpop.f32.mrb[14].mxu0  ;;  %v5526_v7 = vadd.f32 %v1105_v61, %v7021_v32 }
 0x1d0   :  { %v7077_v30 = vadd.f32 %v1107_v62, %v7019_v14  ;;  %v1109_v53 = vpop.f32.mrb[15].mxu0 }
 0x1d1   :  { %v5528_v54 = vadd.f32 %v1109_v53, %v7021_v32 }
 0x1d2   :  { %v7083_v57 = vpack.i.bf16 %v7077_v30, %v7074_v52 }
 0x1d3   :  { %v7085_v58 = vpack.c.bf16 %v5528_v54, %v5526_v7 }
 0x1d4   :  { %5890 = vrot.lane.b32.xlu0 %v7083_v57, %s6343_s7 }
 0x1d5   :  { %8439 = vst [vmem:[#allocation5_spill] sm:$0xff] %v7085_v58  ;;  %v1113_v60 = vpop.f32.mrb[16].mxu0 }
 0x1d6   :  { %v7090_v63 = vadd.f32 %v1113_v60, %v7019_v14  ;;  %v1115_v25 = vpop.f32.mrb[17].mxu0 }
 0x1d7   :  { %v1117_v2 = vpop.f32.mrb[18].mxu0  ;;  %v5530_v5 = vadd.f32 %v1115_v25, %v7021_v32 }
 0x1d8   :  { %v7093_v28 = vadd.f32 %v1117_v2, %v7019_v14  ;;  %v1119_v3 = vpop.f32.mrb[19].mxu0  ;;  %4933 = vmatprep.mubr.msk.f32.mxu1 %vm1176_vm3, %v7090_v63 }
 0x1d9   :  { %v5532_v4 = vadd.f32 %v1119_v3, %v7021_v32 }
 0x1da   :  { %v7101_v9 = vpack.i.bf16 %v7093_v28, %v7090_v63 }
 0x1db   :  { %v7103_v10 = vpack.c.bf16 %v5532_v4, %v5530_v5 }
 0x1dc   :  { %5885 = vrot.lane.b32.xlu1 %v7101_v9, %s6343_s7 }
 0x1dd   :  { %8440 = vst [vmem:[#allocation6_spill] sm:$0xff] %v7103_v10  ;;  %v1123_v16 = vpop.f32.mrb[20].mxu0 }
 0x1de   :  { %v1125_v21 = vpop.f32.mrb[21].mxu0  ;;  %v7109_v38 = vadd.f32 %v1123_v16, %v7019_v14 }
 0x1df   :  { %v5534_v22 = vadd.f32 %v1125_v21, %v7021_v32  ;;  %v1127_v37 = vpop.f32.mrb[22].mxu0 }
 0x1e0   :  { %v7112_v34 = vadd.f32 %v1127_v37, %v7019_v14  ;;  %v1129_v23 = vpop.f32.mrb[23].mxu0 }
 0x1e1   :  { %v5536_v35 = vadd.f32 %v1129_v23, %v7021_v32 }
 0x1e2   :  { %v7117_v55 = vpack.i.bf16 %v7112_v34, %v7109_v38 }
 0x1e3   :  { %v7119_v41 = vpack.c.bf16 %v5536_v35, %v5534_v22 }
 0x1e4   :  { %5895 = vrot.lane.b32.xlu1 %v7117_v55, %s6343_s7 }
 0x1e5   :  { %8441 = vst [vmem:[#allocation7_spill] sm:$0xff] %v7119_v41  ;;  %v1133_v43 = vpop.f32.mrb[24].mxu0 }
 0x1e6   :  { %v1135_v56 = vpop.f32.mrb[25].mxu0  ;;  %v7125_v24 = vadd.f32 %v1133_v43, %v7019_v14 }
 0x1e7   :  { %v5538_v59 = vadd.f32 %v1135_v56, %v7021_v32  ;;  %v1137_v15 = vpop.f32.mrb[26].mxu0 }
 0x1e8   :  { %v7128_v44 = vadd.f32 %v1137_v15, %v7019_v14  ;;  %v1139_v31 = vpop.f32.mrb[27].mxu0 }
 0x1e9   :  { %v5540_v33 = vadd.f32 %v1139_v31, %v7021_v32 }
 0x1ea   :  { %v7133_v19 = vpack.i.bf16 %v7128_v44, %v7125_v24 }
 0x1eb   :  { %v7135_v20 = vpack.c.bf16 %v5540_v33, %v5538_v59 }
 0x1ec   :  { %5900 = vrot.lane.b32.xlu0 %v7133_v19, %s6343_s7 }
 0x1ed   :  { %8442 = vst [vmem:[#allocation8_spill] sm:$0xff] %v7135_v20  ;;  %v1143_v8 = vpop.f32.mrb[28].mxu0 }
 0x1ee   :  { %v1145_v27 = vpop.f32.mrb[29].mxu0  ;;  %v7141_v17 = vadd.f32 %v1143_v8, %v7019_v14 }
 0x1ef   :  { %v5542_v39 = vadd.f32 %v1145_v27, %v7021_v32  ;;  %v1147_v1 = vpop.f32.mrb[30].mxu0 }
 0x1f0   :  { %v7144_v18 = vadd.f32 %v1147_v1, %v7019_v14  ;;  %v1149_v40 = vpop.f32.mrb[31].mxu0 }
 0x1f1   :  { %v5544_v29 = vadd.f32 %v1149_v40, %v7021_v32 }
 0x1f2   :  { %v7149_v45 = vpack.i.bf16 %v7144_v18, %v7141_v17 }
 0x1f3   :  { %v7151_v46 = vpack.c.bf16 %v5544_v29, %v5542_v39 }
 0x1f4   :  { %5905 = vrot.lane.b32.xlu1 %v7149_v45, %s6343_s7  ;;  %s6349_s7 = smov 16  }
 0x1f5   :  { %8443 = vst [vmem:[#allocation9_spill] sm:$0xff] %v7151_v46 }
 0x22e   :  { %v5871_v51 = vpop.permute.xlu0 %5870 }
 0x22f   :  { %v5873_v61 = vunpack.i.h.bf16 %v5871_v51  ;;  %v5872_v62 = vunpack.i.l.bf16 %v5871_v51 }
 0x231   :  { %v5321_v53 = vpack.c.bf16 %v5873_v61, %v5872_v62 }
 0x233   :  { %5323 = vmatprep.subr.msk.bf16.mxu0 %vm7157_vm4, %v5321_v53 }
 0x234   :  { %5326 = vmatpush3.bf16.xpose.msk.msra.mxu0 %vm7157_vm4, %v5321_v53 }
 0x236   :  { %v5876_v32 = vpop.permute.xlu1 %5875 }
 0x237   :  { %v5878_v7 = vunpack.i.h.bf16 %v5876_v32  ;;  %v5877_v54 = vunpack.i.l.bf16 %v5876_v32 }
 0x239   :  { %v5327_v60 = vpack.c.bf16 %v5878_v7, %v5877_v54 }
 0x23b   :  { %5329 = vmatprep.subr.msk.bf16.mxu0 %vm7157_vm4, %v5327_v60 }
 0x23c   :  { %5332 = vmatpush3.bf16.xpose.msk.msra.mxu0 %vm7157_vm4, %v5327_v60 }
 0x23e   :  { %v5881_v25 = vpop.permute.xlu0 %5880 }
 0x23f   :  { %v5883_v2 = vunpack.i.h.bf16 %v5881_v25  ;;  %v5882_v3 = vunpack.i.l.bf16 %v5881_v25 }
 0x241   :  { %v5333_v5 = vpack.c.bf16 %v5883_v2, %v5882_v3 }
 0x243   :  { %5335 = vmatprep.subr.msk.bf16.mxu0 %vm7157_vm4, %v5333_v5 }
 0x244   :  { %5338 = vmatpush3.bf16.xpose.msk.msra.mxu0 %vm7157_vm4, %v5333_v5 }
 0x246   :  { %v5891_v4 = vpop.permute.xlu0 %5890 }
 0x247   :  { %v5893_v16 = vunpack.i.h.bf16 %v5891_v4  ;;  %v5892_v21 = vunpack.i.l.bf16 %v5891_v4 }
 0x249   :  { %v5339_v22 = vpack.c.bf16 %v5893_v16, %v5892_v21 }
 0x24b   :  { %5341 = vmatprep.subr.msk.bf16.mxu0 %vm7157_vm4, %v5339_v22 }
 0x24c   :  { %5344 = vmatpush3.bf16.xpose.msk.msra.mxu0 %vm7157_vm4, %v5339_v22 }
 0x24e   :  { %v5886_v37 = vpop.permute.xlu1 %5885 }
 0x24f   :  { %v5888_v23 = vunpack.i.h.bf16 %v5886_v37  ;;  %v5887_v35 = vunpack.i.l.bf16 %v5886_v37 }
 0x251   :  { %v5345_v43 = vpack.c.bf16 %v5888_v23, %v5887_v35 }
 0x253   :  { %4906 = vmatmul.mubr.msk.f32.vlgmr.msra.gmra.mrb[32].mxu0 %vm1176_vm3, %v7027_v50  ;;  %5347 = vmatprep.subr.msk.bf16.mxu1 %vm7157_vm4, %v5345_v43 }
 0x254   :  { %4908 = vmatprep.mubr.msk.f32.mxu0 %vm1176_vm3, %v7042_v42  ;;  %5350 = vmatpush3.bf16.xpose.msk.msra.mxu1 %vm7157_vm4, %v5345_v43 }
 0x256   :  { %v5896_v56 = vpop.permute.xlu1 %5895 }
 0x257   :  { %v5898_v59 = vunpack.i.h.bf16 %v5896_v56  ;;  %v5897_v15 = vunpack.i.l.bf16 %v5896_v56  ;;  %4909 = vmatmul.mubr.msk.f32.gmra.mrb[34].mxu0 %vm1176_vm3, %v7045_v0 }
 0x258   :  { %4911 = vmatprep.mubr.msk.f32.mxu0 %vm1176_vm3, %v7058_v49 }
 0x259   :  { %v5351_v31 = vpack.c.bf16 %v5898_v59, %v5897_v15 }
 0x25b   :  { %4912 = vmatmul.mubr.msk.f32.gmra.mrb[36].mxu0 %vm1176_vm3, %v7061_v13  ;;  %5353 = vmatprep.subr.msk.bf16.mxu1 %vm7157_vm4, %v5351_v31 }
 0x25c   :  { %4914 = vmatprep.mubr.msk.f32.mxu0 %vm1176_vm3, %v7074_v52  ;;  %5356 = vmatpush3.bf16.xpose.msk.msra.mxu1 %vm7157_vm4, %v5351_v31 }
 0x25e   :  { %v5901_v33 = vpop.permute.xlu0 %5900 }
 0x25f   :  { %v5903_v8 = vunpack.i.h.bf16 %v5901_v33  ;;  %v5902_v27 = vunpack.i.l.bf16 %v5901_v33  ;;  %4915 = vmatmul.mubr.msk.f32.gmra.mrb[38].mxu0 %vm1176_vm3, %v7077_v30 }
 0x261   :  { %v5357_v39 = vpack.c.bf16 %v5903_v8, %v5902_v27 }
 0x263   :  { %5359 = vmatprep.subr.msk.bf16.mxu1 %vm7157_vm4, %v5357_v39 }
 0x264   :  { %5362 = vmatpush3.bf16.xpose.msk.msra.mxu1 %vm7157_vm4, %v5357_v39 }
 0x266   :  { %v5906_v1 = vpop.permute.xlu1 %5905 }
 0x267   :  { %v5908_v40 = vunpack.i.h.bf16 %v5906_v1  ;;  %v5907_v29 = vunpack.i.l.bf16 %v5906_v1 }
 0x269   :  { %v5363_v51 = vpack.c.bf16 %v5908_v40, %v5907_v29 }
 0x26b   :  { %5365 = vmatprep.subr.msk.bf16.mxu1 %vm7157_vm4, %v5363_v51 }
 0x26c   :  { %5368 = vmatpush3.bf16.xpose.msk.msra.mxu1 %vm7157_vm4, %v5363_v51 }
 0x26d   :  { %4945 = vmatprep.subr.bf16.mxu1 %v7037_v36 }
 0x273   :  { %4934 = vmatmul.mubr.msk.f32.vlgmr.msra.gmra.mrb[0].mxu1 %vm1176_vm3, %v7093_v28 }
 0x274   :  { %4936 = vmatprep.mubr.msk.f32.mxu1 %vm1176_vm3, %v7109_v38  ;;  %4946 = vmatpush3.bf16.msra.mxu1 %v7037_v36 }
 0x275   :  { %4947 = vmatprep.subr.bf16.mxu1 %v7053_v26 }
 0x277   :  { %4937 = vmatmul.mubr.msk.f32.gmra.mrb[2].mxu1 %vm1176_vm3, %v7112_v34 }
 0x278   :  { %4939 = vmatprep.mubr.msk.f32.mxu1 %vm1176_vm3, %v7125_v24  ;;  %4948 = vmatpush3.bf16.msra.mxu1 %v7053_v26 }
 0x279   :  { %4949 = vmatprep.subr.bf16.mxu1 %v7069_v48 }
 0x27b   :  { %4940 = vmatmul.mubr.msk.f32.gmra.mrb[4].mxu1 %vm1176_vm3, %v7128_v44 }
 0x27c   :  { %4942 = vmatprep.mubr.msk.f32.mxu1 %vm1176_vm3, %v7141_v17  ;;  %4950 = vmatpush3.bf16.msra.mxu1 %v7069_v48 }
 0x27d   :  { %4951 = vmatprep.subr.bf16.mxu1 %v7085_v58 }
 0x27f   :  { %4943 = vmatmul.mubr.msk.f32.gmra.mrb[6].mxu1 %vm1176_vm3, %v7144_v18 }
 0x280   :  { %4952 = vmatpush3.bf16.msra.mxu1 %v7085_v58 }
 0x281   :  { %4961 = vmatprep.subr.bf16.mxu1 %v7103_v10 }
 0x326   :  { %v4907_v61 = vpop.f32.mrb[32].mxu0 }
 0x327   :  { %v1275_v62 = vpop.f32.mrb[33].mxu0  ;;  %v1478_v53 = vsel %vm568_vm1, %v4907_v61, -inf }
 0x328   :  { %1479 = vmax.xlane.f32.xlu1 %v1478_v53  ;;  %v1475_v32 = vsel %vm568_vm1, %v1275_v62, -inf }
 0x329   :  { %1476 = vmax.xlane.f32.xlu0 %v1475_v32 }
 0x32a   :  { %v4910_v7 = vpop.f32.mrb[34].mxu0 }
 0x32b   :  { %v1285_v54 = vpop.f32.mrb[35].mxu0  ;;  %v1484_v3 = vsel %vm568_vm1, %v4910_v7, -inf }
 0x32c   :  { %v1481_v60 = vsel %vm568_vm1, %v1285_v54, -inf }
 0x32d   :  { %1482 = vmax.xlane.f32.xlu0 %v1481_v60 }
 0x32e   :  { %v7233_v25 = vpop.f32.mrb[36].mxu0 }
 0x32f   :  { %v1295_v2 = vpop.f32.mrb[37].mxu0  ;;  %v1490_v21 = vsel %vm568_vm1, %v7233_v25, -inf }
 0x330   :  { %v1487_v5 = vsel %vm568_vm1, %v1295_v2, -inf }
 0x331   :  { %1485 = vmax.xlane.f32.xlu0 %v1484_v3  ;;  %1488 = vmax.xlane.f32.xlu1 %v1487_v5 }
 0x332   :  { %v7237_v4 = vpop.f32.mrb[38].mxu0 }
 0x333   :  { %v1305_v16 = vpop.f32.mrb[39].mxu0  ;;  %v1496_v37 = vsel %vm568_vm1, %v7237_v4, -inf }
 0x334   :  { %v1493_v22 = vsel %vm568_vm1, %v1305_v16, -inf }
 0x335   :  { %1491 = vmax.xlane.f32.xlu0 %v1490_v21  ;;  %1494 = vmax.xlane.f32.xlu1 %v1493_v22 }
 0x339   :  { %1497 = vmax.xlane.f32.xlu0 %v1496_v37 }
 0x346   :  { %v7244_v23 = vpop.f32.mrb[0].mxu1 }
 0x347   :  { %v7246_v35 = vpop.f32.mrb[1].mxu1  ;;  %v1502_v43 = vsel %vm568_vm1, %v7244_v23, -inf }
 0x348   :  { %1503 = vmax.xlane.f32.xlu0 %v1502_v43  ;;  %v1499_v56 = vsel %vm568_vm1, %v7246_v35, -inf }
 0x349   :  { %1500 = vmax.xlane.f32.xlu1 %v1499_v56 }
 0x34a   :  { %v7252_v59 = vpop.f32.mrb[2].mxu1 }
 0x34b   :  { %v7254_v15 = vpop.f32.mrb[3].mxu1  ;;  %v1508_v31 = vsel %vm568_vm1, %v7252_v59, -inf }
 0x34c   :  { %1509 = vmax.xlane.f32.xlu0 %v1508_v31  ;;  %v1505_v33 = vsel %vm568_vm1, %v7254_v15, -inf }
 0x34d   :  { %1506 = vmax.xlane.f32.xlu1 %v1505_v33 }
 0x34e   :  { %v7260_v8 = vpop.f32.mrb[4].mxu1 }
 0x34f   :  { %v7262_v27 = vpop.f32.mrb[5].mxu1  ;;  %v1514_v39 = vsel %vm568_vm1, %v7260_v8, -inf }
 0x350   :  { %1515 = vmax.xlane.f32.xlu0 %v1514_v39  ;;  %v1511_v1 = vsel %vm568_vm1, %v7262_v27, -inf }
 0x351   :  { %1512 = vmax.xlane.f32.xlu1 %v1511_v1 }
 0x352   :  { %v7268_v40 = vpop.f32.mrb[6].mxu1 }
 0x353   :  { %v7270_v29 = vpop.f32.mrb[7].mxu1  ;;  %v1520_v51 = vsel %vm568_vm1, %v7268_v40, -inf }
 0x354   :  { %1521 = vmax.xlane.f32.xlu0 %v1520_v51  ;;  %v1517_v53 = vsel %vm568_vm1, %v7270_v29, -inf }
 0x355   :  { %1518 = vmax.xlane.f32.xlu1 %v1517_v53 }
 0x366   :  { %5910 = vrot.lane.b32.xlu1 %v7035_v11, %s6347_s0 }
 0x3b5   :  { %v1480_v32 = vpop.xlane.xlu1 %1479 }
 0x3b6   :  { %v1524_v60 = vsub.f32 %v4907_v61, %v1480_v32  ;;  %v1477_v3 = vpop.xlane.xlu0 %1476 }
 0x3b7   :  { %v1523_v5 = vsub.f32 %v1275_v62, %v1477_v3 }
 0x3b8   :  { %v1541_v21 = vmul.f32 1.442695, %v1524_v60 }
 0x3b9   :  { %v1539_v22 = vmul.f32 1.442695, %v1523_v5 }
 0x3ba   :  { %6087 = vpow2.f32 %v1541_v21  ;;  %v1483_v37 = vpop.xlane.xlu0 %1482 }
 0x3bb   :  { %6089 = vpow2.f32 %v1539_v22  ;;  %v1525_v43 = vsub.f32 %v1285_v54, %v1483_v37 }
 0x3bd   :  { %v1543_v56 = vmul.f32 1.442695, %v1525_v43 }
 0x3be   :  { %v1486_v31 = vpop.xlane.xlu0 %1485  ;;  %v1489_v33 = vpop.xlane.xlu1 %1488 }
 0x3bf   :  { %6091 = vpow2.f32 %v1543_v56  ;;  %v1526_v39 = vsub.f32 %v4910_v7, %v1486_v31  ;;  %v1527_v1 = vsub.f32 %v1295_v2, %v1489_v33 }
 0x3c1   :  { %v1545_v51 = vmul.f32 1.442695, %v1526_v39  ;;  %v1547_v53 = vmul.f32 1.442695, %v1527_v1 }
 0x3c2   :  { %v1492_v26 = vpop.xlane.xlu0 %1491  ;;  %v1495_v58 = vpop.xlane.xlu1 %1494 }
 0x3c3   :  { %6093 = vpow2.f32 %v1545_v51  ;;  %v1528_v61 = vsub.f32 %v7233_v25, %v1492_v26  ;;  %v1529_v62 = vsub.f32 %v1305_v16, %v1495_v58 }
 0x3c4   :  { %v7279_v32 = vpop.eup %6087  ;;  %6095 = vpow2.f32 %v1547_v53 }
 0x3c5   :  { %v7281_v60 = vpop.eup %6089  ;;  %v1549_v54 = vmul.f32 1.442695, %v1528_v61  ;;  %v1551_v3 = vmul.f32 1.442695, %v1529_v62  ;;  %v1574_v5 = vsel %vm568_vm1, %v7279_v32, 0.0 }
 0x3c6   :  { %1575 = vadd.xlane.f32.xlu0 %v1574_v5  ;;  %v1498_v7 = vpop.xlane.xlu0 %1497  ;;  %v1571_v2 = vsel %vm568_vm1, %v7281_v60, 0.0 }
 0x3c7   :  { %6097 = vpow2.f32 %v1549_v54  ;;  %v1530_v21 = vsub.f32 %v7237_v4, %v1498_v7  ;;  %1572 = vadd.xlane.f32.xlu1 %v1571_v2 }
 0x3c8   :  { %6099 = vpow2.f32 %v1551_v3 }
 0x3c9   :  { %v7288_v26 = vpop.eup %6091  ;;  %v1553_v58 = vmul.f32 1.442695, %v1530_v21 }
 0x3ca   :  { %v1577_v25 = vsel %vm568_vm1, %v7288_v26, 0.0 }
 0x3cb   :  { %6101 = vpow2.f32 %v1553_v58  ;;  %1578 = vadd.xlane.f32.xlu1 %v1577_v25 }
 0x3cd   :  { %v7292_v16 = vpop.eup %6093 }
 0x3ce   :  { %v7294_v22 = vpop.eup %6095  ;;  %v1580_v37 = vsel %vm568_vm1, %v7292_v16, 0.0 }
 0x3cf   :  { %1581 = vadd.xlane.f32.xlu0 %v1580_v37  ;;  %v1583_v4 = vsel %vm568_vm1, %v7294_v22, 0.0 }
 0x3d0   :  { %1584 = vadd.xlane.f32.xlu1 %v1583_v4 }
 0x3d1   :  { %v7300_v43 = vpop.eup %6097 }
 0x3d2   :  { %v7302_v56 = vpop.eup %6099  ;;  %v1586_v31 = vsel %vm568_vm1, %v7300_v43, 0.0 }
 0x3d3   :  { %1587 = vadd.xlane.f32.xlu0 %v1586_v31  ;;  %v1589_v33 = vsel %vm568_vm1, %v7302_v56, 0.0 }
 0x3d4   :  { %1590 = vadd.xlane.f32.xlu1 %v1589_v33 }
 0x3d5   :  { %v7308_v39 = vpop.eup %6101  ;;  %v1504_v1 = vpop.xlane.xlu0 %1503 }
 0x3d6   :  { %v1532_v51 = vsub.f32 %v7244_v23, %v1504_v1  ;;  %v1501_v53 = vpop.xlane.xlu1 %1500  ;;  %v1592_v61 = vsel %vm568_vm1, %v7308_v39, 0.0 }
 0x3d7   :  { %v1531_v62 = vsub.f32 %v7246_v35, %v1501_v53  ;;  %1593 = vadd.xlane.f32.xlu0 %v1592_v61 }
 0x3d8   :  { %v1557_v54 = vmul.f32 1.442695, %v1532_v51 }
 0x3d9   :  { %v1555_v3 = vmul.f32 1.442695, %v1531_v62  ;;  %v1510_v5 = vpop.xlane.xlu0 %1509 }
 0x3da   :  { %6103 = vpow2.f32 %v1557_v54  ;;  %v1534_v7 = vsub.f32 %v7252_v59, %v1510_v5  ;;  %v1507_v2 = vpop.xlane.xlu1 %1506 }
 0x3db   :  { %6105 = vpow2.f32 %v1555_v3  ;;  %v1533_v21 = vsub.f32 %v7254_v15, %v1507_v2 }
 0x3dc   :  { %v1561_v58 = vmul.f32 1.442695, %v1534_v7 }
 0x3dd   :  { %v1559_v25 = vmul.f32 1.442695, %v1533_v21  ;;  %v1516_v23 = vpop.xlane.xlu0 %1515 }
 0x3de   :  { %6107 = vpow2.f32 %v1561_v58  ;;  %v1536_v37 = vsub.f32 %v7260_v8, %v1516_v23  ;;  %v1513_v4 = vpop.xlane.xlu1 %1512 }
 0x3df   :  { %6109 = vpow2.f32 %v1559_v25  ;;  %v1535_v35 = vsub.f32 %v7262_v27, %v1513_v4 }
 0x3e0   :  { %v1565_v31 = vmul.f32 1.442695, %v1536_v37 }
 0x3e1   :  { %v1563_v33 = vmul.f32 1.442695, %v1535_v35  ;;  %v1522_v1 = vpop.xlane.xlu0 %1521 }
 0x3e2   :  { %6111 = vpow2.f32 %v1565_v31  ;;  %v1538_v59 = vsub.f32 %v7268_v40, %v1522_v1  ;;  %v1519_v25 = vpop.xlane.xlu1 %1518 }
 0x3e3   :  { %6113 = vpow2.f32 %v1563_v33  ;;  %v1537_v23 = vsub.f32 %v7270_v29, %v1519_v25 }
 0x3e4   :  { %v7319_v51 = vpop.eup %6103  ;;  %v1569_v15 = vmul.f32 1.442695, %v1538_v59 }
 0x3e5   :  { %v7321_v53 = vpop.eup %6105  ;;  %v1598_v61 = vsel %vm568_vm1, %v7319_v51, 0.0  ;;  %v1567_v37 = vmul.f32 1.442695, %v1537_v23 }
 0x3e6   :  { %6115 = vpow2.f32 %v1569_v15  ;;  %1599 = vadd.xlane.f32.xlu0 %v1598_v61  ;;  %v1595_v8 = vsel %vm568_vm1, %v7321_v53, 0.0  ;;  %v5911_v35 = vpop.permute.xlu1 %5910 }
 0x3e7   :  { %1596 = vadd.xlane.f32.xlu1 %v1595_v8  ;;  %6117 = vpow2.f32 %v1567_v37 }
 0x3e8   :  { %v7327_v27 = vpop.eup %6107 }
 0x3e9   :  { %v7329_v62 = vpop.eup %6109  ;;  %v1604_v40 = vsel %vm568_vm1, %v7327_v27, 0.0 }
 0x3ea   :  { %1605 = vadd.xlane.f32.xlu0 %v1604_v40  ;;  %v1601_v54 = vsel %vm568_vm1, %v7329_v62, 0.0 }
 0x3eb   :  { %1602 = vadd.xlane.f32.xlu1 %v1601_v54 }
 0x3ec   :  { %v7335_v3 = vpop.eup %6111 }
 0x3ed   :  { %v7337_v5 = vpop.eup %6113  ;;  %v1610_v7 = vsel %vm568_vm1, %v7335_v3, 0.0 }
 0x3ee   :  { %1611 = vadd.xlane.f32.xlu0 %v1610_v7  ;;  %v1607_v2 = vsel %vm568_vm1, %v7337_v5, 0.0 }
 0x3ef   :  { %1608 = vadd.xlane.f32.xlu1 %v1607_v2 }
 0x3f0   :  { %v7343_v21 = vpop.eup %6115 }
 0x3f1   :  { %v1616_v58 = vsel %vm568_vm1, %v7343_v21, 0.0  ;;  %v7366_v4 = vpop.eup %6117 }
 0x3f2   :  { %1617 = vadd.xlane.f32.xlu0 %v1616_v58  ;;  %v1613_v29 = vsel %vm568_vm1, %v7366_v4, 0.0 }
 0x400   :  { %5920 = vrot.lane.b32.xlu1 %v7067_v47, %s6347_s0 }
 0x404   :  { %5925 = vrot.lane.b32.xlu1 %v7083_v57, %s6347_s0 }
 0x408   :  { %5915 = vrot.lane.b32.xlu0 %v7051_v12, %s6347_s0 }
 0x40c   :  { %5930 = vrot.lane.b32.xlu0 %v7101_v9, %s6347_s0 }
 0x410   :  { %1835 = vrot.lane.b32.xlu0 %v7027_v50, %s6348_s2 }
 0x414   :  { %5940 = vrot.lane.b32.xlu0 %v7133_v19, %s6347_s0 }
 0x418   :  { %1839 = vrot.lane.b32.xlu0 %v7045_v0, %s6348_s2 }
 0x41c   :  { %1841 = vrot.lane.b32.xlu0 %v7058_v49, %s6348_s2 }
 0x420   :  { %1845 = vrot.lane.b32.xlu0 %v7074_v52, %s6348_s2 }
 0x424   :  { %2002 = vrot.lane.b32.xlu0 %v7090_v63, %s6348_s2 }
 0x428   :  { %2006 = vrot.lane.b32.xlu0 %v7109_v38, %s6348_s2  ;;  %1614 = vadd.xlane.f32.xlu1 %v1613_v29 }
 0x42c   :  { %2010 = vrot.lane.b32.xlu0 %v7125_v24, %s6348_s2 }
 0x430   :  { %2014 = vrot.lane.b32.xlu0 %v7141_v17, %s6348_s2 }
 0x439   :  { %1833 = vrot.lane.b32.xlu1 %v7024_v6, %s6348_s2 }
 0x43d   :  { %5935 = vrot.lane.b32.xlu1 %v7117_v55, %s6347_s0 }
 0x441   :  { %1837 = vrot.lane.b32.xlu1 %v7042_v42, %s6348_s2 }
 0x445   :  { %5945 = vrot.lane.b32.xlu1 %v7149_v45, %s6347_s0 }
 0x449   :  { %1843 = vrot.lane.b32.xlu1 %v7061_v13, %s6348_s2 }
 0x44d   :  { %1847 = vrot.lane.b32.xlu1 %v7077_v30, %s6348_s2 }
 0x451   :  { %2004 = vrot.lane.b32.xlu1 %v7093_v28, %s6348_s2 }
 0x453   :  { %v1576_v31 = vpop.xlane.xlu0 %1575 }
 0x454   :  { %6119 = vrcp.f32 %v1576_v31  ;;  %v1573_v33 = vpop.xlane.xlu1 %1572 }
 0x455   :  { %6121 = vrcp.f32 %v1573_v33  ;;  %2008 = vrot.lane.b32.xlu1 %v7112_v34, %s6348_s2 }
 0x458   :  { %v1579_v1 = vpop.xlane.xlu1 %1578 }
 0x459   :  { %2012 = vrot.lane.b32.xlu1 %v7128_v44, %s6348_s2  ;;  %6123 = vrcp.f32 %v1579_v1 }
 0x45c   :  { %v1582_v59 = vpop.xlane.xlu0 %1581 }
 0x45d   :  { %6125 = vrcp.f32 %v1582_v59  ;;  %v1585_v15 = vpop.xlane.xlu1 %1584  ;;  %2016 = vrot.lane.b32.xlu1 %v7144_v18, %s6348_s2 }
 0x45e   :  { %v6120_v61 = vpop.eup %6119  ;;  %6127 = vrcp.f32 %v1585_v15 }
 0x45f   :  { %v6122_v8 = vpop.eup %6121  ;;  %v1636_v40 = vmul.f32 %v6120_v61, %v7279_v32 }
 0x460   :  { %v1588_v54 = vpop.xlane.xlu0 %1587  ;;  %v1635_v7 = vmul.f32 %v6122_v8, %v7281_v60 }
 0x461   :  { %6129 = vrcp.f32 %v1588_v54  ;;  %v1591_v2 = vpop.xlane.xlu1 %1590  ;;  %v5912_v54 = vunpack.i.l.bf16 %v5911_v35 }
 0x462   :  { %v1651_v58 = vpack.c.bf16 %v1636_v40, %v1635_v7  ;;  %6131 = vrcp.f32 %v1591_v2 }
 0x463   :  { %v6124_v23 = vpop.eup %6123 }
 0x464   :  { %v1594_v25 = vpop.xlane.xlu0 %1593  ;;  %4953 = vmatprep.mubr.msk.bf16.mxu1 %vm568_vm1, %v1651_v58  ;;  %v1637_v29 = vmul.f32 %v6124_v23, %v7288_v26 }
 0x465   :  { %6133 = vrcp.f32 %v1594_v25 }
 0x467   :  { %v6126_v37 = vpop.eup %6125 }
 0x468   :  { %v1638_v31 = vmul.f32 %v6126_v37, %v7292_v16  ;;  %v6128_v33 = vpop.eup %6127 }
 0x469   :  { %v1639_v60 = vmul.f32 %v6128_v33, %v7294_v22 }
 0x46a   :  { %v1652_v1 = vpack.c.bf16 %v1638_v31, %v1637_v29 }
 0x46b   :  { %v6130_v32 = vpop.eup %6129 }
 0x46c   :  { %4954 = vmatmul.mubr.msk.bf16.vlgmr.msra.gmra.mrb[8].mxu1 %vm568_vm1, %v1652_v1  ;;  %v1640_v59 = vmul.f32 %v6130_v32, %v7300_v43  ;;  %v6132_v15 = vpop.eup %6131  ;;  %v5913_v43 = vunpack.i.h.bf16 %v5911_v35 }
 0x46d   :  { %4962 = vmatpush3.bf16.msra.mxu1 %v7103_v10  ;;  %v1641_v26 = vmul.f32 %v6132_v15, %v7302_v56 }
 0x46e   :  { %4963 = vmatprep.subr.bf16.mxu1 %v7119_v41  ;;  %v1653_v61 = vpack.c.bf16 %v1640_v59, %v1639_v60  ;;  %v5369_v2 = vpack.c.bf16 %v5913_v43, %v5912_v54 }
 0x46f   :  { %v6134_v8 = vpop.eup %6133 }
 0x470   :  { %4957 = vmatprep.mubr.msk.bf16.mxu1 %vm568_vm1, %v1653_v61  ;;  %v1642_v16 = vmul.f32 %v6134_v8, %v7308_v39 }
 0x471   :  { %4964 = vmatpush3.bf16.msra.mxu1 %v7119_v41 }
 0x472   :  { %4965 = vmatprep.subr.bf16.mxu1 %v7135_v20  ;;  %v1654_v22 = vpack.c.bf16 %v1642_v16, %v1641_v26 }
 0x473   :  { %v1600_v40 = vpop.xlane.xlu0 %1599 }
 0x474   :  { %6135 = vrcp.f32 %v1600_v40  ;;  %4958 = vmatmul.mubr.msk.bf16.gmra.mrb[12].mxu1 %vm568_vm1, %v1654_v22  ;;  %v1597_v7 = vpop.xlane.xlu1 %1596 }
 0x475   :  { %4966 = vmatpush3.bf16.msra.mxu1 %v7135_v20  ;;  %6137 = vrcp.f32 %v1597_v7 }
 0x476   :  { %4967 = vmatprep.subr.bf16.mxu1 %v7151_v46 }
 0x477   :  { %v1606_v56 = vpop.xlane.xlu0 %1605 }
 0x478   :  { %6139 = vrcp.f32 %v1606_v56  ;;  %v1603_v39 = vpop.xlane.xlu1 %1602 }
 0x479   :  { %4968 = vmatpush3.bf16.msra.mxu1 %v7151_v46  ;;  %6141 = vrcp.f32 %v1603_v39 }
 0x47a   :  { %5371 = vmatprep.subr.msk.bf16.mxu1 %vm7157_vm4, %v5369_v2 }
 0x47b   :  { %v1612_v35 = vpop.xlane.xlu0 %1611 }
 0x47c   :  { %6143 = vrcp.f32 %v1612_v35  ;;  %v1609_v58 = vpop.xlane.xlu1 %1608 }
 0x47d   :  { %6145 = vrcp.f32 %v1609_v58 }
 0x47e   :  { %v6136_v25 = vpop.eup %6135 }
 0x47f   :  { %v6138_v23 = vpop.eup %6137  ;;  %v1618_v37 = vpop.xlane.xlu0 %1617  ;;  %v1644_v29 = vmul.f32 %v6136_v25, %v7319_v51 }
 0x480   :  { %v1643_v31 = vmul.f32 %v6138_v23, %v7321_v53  ;;  %v5921_v43 = vpop.permute.xlu1 %5920  ;;  %6147 = vrcp.f32 %v1618_v37 }
 0x481   :  { %v5922_v54 = vunpack.i.l.bf16 %v5921_v43 }
 0x482   :  { %v6140_v33 = vpop.eup %6139  ;;  %v1655_v1 = vpack.c.bf16 %v1644_v29, %v1643_v31 }
 0x483   :  { %v6142_v32 = vpop.eup %6141  ;;  %v1646_v60 = vmul.f32 %v6140_v33, %v7327_v27  ;;  %v5916_v59 = vpop.permute.xlu0 %5915 }
 0x484   :  { %v1645_v15 = vmul.f32 %v6142_v32, %v7329_v62  ;;  %v5918_v61 = vunpack.i.h.bf16 %v5916_v59  ;;  %v5917_v8 = vunpack.i.l.bf16 %v5916_v59  ;;  %4969 = vmatprep.mubr.msk.bf16.mxu1 %vm568_vm1, %v1655_v1  ;;  %v5923_v62 = vunpack.i.h.bf16 %v5921_v43  ;;  %v5926_v56 = vpop.permute.xlu1 %5925 }
 0x486   :  { %v6144_v26 = vpop.eup %6143  ;;  %v1656_v16 = vpack.c.bf16 %v1646_v60, %v1645_v15  ;;  %v5375_v22 = vpack.c.bf16 %v5918_v61, %v5917_v8  ;;  %v5381_v7 = vpack.c.bf16 %v5923_v62, %v5922_v54 }
 0x487   :  { %v6146_v40 = vpop.eup %6145  ;;  %v1648_v51 = vmul.f32 %v6144_v26, %v7335_v3  ;;  %v5928_v3 = vunpack.i.h.bf16 %v5926_v56 }
 0x488   :  { %4970 = vmatmul.mubr.msk.bf16.vlgmr.msra.gmra.mrb[16].mxu1 %vm568_vm1, %v1656_v16  ;;  %v1647_v53 = vmul.f32 %v6146_v40, %v7337_v5  ;;  %v5927_v5 = vunpack.i.l.bf16 %v5926_v56 }
 0x489   :  { %5374 = vmatpush3.bf16.xpose.msk.msra.mxu1 %vm7157_vm4, %v5369_v2  ;;  %v5931_v2 = vpop.permute.xlu0 %5930 }
 0x48a   :  { %5377 = vmatprep.subr.msk.bf16.mxu1 %vm7157_vm4, %v5375_v22  ;;  %v1657_v27 = vpack.c.bf16 %v1648_v51, %v1647_v53  ;;  %v5387_v39 = vpack.c.bf16 %v5928_v3, %v5927_v5  ;;  %v5933_v35 = vunpack.i.h.bf16 %v5931_v2  ;;  %v5932_v58 = vunpack.i.l.bf16 %v5931_v2  ;;  %v6148_v33 = vpop.eup %6147 }
 0x48b   :  { %v1650_v15 = vmul.f32 %v6148_v33, %v7343_v21 }
 0x48c   :  { %4973 = vmatprep.mubr.msk.bf16.mxu1 %vm568_vm1, %v1657_v27  ;;  %v5393_v25 = vpack.c.bf16 %v5933_v35, %v5932_v58 }
 0x48d   :  { %v1836_v31 = vpop.permute.xlu0 %1835 }
 0x491   :  { %5380 = vmatpush3.bf16.xpose.msk.msra.mxu1 %vm7157_vm4, %v5375_v22  ;;  %v5941_v60 = vpop.permute.xlu0 %5940 }
 0x492   :  { %5383 = vmatprep.subr.msk.bf16.mxu1 %vm7157_vm4, %v5381_v7  ;;  %v5943_v21 = vunpack.i.h.bf16 %v5941_v60 }
 0x495   :  { %v1840_v26 = vpop.permute.xlu0 %1839 }
 0x499   :  { %5386 = vmatpush3.bf16.xpose.msk.msra.mxu1 %vm7157_vm4, %v5381_v7  ;;  %v1842_v40 = vpop.permute.xlu0 %1841 }
 0x49a   :  { %5389 = vmatprep.subr.msk.bf16.mxu1 %vm7157_vm4, %v5387_v39 }
 0x49d   :  { %v1846_v43 = vpop.permute.xlu0 %1845 }
 0x4a1   :  { %5392 = vmatpush3.bf16.xpose.msk.msra.mxu1 %vm7157_vm4, %v5387_v39  ;;  %v2003_v54 = vpop.permute.xlu0 %2002 }
 0x4a2   :  { %5395 = vmatprep.subr.msk.bf16.mxu1 %vm7157_vm4, %v5393_v25 }
 0x4a5   :  { %v2007_v39 = vpop.permute.xlu0 %2006 }
 0x4a9   :  { %v2011_v35 = vpop.permute.xlu0 %2010 }
 0x4b5   :  { %v1615_v23 = vpop.xlane.xlu1 %1614 }
 0x4b6   :  { %6149 = vrcp.f32 %v1615_v23 }
 0x4b9   :  { %v1834_v29 = vpop.permute.xlu1 %1833 }
 0x4bd   :  { %v5936_v32 = vpop.permute.xlu1 %5935 }
 0x4be   :  { %v5938_v37 = vunpack.i.h.bf16 %v5936_v32  ;;  %v5937_v16 = vunpack.i.l.bf16 %v5936_v32 }
 0x4c0   :  { %v6150_v1 = vpop.eup %6149  ;;  %v5399_v51 = vpack.c.bf16 %v5938_v37, %v5937_v16 }
 0x4c1   :  { %v1649_v59 = vmul.f32 %v6150_v1, %v7366_v4  ;;  %v1838_v8 = vpop.permute.xlu1 %1837  ;;  %v5942_v4 = vunpack.i.l.bf16 %v5941_v60 }
 0x4c3   :  { %v1658_v61 = vpack.c.bf16 %v1650_v15, %v1649_v59  ;;  %v5405_v27 = vpack.c.bf16 %v5943_v21, %v5942_v4 }
 0x4c5   :  { %4974 = vmatmul.mubr.msk.bf16.gmra.mrb[20].mxu1 %vm568_vm1, %v1658_v61  ;;  %v5946_v22 = vpop.permute.xlu1 %5945 }
 0x4c6   :  { %4993 = vmatprep.mubr.msk.f32.mxu1 %vm1176_vm3, %v1834_v29  ;;  %v5948_v7 = vunpack.i.h.bf16 %v5946_v22  ;;  %v5947_v56 = vunpack.i.l.bf16 %v5946_v22 }
 0x4c8   :  { %v5411_v3 = vpack.c.bf16 %v5948_v7, %v5947_v56 }
 0x4c9   :  { %v1844_v53 = vpop.permute.xlu1 %1843 }
 0x4cd   :  { %4994 = vmatmul.mubr.msk.f32.vlgmr.msra.gmra.mrb[24].mxu1 %vm1176_vm3, %v1836_v31  ;;  %v1848_v62 = vpop.permute.xlu1 %1847 }
 0x4ce   :  { %5398 = vmatpush3.bf16.xpose.msk.msra.mxu1 %vm7157_vm4, %v5393_v25  ;;  %4996 = vmatprep.mubr.msk.f32.mxu1 %vm1176_vm3, %v1838_v8  ;;  %v2015_v25 = vpop.permute.xlu0 %2014 }
 0x4cf   :  { %5401 = vmatprep.subr.msk.bf16.mxu1 %vm7157_vm4, %v5399_v51 }
 0x4d1   :  { %4997 = vmatmul.mubr.msk.f32.gmra.mrb[26].mxu1 %vm1176_vm3, %v1840_v26  ;;  %v2005_v5 = vpop.permute.xlu1 %2004 }
 0x4d2   :  { %4999 = vmatprep.mubr.msk.f32.mxu1 %vm1176_vm3, %v1842_v40 }
 0x4d5   :  { %5000 = vmatmul.mubr.msk.f32.gmra.mrb[28].mxu1 %vm1176_vm3, %v1844_v53  ;;  %v2009_v2 = vpop.permute.xlu1 %2008 }
 0x4d6   :  { %5404 = vmatpush3.bf16.xpose.msk.msra.mxu1 %vm7157_vm4, %v5399_v51  ;;  %5002 = vmatprep.mubr.msk.f32.mxu1 %vm1176_vm3, %v1846_v43 }
 0x4d7   :  { %5407 = vmatprep.subr.msk.bf16.mxu1 %vm7157_vm4, %v5405_v27 }
 0x4d9   :  { %5003 = vmatmul.mubr.msk.f32.gmra.mrb[30].mxu1 %vm1176_vm3, %v1848_v62  ;;  %v2013_v58 = vpop.permute.xlu1 %2012 }
 0x4da   :  { %5021 = vmatprep.mubr.msk.f32.mxu1 %vm1176_vm3, %v2003_v54 }
 0x4dd   :  { %v2017_v23 = vpop.permute.xlu1 %2016 }
 0x4de   :  { %5410 = vmatpush3.bf16.xpose.msk.msra.mxu1 %vm7157_vm4, %v5405_v27 }
 0x4df   :  { %5413 = vmatprep.subr.msk.bf16.mxu1 %vm7157_vm4, %v5411_v3 }
 0x4e6   :  { %5416 = vmatpush3.bf16.xpose.msk.msra.mxu1 %vm7157_vm4, %v5411_v3 }
 0x4ed   :  { %5022 = vmatmul.mubr.msk.f32.vlgmr.msra.gmra.mrb[32].mxu1 %vm1176_vm3, %v2005_v5 }
 0x4ee   :  { %5024 = vmatprep.mubr.msk.f32.mxu1 %vm1176_vm3, %v2007_v39 }
 0x4f1   :  { %5025 = vmatmul.mubr.msk.f32.gmra.mrb[34].mxu1 %vm1176_vm3, %v2009_v2 }
 0x4f2   :  { %5027 = vmatprep.mubr.msk.f32.mxu1 %vm1176_vm3, %v2011_v35 }
 0x4f5   :  { %5028 = vmatmul.mubr.msk.f32.gmra.mrb[36].mxu1 %vm1176_vm3, %v2013_v58 }
 0x4f6   :  { %5030 = vmatprep.mubr.msk.f32.mxu1 %vm1176_vm3, %v2015_v25 }
 0x4f9   :  { %5031 = vmatmul.mubr.msk.f32.gmra.mrb[38].mxu1 %vm1176_vm3, %v2017_v23 }
 0x53f   :  { %v4955_v29 = vpop.f32.mrb[8].mxu1 }
 0x540   :  { %v1713_v31 = vpop.f32.mrb[9].mxu1 }
 0x541   :  { %v4956_v33 = vpop.f32.mrb[10].mxu1 }
 0x542   :  { %v7477_v1 = vpack.c.bf16 %v4956_v33, %v4955_v29  ;;  %v1716_v32 = vpop.f32.mrb[11].mxu1 }
 0x543   :  { %v7479_v60 = vpack.c.bf16 %v1716_v32, %v1713_v31 }
 0x544   :  { %8446 = vst [vmem:[#allocation10_spill] sm:$0xff] %v7477_v1 }
 0x545   :  { %8447 = vst [vmem:[#allocation11_spill] sm:$0xff] %v7479_v60 }
 0x547   :  { %v4959_v59 = vpop.f32.mrb[12].mxu1 }
 0x548   :  { %v1729_v15 = vpop.f32.mrb[13].mxu1 }
 0x549   :  { %v4960_v61 = vpop.f32.mrb[14].mxu1 }
 0x54a   :  { %v7481_v8 = vpack.c.bf16 %v4960_v61, %v4959_v59  ;;  %v1732_v26 = vpop.f32.mrb[15].mxu1 }
 0x54b   :  { %v7483_v37 = vpack.c.bf16 %v1732_v26, %v1729_v15 }
 0x54c   :  { %8448 = vst [vmem:[#allocation12_spill] sm:$0xff] %v7481_v8 }
 0x54d   :  { %8449 = vst [vmem:[#allocation13_spill] sm:$0xff] %v7483_v37 }
 0x55b   :  { %v4971_v16 = vpop.f32.mrb[16].mxu1 }
 0x55c   :  { %v1790_v22 = vpop.f32.mrb[17].mxu1 }
 0x55d   :  { %v4972_v40 = vpop.f32.mrb[18].mxu1 }
 0x55e   :  { %v7485_v51 = vpack.c.bf16 %v4972_v40, %v4971_v16  ;;  %v1793_v21 = vpop.f32.mrb[19].mxu1 }
 0x55f   :  { %v7487_v4 = vpack.c.bf16 %v1793_v21, %v1790_v22 }
 0x560   :  { %8450 = vst [vmem:[#allocation14_spill] sm:$0xff] %v7485_v51 }
 0x561   :  { %8451 = vst [vmem:[#allocation15_spill] sm:$0xff] %v7487_v4 }
 0x598   :  { %v4975_v53 = vpop.f32.mrb[20].mxu1 }
 0x599   :  { %v1806_v43 = vpop.f32.mrb[21].mxu1 }
 0x59a   :  { %v4976_v27 = vpop.f32.mrb[22].mxu1 }
 0x59b   :  { %v7489_v62 = vpack.c.bf16 %v4976_v27, %v4975_v53  ;;  %v1809_v54 = vpop.f32.mrb[23].mxu1 }
 0x59c   :  { %v7491_v7 = vpack.c.bf16 %v1809_v54, %v1806_v43 }
 0x59d   :  { %8452 = vst [vmem:[#allocation16_spill] sm:$0xff] %v7489_v62 }
 0x59e   :  { %8453 = vst [vmem:[#allocation17_spill] sm:$0xff] %v7491_v7 }
 0x5a0   :  { %v7493_v56 = vpop.f32.mrb[24].mxu1 }
 0x5a1   :  { %v7495_v3 = vpop.f32.mrb[25].mxu1 }
 0x5a4   :  { %v7497_v5 = vpop.f32.mrb[26].mxu1 }
 0x5a5   :  { %v7499_v39 = vpop.f32.mrb[27].mxu1 }
 0x5a8   :  { %v7501_v2 = vpop.f32.mrb[28].mxu1 }
 0x5a9   :  { %v7503_v35 = vpop.f32.mrb[29].mxu1 }
 0x5ac   :  { %v7505_v58 = vpop.f32.mrb[30].mxu1 }
 0x5ad   :  { %v7507_v25 = vpop.f32.mrb[31].mxu1 }
 0x5ae   :  { %8454 = vst [vmem:[#allocation18_spill] sm:$0xff] %v7507_v25 }
 0x5c0   :  { %v5023_v23 = vpop.f32.mrb[32].mxu1 }
 0x5c1   :  { %v2132_v29 = vpop.f32.mrb[33].mxu1  ;;  %v2198_v31 = vsel %vm568_vm1, %v5023_v23, -inf }
 0x5c2   :  { %2199 = vmax.xlane.f32.xlu1 %v2198_v31  ;;  %v2195_v33 = vsel %vm568_vm1, %v2132_v29, -inf }
 0x5c3   :  { %2196 = vmax.xlane.f32.xlu0 %v2195_v33 }
 0x5c4   :  { %v5026_v32 = vpop.f32.mrb[34].mxu1 }
 0x5c5   :  { %v2142_v59 = vpop.f32.mrb[35].mxu1  ;;  %v2204_v16 = vsel %vm568_vm1, %v5026_v32, -inf }
 0x5c6   :  { %v2201_v15 = vsel %vm568_vm1, %v2142_v59, -inf }
 0x5c7   :  { %2202 = vmax.xlane.f32.xlu0 %v2201_v15 }
 0x5c8   :  { %v5029_v61 = vpop.f32.mrb[36].mxu1 }
 0x5c9   :  { %v2152_v26 = vpop.f32.mrb[37].mxu1  ;;  %v2210_v21 = vsel %vm568_vm1, %v5029_v61, -inf }
 0x5ca   :  { %v2207_v43 = vsel %vm568_vm1, %v2152_v26, -inf }
 0x5cb   :  { %2205 = vmax.xlane.f32.xlu0 %v2204_v16 }
 0x5cc   :  { %v5032_v22 = vpop.f32.mrb[38].mxu1 }
 0x5cd   :  { %v7513_v40 = vpop.f32.mrb[39].mxu1  ;;  %v2216_v53 = vsel %vm568_vm1, %v5032_v22, -inf }
 0x5ce   :  { %v2213_v27 = vsel %vm568_vm1, %v7513_v40, -inf }
 0x5cf   :  { %2211 = vmax.xlane.f32.xlu0 %v2210_v21 }
 0x5d3   :  { %2452 = vrot.lane.b32.xlu1 %v7103_v10, %s6348_s2  ;;  %2217 = vmax.xlane.f32.xlu0 %v2216_v53 }
 0x5e9   :  { %2454 = vrot.lane.b32.xlu0 %v7119_v41, %s6348_s2 }
 0x5f7   :  { %2208 = vmax.xlane.f32.xlu1 %v2207_v43 }
 0x608   :  { %2456 = vrot.lane.b32.xlu1 %v7135_v20, %s6348_s2 }
 0x62c   :  { %2214 = vmax.xlane.f32.xlu1 %v2213_v27 }
 0x63d   :  { %2458 = vrot.lane.b32.xlu1 %v7151_v46, %s6348_s2 }
 0x64f   :  { %v2200_v54 = vpop.xlane.xlu1 %2199 }
 0x650   :  { %v2228_v31 = vsub.f32 %v5023_v23, %v2200_v54  ;;  %v2197_v33 = vpop.xlane.xlu0 %2196 }
 0x651   :  { %v2227_v15 = vsub.f32 %v2132_v29, %v2197_v33 }
 0x652   :  { %v2253_v16 = vmul.f32 1.442695, %v2228_v31 }
 0x653   :  { %v2251_v21 = vmul.f32 1.442695, %v2227_v15  ;;  %v2453_v53 = vpop.permute.xlu1 %2452 }
 0x654   :  { %6151 = vpow2.f32 %v2253_v16  ;;  %5049 = vmatprep.subr.bf16.mxu0 %v2453_v53  ;;  %v2203_v43 = vpop.xlane.xlu0 %2202 }
 0x655   :  { %6153 = vpow2.f32 %v2251_v21  ;;  %v2229_v62 = vsub.f32 %v2142_v59, %v2203_v43  ;;  %5050 = vmatpush3.bf16.msra.mxu0 %v2453_v53 }
 0x657   :  { %v2255_v7 = vmul.f32 1.442695, %v2229_v62 }
 0x658   :  { %v2206_v51 = vpop.xlane.xlu0 %2205 }
 0x659   :  { %6155 = vpow2.f32 %v2255_v7  ;;  %v2230_v27 = vsub.f32 %v5026_v32, %v2206_v51 }
 0x65b   :  { %v2257_v4 = vmul.f32 1.442695, %v2230_v27 }
 0x65c   :  { %v2212_v8 = vpop.xlane.xlu0 %2211 }
 0x65d   :  { %6157 = vpow2.f32 %v2257_v4  ;;  %v2232_v33 = vsub.f32 %v5029_v61, %v2212_v8 }
 0x65e   :  { %v7528_v37 = vpop.eup %6151 }
 0x65f   :  { %v7530_v23 = vpop.eup %6153  ;;  %v2294_v29 = vsel %vm568_vm1, %v7528_v37, 0.0  ;;  %v2261_v43 = vmul.f32 1.442695, %v2232_v33  ;;  %v8455_v33 = vld [vmem:[#allocation5_spill] sm:$0xff] }
 0x660   :  { %2295 = vadd.xlane.f32.xlu0 %v2294_v29  ;;  %v2218_v54 = vpop.xlane.xlu0 %2217  ;;  %v2291_v59 = vsel %vm568_vm1, %v7530_v23, 0.0 }
 0x661   :  { %2292 = vadd.xlane.f32.xlu1 %v2291_v59  ;;  %v2234_v31 = vsub.f32 %v5032_v22, %v2218_v54 }
 0x663   :  { %v7536_v62 = vpop.eup %6155  ;;  %v2265_v21 = vmul.f32 1.442695, %v2234_v31 }
 0x664   :  { %v2455_v7 = vpop.permute.xlu0 %2454  ;;  %v2297_v51 = vsel %vm568_vm1, %v7536_v62, 0.0 }
 0x665   :  { %5051 = vmatprep.subr.bf16.mxu0 %v2455_v7  ;;  %2298 = vadd.xlane.f32.xlu1 %v2297_v51 }
 0x666   :  { %5052 = vmatpush3.bf16.msra.mxu0 %v2455_v7 }
 0x667   :  { %v7540_v4 = vpop.eup %6157 }
 0x668   :  { %v2300_v32 = vsel %vm568_vm1, %v7540_v4, 0.0 }
 0x669   :  { %2301 = vadd.xlane.f32.xlu0 %v2300_v32 }
 0x676   :  { %5950 = vrot.lane.b32.xlu1 %v7035_v11, %s6344_s8 }
 0x684   :  { %v2209_v15 = vpop.xlane.xlu1 %2208 }
 0x685   :  { %v2231_v16 = vsub.f32 %v2152_v26, %v2209_v15 }
 0x687   :  { %v2259_v53 = vmul.f32 1.442695, %v2231_v16 }
 0x688   :  { %v2457_v27 = vpop.permute.xlu1 %2456 }
 0x689   :  { %6159 = vpow2.f32 %v2259_v53  ;;  %5053 = vmatprep.subr.bf16.mxu0 %v2457_v27 }
 0x68a   :  { %5054 = vmatpush3.bf16.msra.mxu0 %v2457_v27  ;;  %6161 = vpow2.f32 %v2265_v21 }
 0x68b   :  { %6163 = vpow2.f32 %v2261_v43 }
 0x693   :  { %v7546_v29 = vpop.eup %6159 }
 0x694   :  { %v2303_v59 = vsel %vm568_vm1, %v7546_v29, 0.0  ;;  %v7550_v7 = vpop.eup %6161 }
 0x695   :  { %2304 = vadd.xlane.f32.xlu0 %v2303_v59  ;;  %v7552_v8 = vpop.eup %6163  ;;  %v2312_v61 = vsel %vm568_vm1, %v7550_v7, 0.0 }
 0x696   :  { %v2306_v26 = vsel %vm568_vm1, %v7552_v8, 0.0 }
 0x699   :  { %2313 = vadd.xlane.f32.xlu0 %v2312_v61 }
 0x69a   :  { %2307 = vadd.xlane.f32.xlu1 %v2306_v26 }
 0x6ab   :  { %5960 = vrot.lane.b32.xlu1 %v7067_v47, %s6344_s8 }
 0x6af   :  { %5965 = vrot.lane.b32.xlu1 %v7083_v57, %s6344_s8 }
 0x6b3   :  { %2721 = vrot.lane.b32.xlu1 %v7024_v6, %s6345_s19 }
 0x6b7   :  { %5975 = vrot.lane.b32.xlu1 %v7117_v55, %s6344_s8 }
 0x6b9   :  { %v2215_v22 = vpop.xlane.xlu1 %2214 }
 0x6ba   :  { %v2233_v54 = vsub.f32 %v7513_v40, %v2215_v22 }
 0x6bb   :  { %5980 = vrot.lane.b32.xlu1 %v7133_v19, %s6344_s8 }
 0x6bc   :  { %v2263_v51 = vmul.f32 1.442695, %v2233_v54 }
 0x6bd   :  { %v2459_v32 = vpop.permute.xlu1 %2458 }
 0x6be   :  { %6165 = vpow2.f32 %v2263_v51  ;;  %5055 = vmatprep.subr.bf16.mxu0 %v2459_v32 }
 0x6bf   :  { %5985 = vrot.lane.b32.xlu1 %v7149_v45, %s6344_s8  ;;  %5056 = vmatpush3.bf16.msra.mxu0 %v2459_v32 }
 0x6c3   :  { %2731 = vrot.lane.b32.xlu1 %v7061_v13, %s6345_s19 }
 0x6c7   :  { %2735 = vrot.lane.b32.xlu1 %v7077_v30, %s6345_s19 }
 0x6c8   :  { %v7575_v31 = vpop.eup %6165 }
 0x6c9   :  { %v2309_v40 = vsel %vm568_vm1, %v7575_v31, 0.0 }
 0x6ca   :  { %2310 = vadd.xlane.f32.xlu0 %v2309_v40 }
 0x6cb   :  { %2892 = vrot.lane.b32.xlu1 %v7093_v28, %s6345_s19 }
 0x6cf   :  { %2896 = vrot.lane.b32.xlu1 %v7112_v34, %s6345_s19 }
 0x6d3   :  { %2900 = vrot.lane.b32.xlu1 %v7128_v44, %s6345_s19 }
 0x6d7   :  { %2904 = vrot.lane.b32.xlu1 %v7144_v18, %s6345_s19 }
 0x6db   :  { %3243 = vrot.lane.b32.xlu1 %v7037_v36, %s6345_s19 }
 0x6df   :  { %3247 = vrot.lane.b32.xlu1 %v7069_v48, %s6345_s19 }
 0x6e0   :  { %5955 = vrot.lane.b32.xlu0 %v7051_v12, %s6344_s8 }
 0x6e3   :  { %3249 = vrot.lane.b32.xlu1 %v8455_v33, %s6345_s19 }
 0x6e4   :  { %5970 = vrot.lane.b32.xlu0 %v7101_v9, %s6344_s8  ;;  %s6350_s8 = smov 80  }
 0x6e8   :  { %2723 = vrot.lane.b32.xlu0 %v7027_v50, %s6345_s19 }
 0x6ec   :  { %2725 = vrot.lane.b32.xlu0 %v7042_v42, %s6345_s19 }
 0x6ed   :  { %v2296_v15 = vpop.xlane.xlu0 %2295 }
 0x6ee   :  { %6167 = vrcp.f32 %v2296_v15  ;;  %v2293_v16 = vpop.xlane.xlu1 %2292 }
 0x6ef   :  { %6169 = vrcp.f32 %v2293_v16 }
 0x6f0   :  { %2727 = vrot.lane.b32.xlu0 %v7045_v0, %s6345_s19 }
 0x6f2   :  { %v2299_v21 = vpop.xlane.xlu1 %2298 }
 0x6f3   :  { %6171 = vrcp.f32 %v2299_v21 }
 0x6f4   :  { %2729 = vrot.lane.b32.xlu0 %v7058_v49, %s6345_s19 }
 0x6f6   :  { %v2302_v53 = vpop.xlane.xlu0 %2301  ;;  %v5951_v43 = vpop.permute.xlu1 %5950 }
 0x6f7   :  { %6173 = vrcp.f32 %v2302_v53  ;;  %v5953_v27 = vunpack.i.h.bf16 %v5951_v43  ;;  %v5952_v59 = vunpack.i.l.bf16 %v5951_v43 }
 0x6f8   :  { %v6168_v61 = vpop.eup %6167  ;;  %2733 = vrot.lane.b32.xlu0 %v7074_v52, %s6345_s19 }
 0x6f9   :  { %v6170_v26 = vpop.eup %6169  ;;  %v5417_v22 = vpack.c.bf16 %v5953_v27, %v5952_v59  ;;  %v2340_v54 = vmul.f32 %v6168_v61, %v7528_v37 }
 0x6fa   :  { %v2339_v51 = vmul.f32 %v6170_v26, %v7530_v23  ;;  %v8456_v23 = vld [vmem:[#allocation3_spill] sm:$0xff] }
 0x6fb   :  { %5419 = vmatprep.subr.msk.bf16.mxu0 %vm7157_vm4, %v5417_v22 }
 0x6fc   :  { %2890 = vrot.lane.b32.xlu0 %v7090_v63, %s6345_s19  ;;  %v2351_v32 = vpack.c.bf16 %v2340_v54, %v2339_v51 }
 0x6fd   :  { %v6172_v40 = vpop.eup %6171 }
 0x6fe   :  { %5057 = vmatprep.mubr.msk.bf16.mxu0 %vm568_vm1, %v2351_v32  ;;  %v2341_v16 = vmul.f32 %v6172_v40, %v7536_v62 }
 0x700   :  { %2894 = vrot.lane.b32.xlu0 %v7109_v38, %s6345_s19 }
 0x701   :  { %v6174_v15 = vpop.eup %6173 }
 0x702   :  { %v2342_v37 = vmul.f32 %v6174_v15, %v7540_v4 }
 0x704   :  { %v2352_v21 = vpack.c.bf16 %v2342_v37, %v2341_v16  ;;  %2898 = vrot.lane.b32.xlu0 %v7125_v24, %s6345_s19 }
 0x706   :  { %5058 = vmatmul.mubr.msk.bf16.vlgmr.msra.gmra.mrb[40].mxu0 %vm568_vm1, %v2352_v21 }
 0x707   :  { %5422 = vmatpush3.bf16.xpose.msk.msra.mxu0 %vm7157_vm4, %v5417_v22 }
 0x708   :  { %2902 = vrot.lane.b32.xlu0 %v7141_v17, %s6345_s19 }
 0x70c   :  { %3245 = vrot.lane.b32.xlu0 %v8456_v23, %s6345_s19 }
 0x722   :  { %v2305_v53 = vpop.xlane.xlu0 %2304 }
 0x723   :  { %6175 = vrcp.f32 %v2305_v53 }
 0x726   :  { %v2314_v54 = vpop.xlane.xlu0 %2313 }
 0x727   :  { %v2308_v62 = vpop.xlane.xlu1 %2307 }
 0x728   :  { %6177 = vrcp.f32 %v2308_v62 }
 0x729   :  { %6179 = vrcp.f32 %v2314_v54 }
 0x72b   :  { %v5961_v26 = vpop.permute.xlu1 %5960 }
 0x72c   :  { %v5963_v16 = vunpack.i.h.bf16 %v5961_v26  ;;  %v5962_v37 = vunpack.i.l.bf16 %v5961_v26 }
 0x72d   :  { %v6176_v4 = vpop.eup %6175 }
 0x72e   :  { %v2343_v27 = vmul.f32 %v6176_v4, %v7546_v29 }
 0x72f   :  { %v5966_v22 = vpop.permute.xlu1 %5965 }
 0x730   :  { %v5968_v54 = vunpack.i.h.bf16 %v5966_v22 }
 0x732   :  { %v6178_v43 = vpop.eup %6177 }
 0x733   :  { %v2344_v59 = vmul.f32 %v6178_v43, %v7552_v8  ;;  %v2722_v51 = vpop.permute.xlu1 %2721  ;;  %v6180_v4 = vpop.eup %6179  ;;  %v5429_v8 = vpack.c.bf16 %v5963_v16, %v5962_v37 }
 0x734   :  { %v2346_v26 = vmul.f32 %v6180_v4, %v7550_v7 }
 0x735   :  { %v2353_v61 = vpack.c.bf16 %v2344_v59, %v2343_v27 }
 0x737   :  { %5061 = vmatprep.mubr.msk.bf16.mxu0 %vm568_vm1, %v2353_v61  ;;  %v5976_v40 = vpop.permute.xlu1 %5975 }
 0x73b   :  { %v5981_v43 = vpop.permute.xlu1 %5980 }
 0x73f   :  { %v5986_v16 = vpop.permute.xlu1 %5985 }
 0x757   :  { %v2311_v32 = vpop.xlane.xlu0 %2310 }
 0x758   :  { %6181 = vrcp.f32 %v2311_v32  ;;  %v5967_v32 = vunpack.i.l.bf16 %v5966_v22 }
 0x75a   :  { %v5435_v37 = vpack.c.bf16 %v5968_v54, %v5967_v32  ;;  %v5983_v54 = vunpack.i.h.bf16 %v5981_v43  ;;  %v5982_v32 = vunpack.i.l.bf16 %v5981_v43 }
 0x75b   :  { %v5956_v15 = vpop.permute.xlu0 %5955 }
 0x75c   :  { %v5958_v21 = vunpack.i.h.bf16 %v5956_v15  ;;  %v5957_v53 = vunpack.i.l.bf16 %v5956_v15 }
 0x75e   :  { %v5423_v62 = vpack.c.bf16 %v5958_v21, %v5957_v53 }
 0x75f   :  { %v5971_v29 = vpop.permute.xlu0 %5970 }
 0x760   :  { %5425 = vmatprep.subr.msk.bf16.mxu0 %vm7157_vm4, %v5423_v62  ;;  %v5973_v53 = vunpack.i.h.bf16 %v5971_v29 }
 0x761   :  { %5428 = vmatpush3.bf16.xpose.msk.msra.mxu0 %vm7157_vm4, %v5423_v62  ;;  %v2732_v62 = vpop.permute.xlu1 %2731 }
 0x762   :  { %v6182_v27 = vpop.eup %6181  ;;  %5431 = vmatprep.subr.msk.bf16.mxu0 %vm7157_vm4, %v5429_v8 }
 0x763   :  { %v2724_v59 = vpop.permute.xlu0 %2723  ;;  %v2345_v61 = vmul.f32 %v6182_v27, %v7575_v31  ;;  %v5972_v31 = vunpack.i.l.bf16 %v5971_v29  ;;  %v5977_v27 = vunpack.i.l.bf16 %v5976_v40 }
 0x765   :  { %v2354_v15 = vpack.c.bf16 %v2346_v26, %v2345_v61  ;;  %v5441_v4 = vpack.c.bf16 %v5973_v53, %v5972_v31  ;;  %v2736_v22 = vpop.permute.xlu1 %2735 }
 0x767   :  { %5062 = vmatmul.mubr.msk.bf16.gmra.mrb[44].mxu0 %vm568_vm1, %v2354_v15  ;;  %v2726_v21 = vpop.permute.xlu0 %2725  ;;  %v5453_v15 = vpack.c.bf16 %v5983_v54, %v5982_v32 }
 0x768   :  { %5121 = vmatprep.mubr.msk.f32.mxu0 %vm1176_vm3, %v2722_v51  ;;  %v5978_v51 = vunpack.i.h.bf16 %v5976_v40 }
 0x769   :  { %5434 = vmatpush3.bf16.xpose.msk.msra.mxu0 %vm7157_vm4, %v5429_v8  ;;  %v2893_v8 = vpop.permute.xlu1 %2892 }
 0x76a   :  { %5437 = vmatprep.subr.msk.bf16.mxu0 %vm7157_vm4, %v5435_v37  ;;  %v5447_v26 = vpack.c.bf16 %v5978_v51, %v5977_v27 }
 0x76b   :  { %v2728_v7 = vpop.permute.xlu0 %2727 }
 0x76d   :  { %v2897_v40 = vpop.permute.xlu1 %2896 }
 0x76f   :  { %v2730_v61 = vpop.permute.xlu0 %2729 }
 0x771   :  { %5440 = vmatpush3.bf16.xpose.msk.msra.mxu0 %vm7157_vm4, %v5435_v37  ;;  %v5988_v37 = vunpack.i.h.bf16 %v5986_v16  ;;  %v2901_v43 = vpop.permute.xlu1 %2900 }
 0x772   :  { %5443 = vmatprep.subr.msk.bf16.mxu0 %vm7157_vm4, %v5441_v4 }
 0x773   :  { %v2734_v29 = vpop.permute.xlu0 %2733 }
 0x778   :  { %5122 = vmatmul.mubr.msk.f32.vlgmr.msra.gmra.mrb[48].mxu0 %vm1176_vm3, %v2724_v59  ;;  %v2891_v59 = vpop.permute.xlu0 %2890 }
 0x779   :  { %5124 = vmatprep.mubr.msk.f32.mxu0 %vm1176_vm3, %v2726_v21  ;;  %5446 = vmatpush3.bf16.xpose.msk.msra.mxu0 %vm7157_vm4, %v5441_v4  ;;  %v5987_v21 = vunpack.i.l.bf16 %v5986_v16 }
 0x77a   :  { %5449 = vmatprep.subr.msk.bf16.mxu0 %vm7157_vm4, %v5447_v26 }
 0x77b   :  { %v5459_v31 = vpack.c.bf16 %v5988_v37, %v5987_v21 }
 0x77c   :  { %5125 = vmatmul.mubr.msk.f32.gmra.mrb[50].mxu0 %vm1176_vm3, %v2728_v7  ;;  %v2895_v53 = vpop.permute.xlu0 %2894 }
 0x77d   :  { %5127 = vmatprep.mubr.msk.f32.mxu0 %vm1176_vm3, %v2730_v61 }
 0x780   :  { %5128 = vmatmul.mubr.msk.f32.gmra.mrb[52].mxu0 %vm1176_vm3, %v2732_v62  ;;  %v2905_v62 = vpop.permute.xlu1 %2904  ;;  %v2899_v7 = vpop.permute.xlu0 %2898 }
 0x781   :  { %5130 = vmatprep.mubr.msk.f32.mxu0 %vm1176_vm3, %v2734_v29  ;;  %5452 = vmatpush3.bf16.xpose.msk.msra.mxu0 %vm7157_vm4, %v5447_v26 }
 0x782   :  { %5455 = vmatprep.subr.msk.bf16.mxu0 %vm7157_vm4, %v5453_v15 }
 0x784   :  { %5131 = vmatmul.mubr.msk.f32.gmra.mrb[54].mxu0 %vm1176_vm3, %v2736_v22  ;;  %v3244_v4 = vpop.permute.xlu1 %3243  ;;  %v2903_v16 = vpop.permute.xlu0 %2902 }
 0x785   :  { %5149 = vmatprep.mubr.msk.f32.mxu0 %vm1176_vm3, %v2891_v59 }
 0x788   :  { %v3246_v22 = vpop.permute.xlu0 %3245  ;;  %v3248_v51 = vpop.permute.xlu1 %3247 }
 0x789   :  { %5458 = vmatpush3.bf16.xpose.msk.msra.mxu0 %vm7157_vm4, %v5453_v15 }
 0x78a   :  { %5461 = vmatprep.subr.msk.bf16.mxu0 %vm7157_vm4, %v5459_v31 }
 0x78c   :  { %v3250_v27 = vpop.permute.xlu1 %3249 }
 0x791   :  { %5464 = vmatpush3.bf16.xpose.msk.msra.mxu0 %vm7157_vm4, %v5459_v31 }
 0x792   :  { %5161 = vmatprep.subr.bf16.mxu0 %v3244_v4 }
 0x798   :  { %5150 = vmatmul.mubr.msk.f32.vlgmr.msra.gmra.mrb[56].mxu0 %vm1176_vm3, %v2893_v8 }
 0x799   :  { %5152 = vmatprep.mubr.msk.f32.mxu0 %vm1176_vm3, %v2895_v53  ;;  %5162 = vmatpush3.bf16.msra.mxu0 %v3244_v4 }
 0x79a   :  { %5163 = vmatprep.subr.bf16.mxu0 %v3246_v22 }
 0x79c   :  { %5153 = vmatmul.mubr.msk.f32.gmra.mrb[58].mxu0 %vm1176_vm3, %v2897_v40 }
 0x79d   :  { %5155 = vmatprep.mubr.msk.f32.mxu0 %vm1176_vm3, %v2899_v7  ;;  %5164 = vmatpush3.bf16.msra.mxu0 %v3246_v22 }
 0x79e   :  { %5165 = vmatprep.subr.bf16.mxu0 %v3248_v51 }
 0x7a0   :  { %5156 = vmatmul.mubr.msk.f32.gmra.mrb[60].mxu0 %vm1176_vm3, %v2901_v43 }
 0x7a1   :  { %5158 = vmatprep.mubr.msk.f32.mxu0 %vm1176_vm3, %v2903_v16  ;;  %5166 = vmatpush3.bf16.msra.mxu0 %v3248_v51 }
 0x7a2   :  { %5167 = vmatprep.subr.bf16.mxu0 %v3250_v27 }
 0x7a4   :  { %5159 = vmatmul.mubr.msk.f32.gmra.mrb[62].mxu0 %vm1176_vm3, %v2905_v62 }
 0x7a5   :  { %5168 = vmatpush3.bf16.msra.mxu0 %v3250_v27 }
 0x7d9   :  { %v5059_v61 = vpop.f32.mrb[40].mxu0 }
 0x7da   :  { %v2510_v26 = vpop.f32.mrb[41].mxu0 }
 0x7db   :  { %v5060_v8 = vpop.f32.mrb[42].mxu0 }
 0x7dc   :  { %v7677_v29 = vpack.c.bf16 %v5060_v8, %v5059_v61  ;;  %v2513_v54 = vpop.f32.mrb[43].mxu0 }
 0x7dd   :  { %v7679_v32 = vpack.c.bf16 %v2513_v54, %v2510_v26 }
 0x7de   :  { %8457 = vst [vmem:[#allocation19_spill] sm:$0xff] %v7677_v29 }
 0x7df   :  { %8458 = vst [vmem:[#allocation20_spill] sm:$0xff] %v7679_v32 }
 0x83a   :  { %v5063_v40 = vpop.f32.mrb[44].mxu0 }
 0x83b   :  { %v2526_v15 = vpop.f32.mrb[45].mxu0 }
 0x83c   :  { %v5064_v59 = vpop.f32.mrb[46].mxu0 }
 0x83d   :  { %v7681_v37 = vpack.c.bf16 %v5064_v59, %v5063_v40  ;;  %v2529_v21 = vpop.f32.mrb[47].mxu0 }
 0x83e   :  { %v7683_v43 = vpack.c.bf16 %v2529_v21, %v2526_v15 }
 0x83f   :  { %8459 = vst [vmem:[#allocation21_spill] sm:$0xff] %v7681_v37 }
 0x840   :  { %8460 = vst [vmem:[#allocation22_spill] sm:$0xff] %v7683_v43 }
 0x84b   :  { %v5123_v53 = vpop.f32.mrb[48].mxu0 }
 0x84c   :  { %v2851_v31 = vpop.f32.mrb[49].mxu0  ;;  %v3062_v62 = vsel %vm568_vm1, %v5123_v53, -inf }
 0x84d   :  { %3063 = vmax.xlane.f32.xlu1 %v3062_v62  ;;  %v3059_v7 = vsel %vm568_vm1, %v2851_v31, -inf }
 0x84e   :  { %3060 = vmax.xlane.f32.xlu0 %v3059_v7 }
 0x84f   :  { %v5126_v4 = vpop.f32.mrb[50].mxu0 }
 0x850   :  { %v7687_v16 = vpop.f32.mrb[51].mxu0  ;;  %v3068_v22 = vsel %vm568_vm1, %v5126_v4, -inf }
 0x851   :  { %v3065_v61 = vsel %vm568_vm1, %v7687_v16, -inf }
 0x852   :  { %3069 = vmax.xlane.f32.xlu0 %v3068_v22 }
 0x853   :  { %v7690_v51 = vpop.f32.mrb[52].mxu0 }
 0x854   :  { %v2871_v27 = vpop.f32.mrb[53].mxu0  ;;  %v3074_v40 = vsel %vm568_vm1, %v7690_v51, -inf }
 0x855   :  { %v3071_v26 = vsel %vm568_vm1, %v2871_v27, -inf }
 0x856   :  { %3066 = vmax.xlane.f32.xlu0 %v3065_v61  ;;  %3072 = vmax.xlane.f32.xlu1 %v3071_v26 }
 0x857   :  { %v7695_v8 = vpop.f32.mrb[54].mxu0 }
 0x858   :  { %v7697_v54 = vpop.f32.mrb[55].mxu0  ;;  %v3080_v59 = vsel %vm568_vm1, %v7695_v8, -inf }
 0x859   :  { %v3077_v15 = vsel %vm568_vm1, %v7697_v54, -inf }
 0x85a   :  { %3075 = vmax.xlane.f32.xlu0 %v3074_v40  ;;  %3078 = vmax.xlane.f32.xlu1 %v3077_v15 }
 0x85e   :  { %3081 = vmax.xlane.f32.xlu0 %v3080_v59 }
 0x86b   :  { %v7705_v21 = vpop.f32.mrb[56].mxu0 }
 0x86c   :  { %v7707_v62 = vpop.f32.mrb[57].mxu0  ;;  %v3086_v7 = vsel %vm568_vm1, %v7705_v21, -inf }
 0x86d   :  { %3087 = vmax.xlane.f32.xlu0 %v3086_v7  ;;  %v3083_v22 = vsel %vm568_vm1, %v7707_v62, -inf }
 0x86e   :  { %3084 = vmax.xlane.f32.xlu1 %v3083_v22 }
 0x86f   :  { %v7713_v61 = vpop.f32.mrb[58].mxu0 }
 0x870   :  { %v7715_v26 = vpop.f32.mrb[59].mxu0  ;;  %v3092_v40 = vsel %vm568_vm1, %v7713_v61, -inf }
 0x871   :  { %3093 = vmax.xlane.f32.xlu0 %v3092_v40  ;;  %v3089_v15 = vsel %vm568_vm1, %v7715_v26, -inf }
 0x872   :  { %3090 = vmax.xlane.f32.xlu1 %v3089_v15 }
 0x873   :  { %v7721_v59 = vpop.f32.mrb[60].mxu0 }
 0x874   :  { %v7723_v1 = vpop.f32.mrb[61].mxu0  ;;  %v3098_v7 = vsel %vm568_vm1, %v7721_v59, -inf }
 0x875   :  { %3099 = vmax.xlane.f32.xlu0 %v3098_v7  ;;  %v3095_v22 = vsel %vm568_vm1, %v7723_v1, -inf }
 0x876   :  { %3096 = vmax.xlane.f32.xlu1 %v3095_v22 }
 0x877   :  { %v7729_v60 = vpop.f32.mrb[62].mxu0 }
 0x878   :  { %v7731_v37 = vpop.f32.mrb[63].mxu0  ;;  %v3104_v40 = vsel %vm568_vm1, %v7729_v60, -inf }
 0x879   :  { %3105 = vmax.xlane.f32.xlu0 %v3104_v40  ;;  %v3101_v15 = vsel %vm568_vm1, %v7731_v37, -inf }
 0x887   :  { %3334 = vrot.lane.b32.xlu1 %v7119_v41, %s6345_s19 }
 0x88b   :  { %3336 = vrot.lane.b32.xlu1 %v7135_v20, %s6345_s19 }
 0x88f   :  { %3338 = vrot.lane.b32.xlu1 %v7151_v46, %s6345_s19  ;;  %3332 = vrot.lane.b32.xlu0 %v7103_v10, %s6345_s19 }
 0x8b3   :  { %3102 = vmax.xlane.f32.xlu1 %v3101_v15 }
 0x8c4   :  { %5990 = vrot.lane.b32.xlu1 %v7035_v11, %s6349_s7 }
 0x8da   :  { %v3064_v7 = vpop.xlane.xlu1 %3063 }
 0x8db   :  { %v3108_v22 = vsub.f32 %v5123_v53, %v3064_v7  ;;  %v3061_v40 = vpop.xlane.xlu0 %3060 }
 0x8dc   :  { %v3107_v43 = vsub.f32 %v2851_v31, %v3061_v40 }
 0x8dd   :  { %v3125_v29 = vmul.f32 1.442695, %v3108_v22 }
 0x8de   :  { %v3123_v32 = vmul.f32 1.442695, %v3107_v43 }
 0x8df   :  { %6183 = vpow2.f32 %v3125_v29  ;;  %v3070_v20 = vpop.xlane.xlu0 %3069 }
 0x8e0   :  { %6185 = vpow2.f32 %v3123_v32  ;;  %v3110_v46 = vsub.f32 %v5126_v4, %v3070_v20 }
 0x8e2   :  { %v3129_v41 = vmul.f32 1.442695, %v3110_v46 }
 0x8e3   :  { %v3067_v10 = vpop.xlane.xlu0 %3066  ;;  %v3073_v48 = vpop.xlane.xlu1 %3072 }
 0x8e4   :  { %6187 = vpow2.f32 %v3129_v41  ;;  %v3109_v15 = vsub.f32 %v7687_v16, %v3067_v10  ;;  %v3111_v33 = vsub.f32 %v2871_v27, %v3073_v48 }
 0x8e6   :  { %v3127_v23 = vmul.f32 1.442695, %v3109_v15  ;;  %v3131_v36 = vmul.f32 1.442695, %v3111_v33 }
 0x8e7   :  { %v3076_v11 = vpop.xlane.xlu0 %3075  ;;  %v3079_v25 = vpop.xlane.xlu1 %3078 }
 0x8e8   :  { %6189 = vpow2.f32 %v3127_v23  ;;  %v3112_v53 = vsub.f32 %v7690_v51, %v3076_v11  ;;  %v3113_v46 = vsub.f32 %v7697_v54, %v3079_v25 }
 0x8e9   :  { %v7749_v31 = vpop.eup %6183  ;;  %6191 = vpow2.f32 %v3131_v36 }
 0x8ea   :  { %v7751_v29 = vpop.eup %6185  ;;  %v3133_v20 = vmul.f32 1.442695, %v3112_v53  ;;  %v3158_v41 = vsel %vm568_vm1, %v7749_v31, 0.0  ;;  %v3135_v32 = vmul.f32 1.442695, %v3113_v46 }
 0x8eb   :  { %v3082_v10 = vpop.xlane.xlu0 %3081  ;;  %3159 = vadd.xlane.f32.xlu0 %v3158_v41  ;;  %v3155_v48 = vsel %vm568_vm1, %v7751_v29, 0.0 }
 0x8ec   :  { %6193 = vpow2.f32 %v3133_v20  ;;  %v3114_v33 = vsub.f32 %v7695_v8, %v3082_v10  ;;  %3156 = vadd.xlane.f32.xlu1 %v3155_v48 }
 0x8ee   :  { %v7759_v23 = vpop.eup %6187  ;;  %v3137_v43 = vmul.f32 1.442695, %v3114_v33 }
 0x8ef   :  { %v3164_v36 = vsel %vm568_vm1, %v7759_v23, 0.0 }
 0x8f0   :  { %6195 = vpow2.f32 %v3137_v43  ;;  %3165 = vadd.xlane.f32.xlu0 %v3164_v36 }
 0x8f1   :  { %6197 = vpow2.f32 %v3135_v32 }
 0x8f2   :  { %v7763_v25 = vpop.eup %6189 }
 0x8f3   :  { %v3161_v4 = vsel %vm568_vm1, %v7763_v25, 0.0  ;;  %v7767_v16 = vpop.eup %6191 }
 0x8f4   :  { %3162 = vadd.xlane.f32.xlu1 %v3161_v4  ;;  %v3167_v8 = vsel %vm568_vm1, %v7767_v16, 0.0 }
 0x8f6   :  { %v7769_v51 = vpop.eup %6193 }
 0x8f7   :  { %v3170_v27 = vsel %vm568_vm1, %v7769_v51, 0.0 }
 0x8f8   :  { %3171 = vadd.xlane.f32.xlu0 %v3170_v27  ;;  %3168 = vadd.xlane.f32.xlu1 %v3167_v8 }
 0x8fa   :  { %v7775_v54 = vpop.eup %6195  ;;  %v3088_v7 = vpop.xlane.xlu0 %3087 }
 0x8fb   :  { %v3116_v22 = vsub.f32 %v7705_v21, %v3088_v7  ;;  %v3085_v40 = vpop.xlane.xlu1 %3084  ;;  %v3176_v15 = vsel %vm568_vm1, %v7775_v54, 0.0  ;;  %v7780_v11 = vpop.eup %6197 }
 0x8fc   :  { %v3115_v53 = vsub.f32 %v7707_v62, %v3085_v40  ;;  %3177 = vadd.xlane.f32.xlu0 %v3176_v15  ;;  %v3173_v33 = vsel %vm568_vm1, %v7780_v11, 0.0 }
 0x8fd   :  { %v3141_v20 = vmul.f32 1.442695, %v3116_v22 }
 0x8fe   :  { %v3139_v46 = vmul.f32 1.442695, %v3115_v53  ;;  %v3094_v41 = vpop.xlane.xlu0 %3093 }
 0x8ff   :  { %6199 = vpow2.f32 %v3141_v20  ;;  %v3118_v10 = vsub.f32 %v7713_v61, %v3094_v41  ;;  %v3091_v48 = vpop.xlane.xlu1 %3090 }
 0x900   :  { %6201 = vpow2.f32 %v3139_v46  ;;  %v3117_v21 = vsub.f32 %v7715_v26, %v3091_v48  ;;  %3174 = vadd.xlane.f32.xlu0 %v3173_v33 }
 0x901   :  { %v3145_v32 = vmul.f32 1.442695, %v3118_v10 }
 0x902   :  { %v3143_v43 = vmul.f32 1.442695, %v3117_v21  ;;  %v3100_v36 = vpop.xlane.xlu0 %3099 }
 0x903   :  { %6203 = vpow2.f32 %v3145_v32  ;;  %v3120_v62 = vsub.f32 %v7721_v59, %v3100_v36  ;;  %v3097_v4 = vpop.xlane.xlu1 %3096 }
 0x904   :  { %v3119_v27 = vsub.f32 %v7723_v1, %v3097_v4  ;;  %6205 = vpow2.f32 %v3143_v43 }
 0x905   :  { %v3149_v8 = vmul.f32 1.442695, %v3120_v62 }
 0x906   :  { %v3147_v61 = vmul.f32 1.442695, %v3119_v27  ;;  %v3106_v7 = vpop.xlane.xlu0 %3105 }
 0x907   :  { %v3122_v22 = vsub.f32 %v7729_v60, %v3106_v7  ;;  %v7825_v36 = vpop.permute.xlu1 %3334 }
 0x908   :  { %6207 = vpow2.f32 %v3147_v61 }
 0x909   :  { %v7790_v40 = vpop.eup %6199  ;;  %6209 = vpow2.f32 %v3149_v8  ;;  %v3153_v26 = vmul.f32 1.442695, %v3122_v22 }
 0x90a   :  { %v7792_v15 = vpop.eup %6201  ;;  %v7794_v53 = vpop.permute.xlu0 %3332  ;;  %v3182_v59 = vsel %vm568_vm1, %v7790_v40, 0.0 }
 0x90b   :  { %3183 = vadd.xlane.f32.xlu0 %v3182_v59  ;;  %5177 = vmatprep.subr.bf16.mxu0 %v7794_v53  ;;  %v3179_v1 = vsel %vm568_vm1, %v7792_v15, 0.0  ;;  %6211 = vpow2.f32 %v3153_v26  ;;  %v7831_v62 = vpop.permute.xlu1 %3336 }
 0x90c   :  { %3180 = vadd.xlane.f32.xlu1 %v3179_v1 }
 0x90d   :  { %v7801_v60 = vpop.eup %6203 }
 0x90e   :  { %v3188_v20 = vsel %vm568_vm1, %v7801_v60, 0.0  ;;  %v7805_v46 = vpop.eup %6205 }
 0x90f   :  { %3189 = vadd.xlane.f32.xlu0 %v3188_v20  ;;  %v3185_v10 = vsel %vm568_vm1, %v7805_v46, 0.0  ;;  %v7835_v4 = vpop.permute.xlu1 %3338 }
 0x912   :  { %v7807_v41 = vpop.eup %6207 }
 0x913   :  { %v7811_v48 = vpop.eup %6209  ;;  %3186 = vadd.xlane.f32.xlu0 %v3185_v10  ;;  %v3191_v33 = vsel %vm568_vm1, %v7807_v41, 0.0 }
 0x914   :  { %3192 = vadd.xlane.f32.xlu1 %v3191_v33  ;;  %v3194_v21 = vsel %vm568_vm1, %v7811_v48, 0.0 }
 0x915   :  { %v7817_v32 = vpop.eup %6211 }
 0x916   :  { %v3200_v43 = vsel %vm568_vm1, %v7817_v32, 0.0 }
 0x917   :  { %3195 = vadd.xlane.f32.xlu0 %v3194_v21 }
 0x91b   :  { %3201 = vadd.xlane.f32.xlu0 %v3200_v43 }
 0x925   :  { %6000 = vrot.lane.b32.xlu1 %v7067_v47, %s6349_s7 }
 0x929   :  { %6005 = vrot.lane.b32.xlu1 %v7083_v57, %s6349_s7 }
 0x931   :  { %5995 = vrot.lane.b32.xlu0 %v7051_v12, %s6349_s7 }
 0x935   :  { %6010 = vrot.lane.b32.xlu0 %v7101_v9, %s6349_s7 }
 0x939   :  { %3518 = vrot.lane.b32.xlu0 %v7027_v50, %s6350_s8 }
 0x93d   :  { %3522 = vrot.lane.b32.xlu0 %v7045_v0, %s6350_s8 }
 0x940   :  { %v3103_v47 = vpop.xlane.xlu1 %3102 }
 0x941   :  { %v3121_v57 = vsub.f32 %v7731_v37, %v3103_v47  ;;  %6020 = vrot.lane.b32.xlu0 %v7133_v19, %s6349_s7 }
 0x943   :  { %v3151_v12 = vmul.f32 1.442695, %v3121_v57 }
 0x945   :  { %6213 = vpow2.f32 %v3151_v12  ;;  %3526 = vrot.lane.b32.xlu0 %v7061_v13, %s6350_s8  ;;  %v7868_v13 = vpop.permute.xlu1 %5990 }
 0x949   :  { %3530 = vrot.lane.b32.xlu0 %v7077_v30, %s6350_s8 }
 0x94d   :  { %3685 = vrot.lane.b32.xlu0 %v7090_v63, %s6350_s8  ;;  %v2180_v63 = vsel %vm568_vm1, %v7497_v5, -inf }
 0x94f   :  { %v7848_v50 = vpop.eup %6213 }
 0x950   :  { %v3197_v0 = vsel %vm568_vm1, %v7848_v50, 0.0 }
 0x951   :  { %3689 = vrot.lane.b32.xlu0 %v7109_v38, %s6350_s8  ;;  %3198 = vadd.xlane.f32.xlu1 %v3197_v0 }
 0x955   :  { %3693 = vrot.lane.b32.xlu0 %v7125_v24, %s6350_s8 }
 0x959   :  { %3697 = vrot.lane.b32.xlu0 %v7141_v17, %s6350_s8 }
 0x962   :  { %3516 = vrot.lane.b32.xlu1 %v7024_v6, %s6350_s8  ;;  %v2171_v6 = vsel %vm568_vm1, %v7495_v3, -inf }
 0x966   :  { %3520 = vrot.lane.b32.xlu1 %v7042_v42, %s6350_s8 }
 0x96a   :  { %6015 = vrot.lane.b32.xlu1 %v7117_v55, %s6349_s7 }
 0x96e   :  { %3524 = vrot.lane.b32.xlu1 %v7058_v49, %s6350_s8  ;;  %v2177_v49 = vsel %vm568_vm1, %v7499_v39, -inf }
 0x972   :  { %3528 = vrot.lane.b32.xlu1 %v7074_v52, %s6350_s8 }
 0x976   :  { %6025 = vrot.lane.b32.xlu1 %v7149_v45, %s6349_s7 }
 0x978   :  { %2172 = vmax.xlane.f32.xlu0 %v2171_v6  ;;  %v3160_v30 = vpop.xlane.xlu0 %3159 }
 0x979   :  { %6215 = vrcp.f32 %v3160_v30  ;;  %v3157_v42 = vpop.xlane.xlu1 %3156 }
 0x97a   :  { %6217 = vrcp.f32 %v3157_v42  ;;  %3687 = vrot.lane.b32.xlu1 %v7093_v28, %s6350_s8  ;;  %v2186_v28 = vsel %vm568_vm1, %v7501_v2, -inf }
 0x97c   :  { %2178 = vmax.xlane.f32.xlu0 %v2177_v49 }
 0x97d   :  { %v3166_v52 = vpop.xlane.xlu0 %3165 }
 0x97e   :  { %3691 = vrot.lane.b32.xlu1 %v7112_v34, %s6350_s8  ;;  %6219 = vrcp.f32 %v3166_v52 }
 0x980   :  { %2181 = vmax.xlane.f32.xlu0 %v2180_v63 }
 0x981   :  { %v3163_v9 = vpop.xlane.xlu1 %3162 }
 0x982   :  { %6221 = vrcp.f32 %v3163_v9  ;;  %3695 = vrot.lane.b32.xlu1 %v7128_v44, %s6350_s8  ;;  %v2192_v44 = vsel %vm568_vm1, %v7505_v58, -inf }
 0x983   :  { %v6216_v38 = vpop.eup %6215 }
 0x984   :  { %v6218_v55 = vpop.eup %6217  ;;  %2187 = vmax.xlane.f32.xlu0 %v2186_v28  ;;  %v3220_v24 = vmul.f32 %v6216_v38, %v7749_v31 }
 0x985   :  { %v3172_v19 = vpop.xlane.xlu0 %3171  ;;  %v3169_v34 = vpop.xlane.xlu1 %3168  ;;  %v3219_v17 = vmul.f32 %v6218_v55, %v7751_v29 }
 0x986   :  { %6223 = vrcp.f32 %v3172_v19  ;;  %3699 = vrot.lane.b32.xlu1 %v7144_v18, %s6350_s8 }
 0x987   :  { %6225 = vrcp.f32 %v3169_v34  ;;  %v3235_v45 = vpack.c.bf16 %v3220_v24, %v3219_v17 }
 0x988   :  { %2193 = vmax.xlane.f32.xlu0 %v2192_v44  ;;  %v6220_v27 = vpop.eup %6219 }
 0x989   :  { %v3178_v37 = vpop.xlane.xlu0 %3177  ;;  %5169 = vmatprep.mubr.msk.bf16.mxu0 %vm568_vm1, %v3235_v45  ;;  %v3222_v31 = vmul.f32 %v6220_v27, %v7759_v23 }
 0x98a   :  { %6227 = vrcp.f32 %v3178_v37 }
 0x98c   :  { %v6222_v8 = vpop.eup %6221 }
 0x98d   :  { %v3221_v29 = vmul.f32 %v6222_v8, %v7763_v25  ;;  %v3175_v61 = vpop.xlane.xlu0 %3174  ;;  %v5993_v25 = vunpack.i.h.bf16 %v7868_v13 }
 0x98e   :  { %6229 = vrcp.f32 %v3175_v61 }
 0x98f   :  { %v3236_v7 = vpack.c.bf16 %v3222_v31, %v3221_v29 }
 0x990   :  { %v6224_v18 = vpop.eup %6223 }
 0x991   :  { %v6226_v22 = vpop.eup %6225  ;;  %5170 = vmatmul.mubr.msk.bf16.vlgmr.msra.gmra.mrb[64].mxu0 %vm568_vm1, %v3236_v7  ;;  %v3224_v26 = vmul.f32 %v6224_v18, %v7769_v51  ;;  %v5992_v51 = vunpack.i.l.bf16 %v7868_v13 }
 0x992   :  { %5178 = vmatpush3.bf16.msra.mxu0 %v7794_v53  ;;  %v3223_v59 = vmul.f32 %v6226_v22, %v7767_v16 }
 0x993   :  { %5179 = vmatprep.subr.bf16.mxu0 %v7825_v36 }
 0x994   :  { %v3237_v1 = vpack.c.bf16 %v3224_v26, %v3223_v59  ;;  %v6228_v20 = vpop.eup %6227 }
 0x995   :  { %v3226_v33 = vmul.f32 %v6228_v20, %v7775_v54 }
 0x996   :  { %5173 = vmatprep.mubr.msk.bf16.mxu0 %vm568_vm1, %v3237_v1  ;;  %5180 = vmatpush3.bf16.msra.mxu0 %v7825_v36  ;;  %v5465_v36 = vpack.c.bf16 %v5993_v25, %v5992_v51 }
 0x997   :  { %5181 = vmatprep.subr.bf16.mxu0 %v7831_v62 }
 0x998   :  { %v6230_v23 = vpop.eup %6229  ;;  %v3184_v10 = vpop.xlane.xlu0 %3183 }
 0x999   :  { %6231 = vrcp.f32 %v3184_v10  ;;  %v3181_v53 = vpop.xlane.xlu1 %3180  ;;  %v3225_v16 = vmul.f32 %v6230_v23, %v7780_v11 }
 0x99a   :  { %5182 = vmatpush3.bf16.msra.mxu0 %v7831_v62  ;;  %6233 = vrcp.f32 %v3181_v53 }
 0x99b   :  { %5183 = vmatprep.subr.bf16.mxu0 %v7835_v4  ;;  %v3238_v21 = vpack.c.bf16 %v3226_v33, %v3225_v16 }
 0x99c   :  { %v3190_v43 = vpop.xlane.xlu0 %3189 }
 0x99d   :  { %5174 = vmatmul.mubr.msk.bf16.gmra.mrb[68].mxu0 %vm568_vm1, %v3238_v21  ;;  %6235 = vrcp.f32 %v3190_v43 }
 0x99e   :  { %5184 = vmatpush3.bf16.msra.mxu0 %v7835_v4  ;;  %v2174_v4 = vsel %vm568_vm1, %v7493_v56, -inf }
 0x99f   :  { %5467 = vmatprep.subr.msk.bf16.mxu0 %vm7157_vm4, %v5465_v36 }
 0x9a0   :  { %v3187_v47 = vpop.xlane.xlu0 %3186 }
 0x9a1   :  { %6237 = vrcp.f32 %v3187_v47  ;;  %v3193_v11 = vpop.xlane.xlu1 %3192 }
 0x9a2   :  { %6239 = vrcp.f32 %v3193_v11 }
 0x9a3   :  { %v6232_v54 = vpop.eup %6231 }
 0x9a4   :  { %v6234_v62 = vpop.eup %6233  ;;  %v3196_v57 = vpop.xlane.xlu0 %3195  ;;  %v3228_v12 = vmul.f32 %v6232_v54, %v7790_v40 }
 0x9a5   :  { %6241 = vrcp.f32 %v3196_v57  ;;  %v3227_v0 = vmul.f32 %v6234_v62, %v7792_v15  ;;  %v2183_v15 = vsel %vm568_vm1, %v7503_v35, -inf }
 0x9a7   :  { %v3239_v13 = vpack.c.bf16 %v3228_v12, %v3227_v0  ;;  %v6236_v30 = vpop.eup %6235 }
 0x9a8   :  { %v3202_v6 = vpop.xlane.xlu0 %3201  ;;  %v3230_v49 = vmul.f32 %v6236_v30, %v7801_v60  ;;  %v6001_v60 = vpop.permute.xlu1 %6000 }
 0x9a9   :  { %5185 = vmatprep.mubr.msk.bf16.mxu0 %vm568_vm1, %v3239_v13  ;;  %v6003_v45 = vunpack.i.h.bf16 %v6001_v60  ;;  %v6002_v37 = vunpack.i.l.bf16 %v6001_v60  ;;  %6243 = vrcp.f32 %v3202_v6  ;;  %v8462_v60 = vld [vmem:[#allocation2_spill] sm:$0xff] }
 0x9aa   :  { %2175 = vmax.xlane.f32.xlu1 %v2174_v4 }
 0x9ab   :  { %v6238_v42 = vpop.eup %6237  ;;  %v5477_v27 = vpack.c.bf16 %v6003_v45, %v6002_v37  ;;  %v8464_v45 = vld [vmem:[#allocation5_spill] sm:$0xff] }
 0x9ac   :  { %v3229_v52 = vmul.f32 %v6238_v42, %v7805_v46  ;;  %v5996_v63 = vpop.permute.xlu0 %5995  ;;  %v6240_v9 = vpop.eup %6239  ;;  %v8461_v46 = vld [vmem:[#allocation18_spill] sm:$0xff] }
 0x9ad   :  { %v5998_v40 = vunpack.i.h.bf16 %v5996_v63  ;;  %v5997_v38 = vunpack.i.l.bf16 %v5996_v63  ;;  %v3231_v19 = vmul.f32 %v6240_v9, %v7807_v41  ;;  %v2189_v17 = vsel %vm568_vm1, %v8461_v46, -inf  ;;  %v6006_v41 = vpop.permute.xlu1 %6005 }
 0x9ae   :  { %v3240_v28 = vpack.c.bf16 %v3230_v49, %v3229_v52  ;;  %2184 = vmax.xlane.f32.xlu1 %v2183_v15  ;;  %v6007_v8 = vunpack.i.l.bf16 %v6006_v41 }
 0x9af   :  { %v6242_v55 = vpop.eup %6241  ;;  %v5471_v24 = vpack.c.bf16 %v5998_v40, %v5997_v38 }
 0x9b0   :  { %5186 = vmatmul.mubr.msk.bf16.vlgmr.msra.gmra.mrb[72].mxu0 %vm568_vm1, %v3240_v28  ;;  %v3232_v34 = vmul.f32 %v6242_v55, %v7811_v48  ;;  %v6008_v48 = vunpack.i.h.bf16 %v6006_v41  ;;  %v6011_v29 = vpop.permute.xlu0 %6010 }
 0x9b1   :  { %5470 = vmatpush3.bf16.xpose.msk.msra.mxu0 %vm7157_vm4, %v5465_v36  ;;  %v6013_v61 = vunpack.i.h.bf16 %v6011_v29  ;;  %v6012_v7 = vunpack.i.l.bf16 %v6011_v29 }
 0x9b2   :  { %5473 = vmatprep.subr.msk.bf16.mxu0 %vm7157_vm4, %v5471_v24  ;;  %2190 = vmax.xlane.f32.xlu1 %v2189_v17  ;;  %v3241_v44 = vpack.c.bf16 %v3232_v34, %v3231_v19  ;;  %v5483_v31 = vpack.c.bf16 %v6008_v48, %v6007_v8  ;;  %v8463_v17 = vld [vmem:[#allocation3_spill] sm:$0xff] }
 0x9b3   :  { %v5489_v18 = vpack.c.bf16 %v6013_v61, %v6012_v7  ;;  %v6244_v25 = vpop.eup %6243 }
 0x9b4   :  { %5189 = vmatprep.mubr.msk.bf16.mxu0 %vm568_vm1, %v3241_v44  ;;  %v3519_v22 = vpop.permute.xlu0 %3518  ;;  %v3234_v33 = vmul.f32 %v6244_v25, %v7817_v32 }
 0x9b8   :  { %v3523_v26 = vpop.permute.xlu0 %3522 }
 0x9b9   :  { %5476 = vmatpush3.bf16.xpose.msk.msra.mxu0 %vm7157_vm4, %v5471_v24 }
 0x9ba   :  { %5479 = vmatprep.subr.msk.bf16.mxu0 %vm7157_vm4, %v5477_v27 }
 0x9bc   :  { %v6021_v59 = vpop.permute.xlu0 %6020 }
 0x9bd   :  { %v6022_v12 = vunpack.i.l.bf16 %v6021_v59 }
 0x9c0   :  { %v3527_v23 = vpop.permute.xlu0 %3526 }
 0x9c1   :  { %5482 = vmatpush3.bf16.xpose.msk.msra.mxu0 %vm7157_vm4, %v5477_v27 }
 0x9c2   :  { %5485 = vmatprep.subr.msk.bf16.mxu0 %vm7157_vm4, %v5483_v31 }
 0x9c4   :  { %v3531_v53 = vpop.permute.xlu0 %3530 }
 0x9c8   :  { %v3686_v36 = vpop.permute.xlu0 %3685 }
 0x9c9   :  { %5488 = vmatpush3.bf16.xpose.msk.msra.mxu0 %vm7157_vm4, %v5483_v31 }
 0x9ca   :  { %5491 = vmatprep.subr.msk.bf16.mxu0 %vm7157_vm4, %v5489_v18 }
 0x9cc   :  { %v3690_v62 = vpop.permute.xlu0 %3689 }
 0x9d0   :  { %v3694_v0 = vpop.permute.xlu0 %3693 }
 0x9d4   :  { %v3698_v30 = vpop.permute.xlu0 %3697 }
 0x9de   :  { %v3199_v1 = vpop.xlane.xlu1 %3198 }
 0x9df   :  { %6245 = vrcp.f32 %v3199_v1 }
 0x9e2   :  { %v3517_v20 = vpop.permute.xlu1 %3516 }
 0x9e6   :  { %v3521_v10 = vpop.permute.xlu1 %3520 }
 0x9e9   :  { %v6246_v51 = vpop.eup %6245 }
 0x9ea   :  { %v3233_v16 = vmul.f32 %v6246_v51, %v7848_v50  ;;  %v6016_v43 = vpop.permute.xlu1 %6015  ;;  %v6023_v50 = vunpack.i.h.bf16 %v6021_v59 }
 0x9eb   :  { %v6018_v47 = vunpack.i.h.bf16 %v6016_v43  ;;  %v6017_v11 = vunpack.i.l.bf16 %v6016_v43 }
 0x9ec   :  { %v3242_v21 = vpack.c.bf16 %v3234_v33, %v3233_v16  ;;  %v5501_v13 = vpack.c.bf16 %v6023_v50, %v6022_v12  ;;  %v8465_v12 = vld [vmem:[#allocation4_spill] sm:$0xff] }
 0x9ed   :  { %v5495_v57 = vpack.c.bf16 %v6018_v47, %v6017_v11 }
 0x9ee   :  { %5190 = vmatmul.mubr.msk.bf16.gmra.mrb[76].mxu0 %vm568_vm1, %v3242_v21  ;;  %v3525_v54 = vpop.permute.xlu1 %3524 }
 0x9ef   :  { %5229 = vmatprep.mubr.msk.f32.mxu0 %vm1176_vm3, %v3517_v20 }
 0x9f2   :  { %v3529_v32 = vpop.permute.xlu1 %3528 }
 0x9f6   :  { %5230 = vmatmul.mubr.msk.f32.vlgmr.msra.gmra.mrb[80].mxu0 %vm1176_vm3, %v3519_v22  ;;  %v6026_v6 = vpop.permute.xlu1 %6025 }
 0x9f7   :  { %5494 = vmatpush3.bf16.xpose.msk.msra.mxu0 %vm7157_vm4, %v5489_v18  ;;  %5232 = vmatprep.mubr.msk.f32.mxu0 %vm1176_vm3, %v3521_v10  ;;  %v6028_v4 = vunpack.i.h.bf16 %v6026_v6  ;;  %v6027_v42 = vunpack.i.l.bf16 %v6026_v6 }
 0x9f8   :  { %5497 = vmatprep.subr.msk.bf16.mxu0 %vm7157_vm4, %v5495_v57 }
 0x9f9   :  { %v5507_v52 = vpack.c.bf16 %v6028_v4, %v6027_v42 }
 0x9fa   :  { %5233 = vmatmul.mubr.msk.f32.gmra.mrb[82].mxu0 %vm1176_vm3, %v3523_v26  ;;  %v3688_v28 = vpop.permute.xlu1 %3687 }
 0x9fb   :  { %5235 = vmatprep.mubr.msk.f32.mxu0 %vm1176_vm3, %v3525_v54 }
 0x9fe   :  { %5236 = vmatmul.mubr.msk.f32.gmra.mrb[84].mxu0 %vm1176_vm3, %v3527_v23 }
 0x9ff   :  { %5500 = vmatpush3.bf16.xpose.msk.msra.mxu0 %vm7157_vm4, %v5495_v57  ;;  %5238 = vmatprep.mubr.msk.f32.mxu0 %vm1176_vm3, %v3529_v32 }
 0xa00   :  { %5503 = vmatprep.subr.msk.bf16.mxu0 %vm7157_vm4, %v5501_v13 }
 0xa02   :  { %5239 = vmatmul.mubr.msk.f32.gmra.mrb[86].mxu0 %vm1176_vm3, %v3531_v53 }
 0xa03   :  { %5257 = vmatprep.mubr.msk.f32.mxu0 %vm1176_vm3, %v3686_v36 }
 0xa05   :  { %v2173_v49 = vpop.xlane.xlu0 %2172 }
 0xa06   :  { %v2219_v63 = vsub.f32 %v7495_v3, %v2173_v49  ;;  %v3692_v3 = vpop.permute.xlu1 %3691 }
 0xa07   :  { %5506 = vmatpush3.bf16.xpose.msk.msra.mxu0 %vm7157_vm4, %v5501_v13 }
 0xa08   :  { %v2235_v9 = vmul.f32 1.442695, %v2219_v63  ;;  %5509 = vmatprep.subr.msk.bf16.mxu0 %vm7157_vm4, %v5507_v52 }
 0xa09   :  { %v2179_v40 = vpop.xlane.xlu0 %2178 }
 0xa0a   :  { %6247 = vpow2.f32 %v2235_v9  ;;  %v2221_v38 = vsub.f32 %v7499_v39, %v2179_v40  ;;  %v3696_v14 = vpop.permute.xlu1 %3695 }
 0xa0c   :  { %v2239_v15 = vmul.f32 1.442695, %v2221_v38 }
 0xa0d   :  { %v2182_v44 = vpop.xlane.xlu0 %2181 }
 0xa0e   :  { %6249 = vpow2.f32 %v2239_v15  ;;  %v3700_v34 = vpop.permute.xlu1 %3699  ;;  %v2222_v37 = vsub.f32 %v7497_v5, %v2182_v44 }
 0xa0f   :  { %5512 = vmatpush3.bf16.xpose.msk.msra.mxu0 %vm7157_vm4, %v5507_v52 }
 0xa10   :  { %v2241_v48 = vmul.f32 1.442695, %v2222_v37 }
 0xa11   :  { %v2188_v31 = vpop.xlane.xlu0 %2187 }
 0xa12   :  { %v2224_v7 = vsub.f32 %v7501_v2, %v2188_v31 }
 0xa14   :  { %v7972_v55 = vpop.eup %6247  ;;  %v2245_v22 = vmul.f32 1.442695, %v2224_v7 }
 0xa15   :  { %v2267_v24 = vsel %vm568_vm1, %v7972_v55, 0.0 }
 0xa16   :  { %5258 = vmatmul.mubr.msk.f32.vlgmr.msra.gmra.mrb[88].mxu0 %vm1176_vm3, %v3688_v28  ;;  %2268 = vadd.xlane.f32.xlu1 %v2267_v24 }
 0xa17   :  { %5260 = vmatprep.mubr.msk.f32.mxu0 %vm1176_vm3, %v3690_v62 }
 0xa18   :  { %v7978_v19 = vpop.eup %6249 }
 0xa19   :  { %v2273_v39 = vsel %vm568_vm1, %v7978_v19, 0.0 }
 0xa1a   :  { %5261 = vmatmul.mubr.msk.f32.gmra.mrb[90].mxu0 %vm1176_vm3, %v3692_v3  ;;  %2274 = vadd.xlane.f32.xlu1 %v2273_v39 }
 0xa1b   :  { %5263 = vmatprep.mubr.msk.f32.mxu0 %vm1176_vm3, %v3694_v0 }
 0xa1e   :  { %5264 = vmatmul.mubr.msk.f32.gmra.mrb[92].mxu0 %vm1176_vm3, %v3696_v14 }
 0xa1f   :  { %5266 = vmatprep.mubr.msk.f32.mxu0 %vm1176_vm3, %v3698_v30 }
 0xa22   :  { %5267 = vmatmul.mubr.msk.f32.gmra.mrb[94].mxu0 %vm1176_vm3, %v3700_v34 }
 0xa2b   :  { %2359 = vrot.lane.b32.xlu1 %v8462_v60, %s6348_s2 }
 0xa2f   :  { %2361 = vrot.lane.b32.xlu1 %v8463_v17, %s6348_s2 }
 0xa33   :  { %2365 = vrot.lane.b32.xlu1 %v8464_v45, %s6348_s2 }
 0xa37   :  { %4038 = vrot.lane.b32.xlu1 %v8462_v60, %s6350_s8  ;;  %v2176_v27 = vpop.xlane.xlu1 %2175 }
 0xa38   :  { %v2220_v41 = vsub.f32 %v7493_v56, %v2176_v27  ;;  %v2194_v56 = vpop.xlane.xlu0 %2193 }
 0xa39   :  { %v2226_v1 = vsub.f32 %v7505_v58, %v2194_v56 }
 0xa3a   :  { %v2237_v8 = vmul.f32 1.442695, %v2220_v41 }
 0xa3b   :  { %4040 = vrot.lane.b32.xlu1 %v8463_v17, %s6350_s8  ;;  %v2185_v29 = vpop.xlane.xlu1 %2184  ;;  %v2249_v2 = vmul.f32 1.442695, %v2226_v1 }
 0xa3c   :  { %6251 = vpow2.f32 %v2237_v8  ;;  %v2223_v61 = vsub.f32 %v7503_v35, %v2185_v29 }
 0xa3d   :  { %6253 = vpow2.f32 %v2241_v48 }
 0xa3e   :  { %v2243_v5 = vmul.f32 1.442695, %v2223_v61 }
 0xa3f   :  { %v2191_v18 = vpop.xlane.xlu1 %2190 }
 0xa40   :  { %6255 = vpow2.f32 %v2243_v5  ;;  %v2225_v26 = vsub.f32 %v8461_v46, %v2191_v18 }
 0xa41   :  { %6257 = vpow2.f32 %v2245_v22 }
 0xa42   :  { %v2247_v20 = vmul.f32 1.442695, %v2225_v26 }
 0xa44   :  { %6259 = vpow2.f32 %v2247_v20 }
 0xa45   :  { %6261 = vpow2.f32 %v2249_v2 }
 0xa46   :  { %v8002_v59 = vpop.eup %6251 }
 0xa47   :  { %v2270_v23 = vsel %vm568_vm1, %v8002_v59, 0.0  ;;  %v8007_v35 = vpop.eup %6253 }
 0xa48   :  { %2271 = vadd.xlane.f32.xlu0 %v2270_v23  ;;  %v2276_v25 = vsel %vm568_vm1, %v8007_v35, 0.0 }
 0xa4a   :  { %v8011_v10 = vpop.eup %6255 }
 0xa4b   :  { %v2279_v46 = vsel %vm568_vm1, %v8011_v10, 0.0  ;;  %v8015_v58 = vpop.eup %6257 }
 0xa4c   :  { %2277 = vadd.xlane.f32.xlu0 %v2276_v25  ;;  %v2282_v51 = vsel %vm568_vm1, %v8015_v58, 0.0 }
 0xa4e   :  { %v8019_v53 = vpop.eup %6259 }
 0xa4f   :  { %v2285_v16 = vsel %vm568_vm1, %v8019_v53, 0.0  ;;  %v8023_v33 = vpop.eup %6261 }
 0xa50   :  { %2280 = vadd.xlane.f32.xlu0 %v2279_v46  ;;  %v2288_v21 = vsel %vm568_vm1, %v8023_v33, 0.0 }
 0xa54   :  { %2283 = vadd.xlane.f32.xlu0 %v2282_v51 }
 0xa58   :  { %2286 = vadd.xlane.f32.xlu0 %v2285_v16 }
 0xa5c   :  { %2289 = vadd.xlane.f32.xlu0 %v2288_v21 }
 0xa64   :  { %v5171_v43 = vpop.f32.mrb[64].mxu0 }
 0xa65   :  { %v3301_v36 = vpop.f32.mrb[65].mxu0 }
 0xa66   :  { %v5172_v47 = vpop.f32.mrb[66].mxu0 }
 0xa67   :  { %v8027_v11 = vpack.c.bf16 %v5172_v47, %v5171_v43  ;;  %v3304_v54 = vpop.f32.mrb[67].mxu0 }
 0xa68   :  { %v8029_v62 = vpack.c.bf16 %v3304_v54, %v3301_v36 }
 0xa70   :  { %v5175_v57 = vpop.f32.mrb[68].mxu0 }
 0xa71   :  { %v3317_v32 = vpop.f32.mrb[69].mxu0 }
 0xa72   :  { %v5176_v50 = vpop.f32.mrb[70].mxu0  ;;  %2363 = vrot.lane.b32.xlu0 %v8465_v12, %s6348_s2 }
 0xa73   :  { %v8033_v0 = vpack.c.bf16 %v5176_v50, %v5175_v57  ;;  %v3320_v13 = vpop.f32.mrb[71].mxu0 }
 0xa74   :  { %v8035_v6 = vpack.c.bf16 %v3320_v13, %v3317_v32 }
 0xa83   :  { %v5187_v30 = vpop.f32.mrb[72].mxu0 }
 0xa84   :  { %v3390_v4 = vpop.f32.mrb[73].mxu0 }
 0xa85   :  { %v5188_v42 = vpop.f32.mrb[74].mxu0 }
 0xa86   :  { %v8037_v49 = vpack.c.bf16 %v5188_v42, %v5187_v30  ;;  %v3393_v52 = vpop.f32.mrb[75].mxu0 }
 0xa87   :  { %v8039_v63 = vpack.c.bf16 %v3393_v52, %v3390_v4 }
 0xaa3   :  { %v2269_v9 = vpop.xlane.xlu1 %2268 }
 0xaa4   :  { %6263 = vrcp.f32 %v2269_v9 }
 0xaa7   :  { %v2275_v40 = vpop.xlane.xlu1 %2274 }
 0xaab   :  { %v2360_v38 = vpop.permute.xlu1 %2359 }
 0xaac   :  { %5033 = vmatprep.subr.bf16.mxu1 %v2360_v38 }
 0xaad   :  { %5034 = vmatpush3.bf16.msra.mxu1 %v2360_v38 }
 0xaae   :  { %v6264_v46 = vpop.eup %6263 }
 0xaaf   :  { %v2362_v15 = vpop.permute.xlu1 %2361  ;;  %v2331_v21 = vmul.f32 %v6264_v46, %v7972_v55 }
 0xab0   :  { %5035 = vmatprep.subr.bf16.mxu1 %v2362_v15 }
 0xab1   :  { %5036 = vmatpush3.bf16.msra.mxu1 %v2362_v15 }
 0xab3   :  { %v8041_v28 = vpop.permute.xlu1 %2365 }
 0xab7   :  { %v4039_v3 = vpop.permute.xlu1 %4038 }
 0xab8   :  { %5269 = vmatprep.subr.bf16.mxu0 %v4039_v3 }
 0xab9   :  { %5270 = vmatpush3.bf16.msra.mxu0 %v4039_v3 }
 0xabb   :  { %v4041_v24 = vpop.permute.xlu1 %4040 }
 0xabc   :  { %5271 = vmatprep.subr.bf16.mxu0 %v4041_v24 }
 0xabd   :  { %5272 = vmatpush3.bf16.msra.mxu0 %v4041_v24 }
 0xac1   :  { %v5191_v39 = vpop.f32.mrb[76].mxu0 }
 0xac2   :  { %v3406_v14 = vpop.f32.mrb[77].mxu0 }
 0xac3   :  { %v5192_v34 = vpop.f32.mrb[78].mxu0 }
 0xac4   :  { %v8043_v60 = vpack.c.bf16 %v5192_v34, %v5191_v39  ;;  %v3409_v17 = vpop.f32.mrb[79].mxu0 }
 0xac5   :  { %v8045_v44 = vpack.c.bf16 %v3409_v17, %v3406_v14 }
 0xac9   :  { %v8047_v37 = vpop.f32.mrb[80].mxu0 }
 0xaca   :  { %v8049_v27 = vpop.f32.mrb[81].mxu0  ;;  %v3857_v41 = vsel %vm568_vm1, %v8047_v37, -inf }
 0xacb   :  { %3858 = vmax.xlane.f32.xlu0 %v3857_v41  ;;  %v3854_v48 = vsel %vm568_vm1, %v8049_v27, -inf }
 0xacc   :  { %3855 = vmax.xlane.f32.xlu1 %v3854_v48 }
 0xacd   :  { %v8055_v8 = vpop.f32.mrb[82].mxu0 }
 0xace   :  { %v8057_v31 = vpop.f32.mrb[83].mxu0  ;;  %v3863_v29 = vsel %vm568_vm1, %v8055_v8, -inf }
 0xacf   :  { %v3860_v18 = vsel %vm568_vm1, %v8057_v31, -inf }
 0xad0   :  { %3864 = vmax.xlane.f32.xlu1 %v3863_v29 }
 0xad1   :  { %v8061_v61 = vpop.f32.mrb[84].mxu0 }
 0xad2   :  { %v8063_v7 = vpop.f32.mrb[85].mxu0  ;;  %v3869_v5 = vsel %vm568_vm1, %v8061_v61, -inf }
 0xad3   :  { %3870 = vmax.xlane.f32.xlu0 %v3869_v5  ;;  %v3866_v20 = vsel %vm568_vm1, %v8063_v7, -inf }
 0xad4   :  { %3861 = vmax.xlane.f32.xlu1 %v3860_v18 }
 0xad5   :  { %v2272_v22 = vpop.xlane.xlu0 %2271  ;;  %v8069_v26 = vpop.f32.mrb[86].mxu0 }
 0xad6   :  { %6265 = vrcp.f32 %v2272_v22  ;;  %v8071_v56 = vpop.f32.mrb[87].mxu0  ;;  %v3875_v1 = vsel %vm568_vm1, %v8069_v26, -inf }
 0xad7   :  { %3876 = vmax.xlane.f32.xlu0 %v3875_v1  ;;  %v3872_v2 = vsel %vm568_vm1, %v8071_v56, -inf  ;;  %v8466_v1 = vld [vmem:[#allocation6_spill] sm:$0xff] }
 0xad8   :  { %3867 = vmax.xlane.f32.xlu1 %v3866_v20 }
 0xad9   :  { %v2278_v23 = vpop.xlane.xlu0 %2277 }
 0xada   :  { %6267 = vrcp.f32 %v2278_v23 }
 0xadc   :  { %3873 = vmax.xlane.f32.xlu1 %v3872_v2 }
 0xadd   :  { %v2281_v25 = vpop.xlane.xlu0 %2280 }
 0xae0   :  { %v6266_v51 = vpop.eup %6265 }
 0xae1   :  { %v2284_v16 = vpop.xlane.xlu0 %2283  ;;  %v2332_v43 = vmul.f32 %v6266_v51, %v8002_v59 }
 0xae2   :  { %6269 = vrcp.f32 %v2284_v16 }
 0xae3   :  { %v2347_v36 = vpack.c.bf16 %v2332_v43, %v2331_v21  ;;  %6271 = vrcp.f32 %v2275_v40 }
 0xae4   :  { %6273 = vrcp.f32 %v2281_v25  ;;  %v6268_v59 = vpop.eup %6267 }
 0xae5   :  { %v2287_v47 = vpop.xlane.xlu0 %2286  ;;  %5041 = vmatprep.mubr.msk.bf16.mxu1 %vm568_vm1, %v2347_v36  ;;  %v2334_v15 = vmul.f32 %v6268_v59, %v8007_v35 }
 0xae9   :  { %v8082_v54 = vpop.f32.mrb[88].mxu0  ;;  %v2290_v57 = vpop.xlane.xlu0 %2289 }
 0xaea   :  { %v8084_v32 = vpop.f32.mrb[89].mxu0  ;;  %v3881_v50 = vsel %vm568_vm1, %v8082_v54, -inf  ;;  %6275 = vrcp.f32 %v2290_v57 }
 0xaeb   :  { %3882 = vmax.xlane.f32.xlu0 %v3881_v50  ;;  %v3878_v55 = vsel %vm568_vm1, %v8084_v32, -inf  ;;  %6277 = vrcp.f32 %v2287_v47 }
 0xaec   :  { %3879 = vmax.xlane.f32.xlu1 %v3878_v55  ;;  %v6270_v4 = vpop.eup %6269 }
 0xaed   :  { %v8090_v13 = vpop.f32.mrb[90].mxu0  ;;  %v2364_v30 = vpop.permute.xlu0 %2363  ;;  %v2336_v24 = vmul.f32 %v6270_v4, %v8015_v58 }
 0xaee   :  { %v8092_v42 = vpop.f32.mrb[91].mxu0  ;;  %5037 = vmatprep.subr.bf16.mxu1 %v2364_v30  ;;  %v3887_v52 = vsel %vm568_vm1, %v8090_v13, -inf  ;;  %v6272_v9 = vpop.eup %6271 }
 0xaef   :  { %3888 = vmax.xlane.f32.xlu0 %v3887_v52  ;;  %5038 = vmatpush3.bf16.msra.mxu1 %v2364_v30  ;;  %v3884_v40 = vsel %vm568_vm1, %v8092_v42, -inf  ;;  %v6274_v38 = vpop.eup %6273  ;;  %v2333_v39 = vmul.f32 %v6272_v9, %v7978_v19 }
 0xaf0   :  { %3885 = vmax.xlane.f32.xlu1 %v3884_v40  ;;  %5039 = vmatprep.subr.bf16.mxu1 %v8041_v28  ;;  %v2335_v17 = vmul.f32 %v6274_v38, %v8011_v10 }
 0xaf1   :  { %v8100_v3 = vpop.f32.mrb[92].mxu0  ;;  %v2348_v41 = vpack.c.bf16 %v2334_v15, %v2333_v39 }
 0xaf2   :  { %v8104_v14 = vpop.f32.mrb[93].mxu0  ;;  %v3893_v34 = vsel %vm568_vm1, %v8100_v3, -inf  ;;  %v2349_v58 = vpack.c.bf16 %v2336_v24, %v2335_v17 }
 0xaf3   :  { %3894 = vmax.xlane.f32.xlu0 %v3893_v34  ;;  %5040 = vmatpush3.bf16.msra.mxu1 %v8041_v28  ;;  %v3890_v35 = vsel %vm568_vm1, %v8104_v14, -inf }
 0xaf4   :  { %3891 = vmax.xlane.f32.xlu1 %v3890_v35  ;;  %v6276_v48 = vpop.eup %6275 }
 0xaf5   :  { %v8112_v29 = vpop.f32.mrb[94].mxu0  ;;  %v6278_v18 = vpop.eup %6277  ;;  %v2338_v28 = vmul.f32 %v6276_v48, %v8023_v33 }
 0xaf6   :  { %v8114_v19 = vpop.f32.mrb[95].mxu0  ;;  %5042 = vmatmul.mubr.msk.bf16.vlgmr.msra.gmra.mrb[40].mxu1 %vm568_vm1, %v2348_v41  ;;  %v3899_v5 = vsel %vm568_vm1, %v8112_v29, -inf  ;;  %v2337_v10 = vmul.f32 %v6278_v18, %v8019_v53 }
 0xaf7   :  { %3900 = vmax.xlane.f32.xlu0 %v3899_v5  ;;  %5045 = vmatprep.mubr.msk.bf16.mxu1 %vm568_vm1, %v2349_v58  ;;  %v3896_v20 = vsel %vm568_vm1, %v8114_v19, -inf }
 0xaf8   :  { %v2350_v22 = vpack.c.bf16 %v2338_v28, %v2337_v10 }
 0xafe   :  { %5046 = vmatmul.mubr.msk.bf16.gmra.mrb[44].mxu1 %vm568_vm1, %v2350_v22 }
 0xb05   :  { %4044 = vrot.lane.b32.xlu1 %v8464_v45, %s6350_s8 }
 0xb09   :  { %4127 = vrot.lane.b32.xlu1 %v8466_v1, %s6350_s8 }
 0xb0d   :  { %4042 = vrot.lane.b32.xlu0 %v8465_v12, %s6350_s8 }
 0xb2d   :  { %3897 = vmax.xlane.f32.xlu1 %v3896_v20 }
 0xb58   :  { %v3859_v23 = vpop.xlane.xlu0 %3858 }
 0xb59   :  { %v3903_v33 = vsub.f32 %v8047_v37, %v3859_v23  ;;  %v3856_v53 = vpop.xlane.xlu1 %3855 }
 0xb5a   :  { %v3902_v2 = vsub.f32 %v8049_v27, %v3856_v53  ;;  %v8467_v53 = vld [vmem:[#allocation7_spill] sm:$0xff] }
 0xb5b   :  { %v3920_v25 = vmul.f32 1.442695, %v3903_v33 }
 0xb5c   :  { %v3918_v46 = vmul.f32 1.442695, %v3902_v2 }
 0xb5d   :  { %6279 = vpow2.f32 %v3920_v25  ;;  %v3865_v45 = vpop.xlane.xlu1 %3864 }
 0xb5e   :  { %6281 = vpow2.f32 %v3918_v46  ;;  %v3905_v51 = vsub.f32 %v8055_v8, %v3865_v45 }
 0xb60   :  { %v3924_v16 = vmul.f32 1.442695, %v3905_v51  ;;  %v3871_v21 = vpop.xlane.xlu0 %3870 }
 0xb61   :  { %v3907_v12 = vsub.f32 %v8061_v61, %v3871_v21  ;;  %v3862_v43 = vpop.xlane.xlu1 %3861 }
 0xb62   :  { %6283 = vpow2.f32 %v3924_v16  ;;  %v3904_v36 = vsub.f32 %v8057_v31, %v3862_v43 }
 0xb63   :  { %v3928_v47 = vmul.f32 1.442695, %v3907_v12 }
 0xb64   :  { %v3922_v37 = vmul.f32 1.442695, %v3904_v36  ;;  %v3877_v57 = vpop.xlane.xlu0 %3876 }
 0xb65   :  { %6285 = vpow2.f32 %v3928_v47  ;;  %v3909_v27 = vsub.f32 %v8069_v26, %v3877_v57  ;;  %v3868_v50 = vpop.xlane.xlu1 %3867 }
 0xb66   :  { %6287 = vpow2.f32 %v3922_v37  ;;  %v3906_v55 = vsub.f32 %v8063_v7, %v3868_v50 }
 0xb67   :  { %v8138_v59 = vpop.eup %6279  ;;  %v3932_v30 = vmul.f32 1.442695, %v3909_v27 }
 0xb68   :  { %v8140_v8 = vpop.eup %6281  ;;  %v3926_v61 = vmul.f32 1.442695, %v3906_v55  ;;  %v3953_v4 = vsel %vm568_vm1, %v8138_v59, 0.0 }
 0xb69   :  { %v3874_v31 = vpop.xlane.xlu1 %3873  ;;  %3954 = vadd.xlane.f32.xlu0 %v3953_v4  ;;  %v3950_v52 = vsel %vm568_vm1, %v8140_v8, 0.0 }
 0xb6a   :  { %6289 = vpow2.f32 %v3926_v61  ;;  %v3908_v26 = vsub.f32 %v8071_v56, %v3874_v31  ;;  %3951 = vadd.xlane.f32.xlu1 %v3950_v52 }
 0xb6b   :  { %6291 = vpow2.f32 %v3932_v30 }
 0xb6c   :  { %v8147_v9 = vpop.eup %6283  ;;  %v3930_v7 = vmul.f32 1.442695, %v3908_v26 }
 0xb6d   :  { %v3959_v40 = vsel %vm568_vm1, %v8147_v9, 0.0 }
 0xb6e   :  { %3960 = vadd.xlane.f32.xlu0 %v3959_v40  ;;  %6293 = vpow2.f32 %v3930_v7 }
 0xb6f   :  { %v8151_v38 = vpop.eup %6285 }
 0xb70   :  { %v8153_v15 = vpop.eup %6287  ;;  %v3965_v24 = vsel %vm568_vm1, %v8151_v38, 0.0 }
 0xb71   :  { %v3956_v56 = vsel %vm568_vm1, %v8153_v15, 0.0 }
 0xb72   :  { %3966 = vadd.xlane.f32.xlu0 %v3965_v24  ;;  %3957 = vadd.xlane.f32.xlu1 %v3956_v56  ;;  %v8468_v24 = vld [vmem:[#allocation9_spill] sm:$0xff]  ;;  %v8217_v56 = vld [vmem:[%s8408_s3] sm:$0xff]  }
 0xb74   :  { %v8159_v39 = vpop.eup %6289 }
 0xb75   :  { %v3962_v34 = vsel %vm568_vm1, %v8159_v39, 0.0  ;;  %v8163_v35 = vpop.eup %6291 }
 0xb76   :  { %3963 = vadd.xlane.f32.xlu0 %v3962_v34  ;;  %v3971_v58 = vsel %vm568_vm1, %v8163_v35, 0.0  ;;  %v8224_v34 = vld [vmem:[%s8408_s3 + $0x8] sm:$0xff]  }
 0xb78   :  { %v3883_v17 = vpop.xlane.xlu0 %3882  ;;  %v8168_v5 = vpop.eup %6293 }
 0xb79   :  { %v3911_v41 = vsub.f32 %v8082_v54, %v3883_v17  ;;  %v3880_v48 = vpop.xlane.xlu1 %3879  ;;  %v3968_v22 = vsel %vm568_vm1, %v8168_v5, 0.0 }
 0xb7a   :  { %3972 = vadd.xlane.f32.xlu0 %v3971_v58  ;;  %v3910_v36 = vsub.f32 %v8084_v32, %v3880_v48 }
 0xb7b   :  { %v3936_v18 = vmul.f32 1.442695, %v3911_v41 }
 0xb7c   :  { %v3889_v28 = vpop.xlane.xlu0 %3888  ;;  %v3934_v57 = vmul.f32 1.442695, %v3910_v36 }
 0xb7d   :  { %6295 = vpow2.f32 %v3936_v18  ;;  %v3886_v10 = vpop.xlane.xlu1 %3885  ;;  %v3913_v27 = vsub.f32 %v8090_v13, %v3889_v28 }
 0xb7e   :  { %3969 = vadd.xlane.f32.xlu0 %v3968_v22  ;;  %v3912_v30 = vsub.f32 %v8092_v42, %v3886_v10 }
 0xb7f   :  { %v3940_v55 = vmul.f32 1.442695, %v3913_v27 }
 0xb80   :  { %v3895_v1 = vpop.xlane.xlu0 %3894  ;;  %v3938_v32 = vmul.f32 1.442695, %v3912_v30 }
 0xb81   :  { %v3915_v20 = vsub.f32 %v8100_v3, %v3895_v1  ;;  %v3892_v23 = vpop.xlane.xlu1 %3891 }
 0xb82   :  { %v3914_v54 = vsub.f32 %v8104_v14, %v3892_v23 }
 0xb83   :  { %v3944_v33 = vmul.f32 1.442695, %v3915_v20  ;;  %4129 = vrot.lane.b32.xlu1 %v8467_v53, %s6350_s8 }
 0xb84   :  { %v3942_v2 = vmul.f32 1.442695, %v3914_v54  ;;  %v3901_v25 = vpop.xlane.xlu0 %3900 }
 0xb85   :  { %6297 = vpow2.f32 %v3944_v33  ;;  %v3917_v46 = vsub.f32 %v8112_v29, %v3901_v25  ;;  %v4045_v16 = vpop.permute.xlu1 %4044 }
 0xb86   :  { %6299 = vpow2.f32 %v3942_v2 }
 0xb87   :  { %v8177_v45 = vpop.eup %6295  ;;  %v3948_v51 = vmul.f32 1.442695, %v3917_v46  ;;  %v8469_v46 = vld [vmem:[#allocation8_spill] sm:$0xff] }
 0xb88   :  { %v4043_v21 = vpop.permute.xlu0 %4042  ;;  %v3977_v3 = vsel %vm568_vm1, %v8177_v45, 0.0 }
 0xb89   :  { %3978 = vadd.xlane.f32.xlu0 %v3977_v3  ;;  %5273 = vmatprep.subr.bf16.mxu0 %v4043_v21  ;;  %6301 = vpow2.f32 %v3948_v51  ;;  %v8181_v14 = vpop.permute.xlu1 %4127  ;;  %v8471_v3 = vld [vmem:[#allocation19_spill] sm:$0xff] }
 0xb8a   :  { %5274 = vmatpush3.bf16.msra.mxu0 %v4043_v21  ;;  %6303 = vpow2.f32 %v3934_v57  ;;  %v2585_v36 = vsel %vm1176_vm3, %v8471_v3, 0  ;;  %v8472_v57 = vld [vmem:[#allocation22_spill] sm:$0xff] }
 0xb8b   :  { %5275 = vmatprep.subr.bf16.mxu0 %v4045_v16  ;;  %6305 = vpow2.f32 %v3940_v55 }
 0xb8c   :  { %6307 = vpow2.f32 %v3938_v32 }
 0xb8e   :  { %5276 = vmatpush3.bf16.msra.mxu0 %v4045_v16  ;;  %v8470_v16 = vld [vmem:[#allocation20_spill] sm:$0xff] }
 0xb8f   :  { %v8183_v12 = vpop.eup %6297  ;;  %5285 = vmatprep.subr.bf16.mxu0 %v8181_v14  ;;  %v2582_v21 = vsel %vm1176_vm3, %v8470_v16, 0 }
 0xb90   :  { %v3989_v29 = vsel %vm568_vm1, %v8183_v12, 0.0  ;;  %v8188_v43 = vpop.eup %6299 }
 0xb91   :  { %3990 = vadd.xlane.f32.xlu0 %v3989_v29  ;;  %v3986_v47 = vsel %vm568_vm1, %v8188_v43, 0.0 }
 0xb93   :  { %v8193_v37 = vpop.eup %6301 }
 0xb94   :  { %v3995_v50 = vsel %vm568_vm1, %v8193_v37, 0.0  ;;  %v8199_v61 = vpop.eup %6303 }
 0xb95   :  { %3987 = vadd.xlane.f32.xlu0 %v3986_v47  ;;  %v3974_v4 = vsel %vm568_vm1, %v8199_v61, 0.0  ;;  %v8203_v31 = vpop.eup %6305 }
 0xb96   :  { %v3983_v13 = vsel %vm568_vm1, %v8203_v31, 0.0  ;;  %v8207_v52 = vpop.eup %6307 }
 0xb97   :  { %v3980_v42 = vsel %vm568_vm1, %v8207_v52, 0.0 }
 0xb99   :  { %3996 = vadd.xlane.f32.xlu0 %v3995_v50  ;;  %v2588_v50 = vsel %vm1176_vm3, %v8472_v57, 0 }
 0xba7   :  { %3975 = vadd.xlane.f32.xlu1 %v3974_v4  ;;  %v8473_v4 = vld [vmem:[#allocation21_spill] sm:$0xff] }
 0xbab   :  { %3984 = vadd.xlane.f32.xlu1 %v3983_v13 }
 0xbaf   :  { %3981 = vadd.xlane.f32.xlu1 %v3980_v42 }
 0xbba   :  { %v3898_v26 = vpop.xlane.xlu1 %3897 }
 0xbbb   :  { %v3916_v7 = vsub.f32 %v8114_v19, %v3898_v26 }
 0xbbd   :  { %v3946_v40 = vmul.f32 1.442695, %v3916_v7 }
 0xbbf   :  { %6309 = vpow2.f32 %v3946_v40 }
 0xbc0   :  { %4133 = vrot.lane.b32.xlu1 %v8468_v24, %s6350_s8  ;;  %v2591_v24 = vsel %vm1176_vm3, %v8473_v4, 0 }
 0xbc4   :  { %2559 = vrot.lane.b32.xlu1 %v8217_v56, %s6348_s2 }
 0xbc8   :  { %2561 = vrot.lane.b32.xlu1 %v8224_v34, %s6348_s2 }
 0xbc9   :  { %v8228_v19 = vpop.eup %6309  ;;  %v5043_v17 = vpop.f32.mrb[40].mxu1 }
 0xbca   :  { %v2417_v41 = vpop.f32.mrb[41].mxu1  ;;  %v3992_v48 = vsel %vm568_vm1, %v8228_v19, 0.0 }
 0xbcb   :  { %3993 = vadd.xlane.f32.xlu0 %v3992_v48  ;;  %v5044_v58 = vpop.f32.mrb[42].mxu1  ;;  %v8474_v48 = vld [vmem:[#allocation11_spill] sm:$0xff] }
 0xbcc   :  { %v2542_v18 = vpack.c.bf16 %v5044_v58, %v5043_v17  ;;  %v2420_v28 = vpop.f32.mrb[43].mxu1  ;;  %3429 = vrot.lane.b32.xlu1 %v8217_v56, %s6345_s19 }
 0xbcd   :  { %v2541_v10 = vpack.c.bf16 %v2420_v28, %v2417_v41 }
 0xbce   :  { %v2573_v2 = vsel %vm1176_vm3, %v2542_v18, 0 }
 0xbcf   :  { %v2570_v22 = vsel %vm1176_vm3, %v2541_v10, 0  ;;  %5589 = vmatprep.subr.msk.bf16.mxu1 %vm1176_vm3, %v2541_v10 }
 0xbd0   :  { %5066 = vmatpush3.bf16.xpose.msra.mxu1 %v2570_v22  ;;  %3431 = vrot.lane.b32.xlu1 %v8224_v34, %s6345_s19 }
 0xbd1   :  { %v5047_v1 = vpop.f32.mrb[44].mxu1  ;;  %5590 = vmatprep.subr.msk.bf16.mxu1 %vm1176_vm3, %v2542_v18 }
 0xbd2   :  { %v2433_v20 = vpop.f32.mrb[45].mxu1 }
 0xbd3   :  { %v5048_v23 = vpop.f32.mrb[46].mxu1 }
 0xbd4   :  { %v2544_v54 = vpack.c.bf16 %v5048_v23, %v5047_v1  ;;  %v2436_v33 = vpop.f32.mrb[47].mxu1  ;;  %4226 = vrot.lane.b32.xlu1 %v8224_v34, %s6350_s8 }
 0xbd5   :  { %v2543_v53 = vpack.c.bf16 %v2436_v33, %v2433_v20 }
 0xbd6   :  { %v2579_v51 = vsel %vm1176_vm3, %v2544_v54, 0 }
 0xbd7   :  { %v2576_v25 = vsel %vm1176_vm3, %v2543_v53, 0 }
 0xbd8   :  { %5068 = vmatpush3.bf16.xpose.msra.mxu1 %v2573_v2 }
 0xbd9   :  { %5591 = vmatprep.subr.msk.bf16.mxu1 %vm1176_vm3, %v2543_v53 }
 0xbe0   :  { %5070 = vmatpush3.bf16.xpose.msra.mxu1 %v2576_v25 }
 0xbe1   :  { %4131 = vrot.lane.b32.xlu0 %v8469_v46, %s6350_s8  ;;  %5592 = vmatprep.subr.msk.bf16.mxu1 %vm1176_vm3, %v2544_v54 }
 0xbe5   :  { %4224 = vrot.lane.b32.xlu0 %v8217_v56, %s6350_s8 }
 0xbe8   :  { %5072 = vmatpush3.bf16.xpose.msra.mxu1 %v2579_v51 }
 0xbe9   :  { %5593 = vmatprep.subr.msk.bf16.mxu1 %vm1176_vm3, %v8470_v16 }
 0xbf0   :  { %5074 = vmatpush3.bf16.xpose.msra.mxu1 %v2582_v21 }
 0xbf1   :  { %5594 = vmatprep.subr.msk.bf16.mxu1 %vm1176_vm3, %v8471_v3 }
 0xbf6   :  { %v3955_v29 = vpop.xlane.xlu0 %3954 }
 0xbf7   :  { %6311 = vrcp.f32 %v3955_v29  ;;  %v3952_v47 = vpop.xlane.xlu1 %3951 }
 0xbf8   :  { %6313 = vrcp.f32 %v3952_v47  ;;  %5076 = vmatpush3.bf16.xpose.msra.mxu1 %v2585_v36  ;;  %v2649_v47 = vsel %vm1176_vm3, %v8474_v48, 0 }
 0xbf9   :  { %5595 = vmatprep.subr.msk.bf16.mxu1 %vm1176_vm3, %v8472_v57 }
 0xbfb   :  { %v3961_v27 = vpop.xlane.xlu0 %3960 }
 0xbfc   :  { %6315 = vrcp.f32 %v3961_v27  ;;  %v8476_v27 = vld [vmem:[#allocation13_spill] sm:$0xff] }
 0xbff   :  { %v3967_v55 = vpop.xlane.xlu0 %3966  ;;  %v3958_v30 = vpop.xlane.xlu1 %3957 }
 0xc00   :  { %5078 = vmatpush3.bf16.xpose.msra.mxu1 %v2588_v50  ;;  %6317 = vrcp.f32 %v3958_v30  ;;  %v8477_v30 = vld [vmem:[#allocation12_spill] sm:$0xff] }
 0xc01   :  { %v6312_v32 = vpop.eup %6311  ;;  %5596 = vmatprep.subr.msk.bf16.mxu1 %vm1176_vm3, %v8473_v4  ;;  %6319 = vrcp.f32 %v3967_v55 }
 0xc02   :  { %v6314_v13 = vpop.eup %6313  ;;  %v4015_v42 = vmul.f32 %v6312_v32, %v8138_v59 }
 0xc03   :  { %v3964_v26 = vpop.xlane.xlu0 %3963  ;;  %v4014_v7 = vmul.f32 %v6314_v13, %v8140_v8  ;;  %v4130_v23 = vpop.permute.xlu1 %4129 }
 0xc04   :  { %6321 = vrcp.f32 %v3964_v26 }
 0xc05   :  { %v4030_v40 = vpack.c.bf16 %v4015_v42, %v4014_v7 }
 0xc06   :  { %v6316_v41 = vpop.eup %6315 }
 0xc07   :  { %v3973_v17 = vpop.xlane.xlu0 %3972  ;;  %5277 = vmatprep.mubr.msk.bf16.mxu0 %vm568_vm1, %v4030_v40  ;;  %v4017_v28 = vmul.f32 %v6316_v41, %v8147_v9 }
 0xc08   :  { %5080 = vmatpush3.bf16.xpose.msra.mxu1 %v2591_v24  ;;  %6323 = vrcp.f32 %v3973_v17  ;;  %v2658_v24 = vsel %vm1176_vm3, %v8477_v30, 0 }
 0xc09   :  { %5597 = vmatprep.subr.msk.bf16.mxu1 %vm1176_vm3, %v8474_v48 }
 0xc0a   :  { %v6318_v58 = vpop.eup %6317 }
 0xc0b   :  { %v3970_v18 = vpop.xlane.xlu0 %3969  ;;  %v6320_v59 = vpop.eup %6319  ;;  %v4016_v8 = vmul.f32 %v6318_v58, %v8153_v15  ;;  %v8478_v58 = vld [vmem:[#allocation15_spill] sm:$0xff] }
 0xc0c   :  { %6325 = vrcp.f32 %v3970_v18  ;;  %v4019_v20 = vmul.f32 %v6320_v59, %v8151_v38 }
 0xc0d   :  { %v4031_v22 = vpack.c.bf16 %v4017_v28, %v4016_v8 }
 0xc0e   :  { %v6322_v10 = vpop.eup %6321 }
 0xc0f   :  { %v4018_v1 = vmul.f32 %v6322_v10, %v8159_v39  ;;  %5278 = vmatmul.mubr.msk.bf16.vlgmr.msra.gmra.mrb[96].mxu0 %vm568_vm1, %v4031_v22  ;;  %v8480_v22 = vld [vmem:[#allocation17_spill] sm:$0xff] }
 0xc10   :  { %5286 = vmatpush3.bf16.msra.mxu0 %v8181_v14 }
 0xc11   :  { %v4032_v54 = vpack.c.bf16 %v4019_v20, %v4018_v1  ;;  %5287 = vmatprep.subr.bf16.mxu0 %v4130_v23  ;;  %v8481_v1 = vld [vmem:[#allocation16_spill] sm:$0xff]  ;;  %v3440_v20 = vsel %vm1176_vm3, %v8029_v62, 0 }
 0xc12   :  { %v6324_v33 = vpop.eup %6323 }
 0xc13   :  { %5281 = vmatprep.mubr.msk.bf16.mxu0 %vm568_vm1, %v4032_v54  ;;  %v4021_v53 = vmul.f32 %v6324_v33, %v8163_v35  ;;  %v3443_v54 = vsel %vm1176_vm3, %v8027_v11, 0 }
 0xc14   :  { %5288 = vmatpush3.bf16.msra.mxu0 %v4130_v23 }
 0xc16   :  { %v6326_v9 = vpop.eup %6325  ;;  %v3979_v38 = vpop.xlane.xlu0 %3978 }
 0xc17   :  { %v4020_v15 = vmul.f32 %v6326_v9, %v8168_v5  ;;  %6327 = vrcp.f32 %v3979_v38 }
 0xc19   :  { %v4033_v2 = vpack.c.bf16 %v4021_v53, %v4020_v15  ;;  %v4314_v15 = vld [vmem:[%s8409_s4 + $0x18] sm:$0xff] }
 0xc1b   :  { %5282 = vmatmul.mubr.msk.bf16.gmra.mrb[100].mxu0 %vm568_vm1, %v4033_v2 }
 0xc1e   :  { %v3991_v5 = vpop.xlane.xlu0 %3990 }
 0xc21   :  { %v6328_v46 = vpop.eup %6327 }
 0xc22   :  { %v4023_v3 = vmul.f32 %v6328_v46, %v8177_v45  ;;  %v3988_v45 = vpop.xlane.xlu0 %3987 }
 0xc26   :  { %v3997_v50 = vpop.xlane.xlu0 %3996 }
 0xc34   :  { %v3976_v39 = vpop.xlane.xlu1 %3975 }
 0xc35   :  { %6329 = vrcp.f32 %v3976_v39 }
 0xc38   :  { %v3985_v25 = vpop.xlane.xlu1 %3984 }
 0xc3c   :  { %v3982_v14 = vpop.xlane.xlu1 %3981 }
 0xc3d   :  { %6331 = vrcp.f32 %v3982_v14 }
 0xc3e   :  { %6333 = vrcp.f32 %v3988_v45 }
 0xc3f   :  { %v6330_v51 = vpop.eup %6329  ;;  %6335 = vrcp.f32 %v3985_v25 }
 0xc40   :  { %v4134_v16 = vpop.permute.xlu1 %4133  ;;  %v4022_v21 = vmul.f32 %v6330_v51, %v8199_v61  ;;  %v8475_v61 = vld [vmem:[#allocation10_spill] sm:$0xff]  ;;  %6337 = vrcp.f32 %v3991_v5 }
 0xc41   :  { %v2652_v57 = vsel %vm1176_vm3, %v8475_v61, 0 }
 0xc42   :  { %v4034_v29 = vpack.c.bf16 %v4023_v3, %v4022_v21 }
 0xc44   :  { %5293 = vmatprep.mubr.msk.bf16.mxu0 %vm568_vm1, %v4034_v29  ;;  %v2560_v35 = vpop.permute.xlu1 %2559 }
 0xc45   :  { %5081 = vmatprep.mubr.msk.bf16.mxu1 %vm1176_vm3, %v2560_v35 }
 0xc47   :  { %v6332_v32 = vpop.eup %6331 }
 0xc48   :  { %v2562_v36 = vpop.permute.xlu1 %2561  ;;  %v6334_v13 = vpop.eup %6333  ;;  %v4024_v7 = vmul.f32 %v6332_v32, %v8207_v52 }
 0xc49   :  { %5082 = vmatmul.mubr.msk.bf16.vlgmr.msra.gmra.mrb[48].mxu1 %vm1176_vm3, %v2562_v36  ;;  %v6336_v42 = vpop.eup %6335  ;;  %v4026_v40 = vmul.f32 %v6334_v13, %v8188_v43 }
 0xc4a   :  { %5086 = vmatpush3.bf16.xpose.msra.mxu1 %v2649_v47  ;;  %5101 = vmatprep.mubr.msk.bf16.mxu1 %vm1176_vm3, %v8217_v56  ;;  %v2655_v56 = vsel %vm1176_vm3, %v8476_v27, 0  ;;  %v6338_v26 = vpop.eup %6337  ;;  %v4025_v17 = vmul.f32 %v6336_v42, %v8203_v31  ;;  %v2661_v31 = vsel %vm1176_vm3, %v8478_v58, 0 }
 0xc4b   :  { %5598 = vmatprep.subr.msk.bf16.mxu1 %vm1176_vm3, %v8475_v61  ;;  %v4027_v41 = vmul.f32 %v6338_v26, %v8183_v12  ;;  %v8479_v12 = vld [vmem:[#allocation14_spill] sm:$0xff] }
 0xc4c   :  { %v4035_v48 = vpack.c.bf16 %v4025_v17, %v4024_v7  ;;  %v2664_v10 = vsel %vm1176_vm3, %v8479_v12, 0  ;;  %v3430_v23 = vpop.permute.xlu1 %3429 }
 0xc4d   :  { %v4036_v59 = vpack.c.bf16 %v4027_v41, %v4026_v40 }
 0xc50   :  { %v3432_v33 = vpop.permute.xlu1 %3431 }
 0xc52   :  { %5088 = vmatpush3.bf16.xpose.msra.mxu1 %v2652_v57 }
 0xc53   :  { %5599 = vmatprep.subr.msk.bf16.mxu1 %vm1176_vm3, %v8476_v27 }
 0xc54   :  { %v4227_v17 = vpop.permute.xlu1 %4226 }
 0xc58   :  { %v3994_v55 = vpop.xlane.xlu0 %3993 }
 0xc59   :  { %6339 = vrcp.f32 %v3994_v55 }
 0xc5a   :  { %5090 = vmatpush3.bf16.xpose.msra.mxu1 %v2655_v56  ;;  %6341 = vrcp.f32 %v3997_v50 }
 0xc5b   :  { %5600 = vmatprep.subr.msk.bf16.mxu1 %vm1176_vm3, %v8477_v30 }
 0xc5c   :  { %v4132_v4 = vpop.permute.xlu0 %4131 }
 0xc5d   :  { %5289 = vmatprep.subr.bf16.mxu0 %v4132_v4 }
 0xc5e   :  { %5290 = vmatpush3.bf16.msra.mxu0 %v4132_v4 }
 0xc5f   :  { %5291 = vmatprep.subr.bf16.mxu0 %v4134_v16 }
 0xc60   :  { %v4225_v9 = vpop.permute.xlu0 %4224 }
 0xc62   :  { %5092 = vmatpush3.bf16.xpose.msra.mxu1 %v2658_v24  ;;  %5292 = vmatpush3.bf16.msra.mxu0 %v4134_v16 }
 0xc63   :  { %5601 = vmatprep.subr.msk.bf16.mxu1 %vm1176_vm3, %v8478_v58  ;;  %v6340_v18 = vpop.eup %6339 }
 0xc64   :  { %v6342_v52 = vpop.eup %6341  ;;  %v4028_v43 = vmul.f32 %v6340_v18, %v8228_v19  ;;  %v2667_v19 = vsel %vm1176_vm3, %v8480_v22, 0 }
 0xc65   :  { %5294 = vmatmul.mubr.msk.bf16.vlgmr.msra.gmra.mrb[104].mxu0 %vm568_vm1, %v4035_v48  ;;  %v4029_v28 = vmul.f32 %v6342_v52, %v8193_v37  ;;  %v2670_v37 = vsel %vm1176_vm3, %v8481_v1, 0 }
 0xc66   :  { %5297 = vmatprep.mubr.msk.bf16.mxu0 %vm568_vm1, %v4036_v59 }
 0xc67   :  { %v4037_v8 = vpack.c.bf16 %v4029_v28, %v4028_v43 }
 0xc6a   :  { %5094 = vmatpush3.bf16.xpose.msra.mxu1 %v2661_v31 }
 0xc6b   :  { %5602 = vmatprep.subr.msk.bf16.mxu1 %vm1176_vm3, %v8479_v12 }
 0xc6d   :  { %5298 = vmatmul.mubr.msk.bf16.gmra.mrb[108].mxu0 %vm568_vm1, %v4037_v8 }
 0xc72   :  { %5096 = vmatpush3.bf16.xpose.msra.mxu1 %v2664_v10 }
 0xc73   :  { %5603 = vmatprep.subr.msk.bf16.mxu1 %vm1176_vm3, %v8480_v22 }
 0xc7a   :  { %5098 = vmatpush3.bf16.xpose.msra.mxu1 %v2667_v19 }
 0xc7b   :  { %5604 = vmatprep.subr.msk.bf16.mxu1 %vm1176_vm3, %v8481_v1 }
 0xc82   :  { %5100 = vmatpush3.bf16.xpose.msra.mxu1 %v2670_v37 }
 0xc83   :  { %5605 = vmatprep.subr.msk.bf16.mxu1 %vm1176_vm3, %v8029_v62  ;;  %v3446_v62 = vsel %vm1176_vm3, %v8035_v6, 0 }
 0xc89   :  { %5102 = vmatmul.mubr.msk.bf16.vlgmr.msra.gmra.mrb[48].mxu1 %vm1176_vm3, %v8224_v34  ;;  %v3449_v34 = vsel %vm1176_vm3, %v8033_v0, 0 }
 0xc8a   :  { %5194 = vmatpush3.bf16.xpose.msra.mxu1 %v3440_v20  ;;  %5209 = vmatprep.mubr.msk.bf16.mxu1 %vm1176_vm3, %v3430_v23 }
 0xc8b   :  { %5606 = vmatprep.subr.msk.bf16.mxu1 %vm1176_vm3, %v8027_v11  ;;  %v3452_v11 = vsel %vm1176_vm3, %v8039_v63, 0 }
 0xc92   :  { %5196 = vmatpush3.bf16.xpose.msra.mxu1 %v3443_v54 }
 0xc93   :  { %5607 = vmatprep.subr.msk.bf16.mxu1 %vm1176_vm3, %v8035_v6  ;;  %v3455_v6 = vsel %vm1176_vm3, %v8037_v49, 0 }
 0xc9a   :  { %5198 = vmatpush3.bf16.xpose.msra.mxu1 %v3446_v62 }
 0xc9b   :  { %5608 = vmatprep.subr.msk.bf16.mxu1 %vm1176_vm3, %v8033_v0  ;;  %v3458_v0 = vsel %vm1176_vm3, %v8045_v44, 0 }
 0xca2   :  { %5200 = vmatpush3.bf16.xpose.msra.mxu1 %v3449_v34 }
 0xca3   :  { %5609 = vmatprep.subr.msk.bf16.mxu1 %vm1176_vm3, %v8039_v63  ;;  %v3461_v63 = vsel %vm1176_vm3, %v8043_v60, 0 }
 0xcaa   :  { %5202 = vmatpush3.bf16.xpose.msra.mxu1 %v3452_v11 }
 0xcab   :  { %5610 = vmatprep.subr.msk.bf16.mxu1 %vm1176_vm3, %v8037_v49  ;;  %v4312_v49 = vld [vmem:[%s8409_s4 + $0x8] sm:$0xff] }
 0xcac   :  { %4322 = vperm.xlu1 %6030, %v4312_v49  }
 0xcb2   :  { %5204 = vmatpush3.bf16.xpose.msra.mxu1 %v3455_v6 }
 0xcb3   :  { %5611 = vmatprep.subr.msk.bf16.mxu1 %vm1176_vm3, %v8045_v44  ;;  %v4311_v44 = vld [vmem:[%s8409_s4] sm:$0xff] }
 0xcb4   :  { %4317 = vperm.xlu0 %6029, %v4311_v44  }
 0xcb8   :  { %4332 = vperm.xlu0 %6029, %v4314_v15  }
 0xcba   :  { %5206 = vmatpush3.bf16.xpose.msra.mxu1 %v3458_v0 }
 0xcbb   :  { %5612 = vmatprep.subr.msk.bf16.mxu1 %vm1176_vm3, %v8043_v60  ;;  %v4313_v60 = vld [vmem:[%s8409_s4 + $0x10] sm:$0xff] }
 0xcbc   :  { %4327 = vperm.xlu1 %6030, %v4313_v60  }
 0xcc2   :  { %5208 = vmatpush3.bf16.xpose.msra.mxu1 %v3461_v63 }
 0xcc9   :  { %5210 = vmatmul.mubr.msk.bf16.vlgmr.msra.gmra.mrb[48].mxu1 %vm1176_vm3, %v3432_v33 }
 0xcca   :  { %5317 = vmatprep.mubr.msk.bf16.mxu1 %vm1176_vm3, %v4225_v9 }
 0xce2   :  { %v5279_v53 = vpop.f32.mrb[96].mxu0 }
 0xce3   :  { %v4096_v2 = vpop.f32.mrb[97].mxu0 }
 0xce4   :  { %v5280_v38 = vpop.f32.mrb[98].mxu0 }
 0xce5   :  { %v4217_v39 = vpack.c.bf16 %v5280_v38, %v5279_v53  ;;  %v4099_v25 = vpop.f32.mrb[99].mxu0 }
 0xce6   :  { %v4216_v14 = vpack.c.bf16 %v4099_v25, %v4096_v2 }
 0xce7   :  { %v4238_v3 = vsel %vm1176_vm3, %v4217_v39, 0 }
 0xce8   :  { %v4235_v46 = vsel %vm1176_vm3, %v4216_v14, 0  ;;  %5613 = vmatprep.subr.msk.bf16.mxu1 %vm1176_vm3, %v4216_v14 }
 0xce9   :  { %5302 = vmatpush3.bf16.xpose.msra.mxu1 %v4235_v46 }
 0xcea   :  { %5614 = vmatprep.subr.msk.bf16.mxu1 %vm1176_vm3, %v4217_v39 }
 0xcee   :  { %v5283_v51 = vpop.f32.mrb[100].mxu0 }
 0xcef   :  { %v4112_v16 = vpop.f32.mrb[101].mxu0 }
 0xcf0   :  { %v5284_v21 = vpop.f32.mrb[102].mxu0 }
 0xcf1   :  { %v4219_v29 = vpack.c.bf16 %v5284_v21, %v5283_v51  ;;  %v4115_v35 = vpop.f32.mrb[103].mxu0  ;;  %5304 = vmatpush3.bf16.xpose.msra.mxu1 %v4238_v3 }
 0xcf2   :  { %v4218_v5 = vpack.c.bf16 %v4115_v35, %v4112_v16 }
 0xcf3   :  { %v4244_v47 = vsel %vm1176_vm3, %v4219_v29, 0 }
 0xcf4   :  { %5615 = vmatprep.subr.msk.bf16.mxu1 %vm1176_vm3, %v4218_v5  ;;  %v4241_v36 = vsel %vm1176_vm3, %v4218_v5, 0 }
 0xcf9   :  { %5306 = vmatpush3.bf16.xpose.msra.mxu1 %v4241_v36 }
 0xcfa   :  { %5616 = vmatprep.subr.msk.bf16.mxu1 %vm1176_vm3, %v4219_v29 }
 0xd01   :  { %5308 = vmatpush3.bf16.xpose.msra.mxu1 %v4244_v47 }
 0xd2b   :  { %v4323_v41 = vpop.permute.xlu1 %4322 }
 0xd33   :  { %v4318_v48 = vpop.permute.xlu0 %4317 }
 0xd37   :  { %v4333_v31 = vpop.permute.xlu0 %4332 }
 0xd38   :  { %v5295_v61 = vpop.f32.mrb[104].mxu0 }
 0xd39   :  { %v4185_v45 = vpop.f32.mrb[105].mxu0 }
 0xd3a   :  { %v5296_v57 = vpop.f32.mrb[106].mxu0 }
 0xd3b   :  { %v4221_v27 = vpack.c.bf16 %v5296_v57, %v5295_v61  ;;  %v4188_v50 = vpop.f32.mrb[107].mxu0  ;;  %v4328_v58 = vpop.permute.xlu1 %4327 }
 0xd3c   :  { %v4220_v55 = vpack.c.bf16 %v4188_v50, %v4185_v45 }
 0xd3d   :  { %v4250_v7 = vsel %vm1176_vm3, %v4221_v27, 0 }
 0xd3e   :  { %v4247_v56 = vsel %vm1176_vm3, %v4220_v55, 0  ;;  %5617 = vmatprep.subr.msk.bf16.mxu1 %vm1176_vm3, %v4220_v55 }
 0xd3f   :  { %5310 = vmatpush3.bf16.xpose.msra.mxu1 %v4247_v56 }
 0xd40   :  { %v5299_v30 = vpop.f32.mrb[108].mxu0  ;;  %5618 = vmatprep.subr.msk.bf16.mxu1 %vm1176_vm3, %v4221_v27 }
 0xd41   :  { %v4201_v32 = vpop.f32.mrb[109].mxu0 }
 0xd42   :  { %v5300_v4 = vpop.f32.mrb[110].mxu0 }
 0xd43   :  { %v4223_v13 = vpack.c.bf16 %v5300_v4, %v5299_v30  ;;  %v4204_v42 = vpop.f32.mrb[111].mxu0 }
 0xd44   :  { %v4222_v26 = vpack.c.bf16 %v4204_v42, %v4201_v32 }
 0xd45   :  { %v4256_v24 = vsel %vm1176_vm3, %v4223_v13, 0 }
 0xd46   :  { %v4253_v40 = vsel %vm1176_vm3, %v4222_v26, 0 }
 0xd47   :  { %5312 = vmatpush3.bf16.xpose.msra.mxu1 %v4250_v7 }
 0xd48   :  { %5619 = vmatprep.subr.msk.bf16.mxu1 %vm1176_vm3, %v4222_v26 }
 0xd4f   :  { %5314 = vmatpush3.bf16.xpose.msra.mxu1 %v4253_v40 }
 0xd50   :  { %5620 = vmatprep.subr.msk.bf16.mxu1 %vm1176_vm3, %v4223_v13 }
 0xd57   :  { %5316 = vmatpush3.bf16.xpose.msra.mxu1 %v4256_v24 }
 0xd5e   :  { %5318 = vmatmul.mubr.msk.bf16.vlgmr.msra.gmra.mrb[48].mxu1 %vm1176_vm3, %v4227_v17 }
 0xe31   :  { %v5319_v18 = vpop.f32.mrb[48].mxu1 }
 0xe32   :  { %v4337_v59 = vadd.f32 %v5319_v18, %v4328_v58  ;;  %v4292_v52 = vpop.f32.mrb[49].mxu1 }
 0xe33   :  { %v4335_v43 = vadd.f32 %v4318_v48, %v4292_v52  ;;  %v5320_v28 = vpop.f32.mrb[50].mxu1 }
 0xe34   :  { %4341 = vst [vmem:[%s8410_s5 + $0x10] sm:$0xff] %v4337_v59  ;;  %v4338_v12 = vadd.f32 %v5320_v28, %v4333_v31  ;;  %v4295_v8 = vpop.f32.mrb[51].mxu1 }
 0xe35   :  { %4339 = vst [vmem:[%s8410_s5] sm:$0xff] %v4335_v43  ;;  %v4336_v10 = vadd.f32 %v4323_v41, %v4295_v8 }
 0xe36   :  { %4342 = vst [vmem:[%s8410_s5 + $0x18] sm:$0xff] %v4338_v12 }
 0xe37   :  { %4340 = vst [vmem:[%s8410_s5 + $0x8] sm:$0xff] %v4336_v10 }

</bundles_post_ra>
